<compile_context>
chip_gen: v7x
topology: tpu7x:2x2x1
jax: 0.10.0
libtpu: 0.0.40
codegen_flags: <defaults>
</compile_context>

<pallas_src>
import jax
import jax.numpy as jnp
from jax import lax
from jax.experimental import pallas as pl
from jax.experimental.pallas import tpu as pltpu


def _encoder_gru_kernel(tok_ref,      # SMEM (T,)   int32  token ids
                        emb_ref,      # VMEM (V, H) f32    embedding table (resident)
                        h0_ref,       # VMEM (1, H) f32    initial hidden
                        wih_ref,      # VMEM (H, 3H) bf16  W_ih^T (resident)
                        whh_ref,      # VMEM (H, 3H) bf16  W_hh^T (resident)
                        bgi_ref,      # VMEM (1, 3H) f32   b_ih + [b_hr, b_hz, 0]
                        bhn_ref,      # VMEM (1, H)  f32   b_hn (inside r*(...))
                        out_ref,      # VMEM (T, H)  f32   hidden after each step
                        x_scratch,    # VMEM (T, H)  f32   gathered embedding rows
                        gi_scratch):  # VMEM (T, 3H) f32   hoisted input projections
    T, H = out_ref.shape

    # 1) Gather all T embedding rows (static python loop -> static store rows;
    #    the table row index is a dynamic sublane slice of a 32-bit array).
    for t in range(T):
        tok = tok_ref[t]
        x_scratch[pl.ds(t, 1), :] = emb_ref[pl.ds(tok, 1), :]

    # 2) Hoisted input projection for ALL timesteps: one (T,H)x(H,3H) matmul.
    #    Biases for the r/z gates are pre-folded (b_ih + b_hh); the n-gate
    #    input bias b_in is included here, b_hn is applied inside r*(...).
    gi_scratch[...] = (
        jnp.dot(x_scratch[...].astype(wih_ref.dtype), wih_ref[...],
                preferred_element_type=jnp.float32)
        + bgi_ref[...])

    bhn = bhn_ref[...]                               # (1, H) f32

    # 3) Serial recurrence: only the hidden projection remains per step.
    def step(t, h):                                  # h: (1, H) f32
        gi = gi_scratch[pl.ds(t, 1), :]              # (1, 3H) f32
        gh = jnp.dot(h.astype(whh_ref.dtype), whh_ref[...],
                     preferred_element_type=jnp.float32)   # (1, 3H) f32
        i_r, i_z, i_n = gi[:, 0:H], gi[:, H:2 * H], gi[:, 2 * H:3 * H]
        h_r, h_z, h_n = gh[:, 0:H], gh[:, H:2 * H], gh[:, 2 * H:3 * H]
        r = jax.nn.sigmoid(i_r + h_r)
        z = jax.nn.sigmoid(i_z + h_z)
        n = jnp.tanh(i_n + r * (h_n + bhn))
        h_new = (1.0 - z) * n + z * h
        out_ref[pl.ds(t, 1), :] = h_new.astype(out_ref.dtype)
        return h_new

    h0 = h0_ref[...].astype(jnp.float32)
    lax.fori_loop(0, T, step, h0, unroll=True)       # short fixed trip count


def encoder_rnn_forward(token_ids, hidden, params):
    """Run the encoder over a token sequence in one pallas_call.

    token_ids: int32 (T,)
    hidden:    f32 (1, 1, H) initial hidden (initHidden())
    Returns (outputs, hidden):
      outputs: (T, 1, H) -- outputs[t] equals the PyTorch forward() output of
               step t (== hidden state after step t).
      hidden:  (1, 1, H) -- final hidden state.
    For T == 1 this matches EncoderRNN.forward exactly.
    """
    emb = params["embedding"]          # (V, H)  f32
    wih_t = params["wih_t"]            # (H, 3H) bf16
    whh_t = params["whh_t"]            # (H, 3H) bf16
    b_ih = params["b_ih"]              # (3H,)   f32
    b_hh = params["b_hh"]              # (3H,)   f32

    V, H = emb.shape
    T = int(token_ids.shape[0])

    # Fold b_hh into the input-projection bias for the r/z gates (both biases
    # are added outside the r* term); keep b_hn separate (inside r*(...)).
    b_gi = (b_ih + jnp.concatenate(
        [b_hh[:2 * H], jnp.zeros((H,), b_hh.dtype)])).reshape(1, 3 * H)
    b_hn = b_hh[2 * H:].reshape(1, H)

    h0 = hidden.reshape(1, H).astype(jnp.float32)
    token_ids = token_ids.astype(jnp.int32)

    vmem = pl.BlockSpec(memory_space=pltpu.MemorySpace.VMEM)
    smem = pl.BlockSpec(memory_space=pltpu.MemorySpace.SMEM)

    outs2d = pl.pallas_call(
        _encoder_gru_kernel,
        out_shape=jax.ShapeDtypeStruct((T, H), jnp.float32),
        in_specs=[smem, vmem, vmem, vmem, vmem, vmem, vmem],
        out_specs=vmem,
        scratch_shapes=[
            pltpu.VMEM((T, H), jnp.float32),        # gathered embedding rows
            pltpu.VMEM((T, 3 * H), jnp.float32),    # hoisted input projections
        ],
    )(token_ids, emb, h0, wih_t, whh_t, b_gi, b_hn)

    outputs = outs2d.reshape(T, 1, H)
    final_hidden = outs2d[T - 1].reshape(1, 1, H)
    return outputs, final_hidden


def init_params(key, input_size, hidden_size):
    """Deterministic synthetic parameters with torch-like init / shapes."""
    k = 1.0 / jnp.sqrt(hidden_size)
    keys = jax.random.split(key, 5)
    embedding = jax.random.normal(keys[0], (input_size, hidden_size), jnp.float32)
    # torch.nn.GRU stores weight_ih_l0 as (3H, H); keep the transposed form.
    w_ih = jax.random.uniform(keys[1], (3 * hidden_size, hidden_size), jnp.float32, -k, k)
    w_hh = jax.random.uniform(keys[2], (3 * hidden_size, hidden_size), jnp.float32, -k, k)
    b_ih = jax.random.uniform(keys[3], (3 * hidden_size,), jnp.float32, -k, k)
    b_hh = jax.random.uniform(keys[4], (3 * hidden_size,), jnp.float32, -k, k)
    return {
        "embedding": embedding,                        # (V, H)  f32 (robust VMEM gather)
        "wih_t": w_ih.T.astype(jnp.bfloat16),          # (H, 3H) bf16
        "whh_t": w_hh.T.astype(jnp.bfloat16),          # (H, 3H) bf16
        "b_ih": b_ih,                                  # (3H,)   f32
        "b_hh": b_hh,                                  # (3H,)   f32
    }


def reference_forward(token_ids, hidden, params):
    """Pure-JAX f32 reference using the raw torch GRU equations (un-folded biases)."""
    H = hidden.shape[-1]
    emb = params["embedding"].astype(jnp.float32)
    wih = params["wih_t"].astype(jnp.float32)
    whh = params["whh_t"].astype(jnp.float32)
    b_ih = params["b_ih"].reshape(1, -1)
    b_hh = params["b_hh"].reshape(1, -1)
    h = hidden.reshape(1, H).astype(jnp.float32)
    outs = []
    for t in range(token_ids.shape[0]):
        x = emb[token_ids[t]].reshape(1, H)
        gi = x @ wih + b_ih
        gh = h @ whh + b_hh
        i_r, i_z, i_n = gi[:, :H], gi[:, H:2 * H], gi[:, 2 * H:]
        h_r, h_z, h_n = gh[:, :H], gh[:, H:2 * H], gh[:, 2 * H:]
        r = jax.nn.sigmoid(i_r + h_r)
        z = jax.nn.sigmoid(i_z + h_z)
        n = jnp.tanh(i_n + r * h_n)
        h = (1.0 - z) * n + z * h
        outs.append(h)
    return jnp.stack(outs, axis=0), h.reshape(1, 1, H)


if __name__ == "__main__":
    input_size = 1000        # synthetic vocab size
    hidden_size = 256        # value from the PyTorch spec; multiple of 128
    seq_len = 8              # small encoder sequence

    key = jax.random.PRNGKey(0)
    pkey, tkey = jax.random.split(key)
    params = init_params(pkey, input_size, hidden_size)

    token_ids = jax.random.randint(tkey, (seq_len,), 0, input_size, dtype=jnp.int32)
    hidden0 = jnp.zeros((1, 1, hidden_size), jnp.float32)   # initHidden()

    outputs, hidden = encoder_rnn_forward(token_ids, hidden0, params)
    outputs = jax.block_until_ready(outputs)
    hidden = jax.block_until_ready(hidden)

    ref_out, ref_hid = reference_forward(token_ids, hidden0, params)
    assert outputs.shape == (seq_len, 1, hidden_size)
    assert hidden.shape == (1, 1, hidden_size)
    # bf16 matmuls (f32 accumulation) vs f32 reference -> loose-ish tolerance.
    assert jnp.allclose(outputs, ref_out, atol=2e-2, rtol=2e-2)
    assert jnp.allclose(hidden, ref_hid, atol=2e-2, rtol=2e-2)

    # Single-token call == exact PyTorch forward() semantics (output == hidden).
    out1, hid1 = encoder_rnn_forward(token_ids[:1], hidden0, params)
    out1 = jax.block_until_ready(out1)
    assert out1.shape == (1, 1, hidden_size) and hid1.shape == (1, 1, hidden_size)
    assert jnp.allclose(out1.reshape(1, 1, hidden_size), hid1)

    print("KERNEL_OK")
</pallas_src>

<mosaic_0001>
module attributes {stable_mosaic.version = 11 : i64} {
  func.func @_encoder_gru_kernel(%arg0: memref<8xi32, #tpu.memory_space<smem>>, %arg1: memref<1000x256xf32, #tpu.memory_space<vmem>>, %arg2: memref<1x256xf32, #tpu.memory_space<vmem>>, %arg3: memref<256x768xbf16, #tpu.memory_space<vmem>>, %arg4: memref<256x768xbf16, #tpu.memory_space<vmem>>, %arg5: memref<1x768xf32, #tpu.memory_space<vmem>>, %arg6: memref<1x256xf32, #tpu.memory_space<vmem>>, %arg7: memref<8x256xf32, #tpu.memory_space<vmem>>, %arg8: memref<8x256xf32, #tpu.memory_space<vmem>>, %arg9: memref<8x768xf32, #tpu.memory_space<vmem>>) attributes {dimension_semantics = [], scalar_prefetch = 0 : i64, scratch_operands = 2 : i64, tpu.core_type = #tpu.core_type<tc>} {
    %c0 = arith.constant 0 : index
    %0 = memref.load %arg0[%c0] : memref<8xi32, #tpu.memory_space<smem>>
    %1 = arith.index_cast %0 : i32 to index
    %c0_0 = arith.constant 0 : index
    %2 = vector.load %arg1[%1, %c0_0] : memref<1000x256xf32, #tpu.memory_space<vmem>>, vector<1x256xf32>
    %c0_1 = arith.constant 0 : index
    %c0_2 = arith.constant 0 : index
    %3 = vector.load %arg8[%c0_1, %c0_2] : memref<8x256xf32, #tpu.memory_space<vmem>>, vector<1x256xf32>
    tpu.vector_store %arg8[%c0_1, %c0_2], %2 {strides = array<i32>} : memref<8x256xf32, #tpu.memory_space<vmem>>, vector<1x256xf32>,
    %c1 = arith.constant 1 : index
    %4 = memref.load %arg0[%c1] : memref<8xi32, #tpu.memory_space<smem>>
    %5 = arith.index_cast %4 : i32 to index
    %c0_3 = arith.constant 0 : index
    %6 = vector.load %arg1[%5, %c0_3] : memref<1000x256xf32, #tpu.memory_space<vmem>>, vector<1x256xf32>
    %c1_4 = arith.constant 1 : index
    %c0_5 = arith.constant 0 : index
    %7 = vector.load %arg8[%c1_4, %c0_5] : memref<8x256xf32, #tpu.memory_space<vmem>>, vector<1x256xf32>
    tpu.vector_store %arg8[%c1_4, %c0_5], %6 {strides = array<i32>} : memref<8x256xf32, #tpu.memory_space<vmem>>, vector<1x256xf32>,
    %c2 = arith.constant 2 : index
    %8 = memref.load %arg0[%c2] : memref<8xi32, #tpu.memory_space<smem>>
    %9 = arith.index_cast %8 : i32 to index
    %c0_6 = arith.constant 0 : index
    %10 = vector.load %arg1[%9, %c0_6] : memref<1000x256xf32, #tpu.memory_space<vmem>>, vector<1x256xf32>
    %c2_7 = arith.constant 2 : index
    %c0_8 = arith.constant 0 : index
    %11 = vector.load %arg8[%c2_7, %c0_8] : memref<8x256xf32, #tpu.memory_space<vmem>>, vector<1x256xf32>
    tpu.vector_store %arg8[%c2_7, %c0_8], %10 {strides = array<i32>} : memref<8x256xf32, #tpu.memory_space<vmem>>, vector<1x256xf32>,
    %c3 = arith.constant 3 : index
    %12 = memref.load %arg0[%c3] : memref<8xi32, #tpu.memory_space<smem>>
    %13 = arith.index_cast %12 : i32 to index
    %c0_9 = arith.constant 0 : index
    %14 = vector.load %arg1[%13, %c0_9] : memref<1000x256xf32, #tpu.memory_space<vmem>>, vector<1x256xf32>
    %c3_10 = arith.constant 3 : index
    %c0_11 = arith.constant 0 : index
    %15 = vector.load %arg8[%c3_10, %c0_11] : memref<8x256xf32, #tpu.memory_space<vmem>>, vector<1x256xf32>
    tpu.vector_store %arg8[%c3_10, %c0_11], %14 {strides = array<i32>} : memref<8x256xf32, #tpu.memory_space<vmem>>, vector<1x256xf32>,
    %c4 = arith.constant 4 : index
    %16 = memref.load %arg0[%c4] : memref<8xi32, #tpu.memory_space<smem>>
    %17 = arith.index_cast %16 : i32 to index
    %c0_12 = arith.constant 0 : index
    %18 = vector.load %arg1[%17, %c0_12] : memref<1000x256xf32, #tpu.memory_space<vmem>>, vector<1x256xf32>
    %c4_13 = arith.constant 4 : index
    %c0_14 = arith.constant 0 : index
    %19 = vector.load %arg8[%c4_13, %c0_14] : memref<8x256xf32, #tpu.memory_space<vmem>>, vector<1x256xf32>
    tpu.vector_store %arg8[%c4_13, %c0_14], %18 {strides = array<i32>} : memref<8x256xf32, #tpu.memory_space<vmem>>, vector<1x256xf32>,
    %c5 = arith.constant 5 : index
    %20 = memref.load %arg0[%c5] : memref<8xi32, #tpu.memory_space<smem>>
    %21 = arith.index_cast %20 : i32 to index
    %c0_15 = arith.constant 0 : index
    %22 = vector.load %arg1[%21, %c0_15] : memref<1000x256xf32, #tpu.memory_space<vmem>>, vector<1x256xf32>
    %c5_16 = arith.constant 5 : index
    %c0_17 = arith.constant 0 : index
    %23 = vector.load %arg8[%c5_16, %c0_17] : memref<8x256xf32, #tpu.memory_space<vmem>>, vector<1x256xf32>
    tpu.vector_store %arg8[%c5_16, %c0_17], %22 {strides = array<i32>} : memref<8x256xf32, #tpu.memory_space<vmem>>, vector<1x256xf32>,
    %c6 = arith.constant 6 : index
    %24 = memref.load %arg0[%c6] : memref<8xi32, #tpu.memory_space<smem>>
    %25 = arith.index_cast %24 : i32 to index
    %c0_18 = arith.constant 0 : index
    %26 = vector.load %arg1[%25, %c0_18] : memref<1000x256xf32, #tpu.memory_space<vmem>>, vector<1x256xf32>
    %c6_19 = arith.constant 6 : index
    %c0_20 = arith.constant 0 : index
    %27 = vector.load %arg8[%c6_19, %c0_20] : memref<8x256xf32, #tpu.memory_space<vmem>>, vector<1x256xf32>
    tpu.vector_store %arg8[%c6_19, %c0_20], %26 {strides = array<i32>} : memref<8x256xf32, #tpu.memory_space<vmem>>, vector<1x256xf32>,
    %c7 = arith.constant 7 : index
    %28 = memref.load %arg0[%c7] : memref<8xi32, #tpu.memory_space<smem>>
    %29 = arith.index_cast %28 : i32 to index
    %c0_21 = arith.constant 0 : index
    %30 = vector.load %arg1[%29, %c0_21] : memref<1000x256xf32, #tpu.memory_space<vmem>>, vector<1x256xf32>
    %c7_22 = arith.constant 7 : index
    %c0_23 = arith.constant 0 : index
    %31 = vector.load %arg8[%c7_22, %c0_23] : memref<8x256xf32, #tpu.memory_space<vmem>>, vector<1x256xf32>
    tpu.vector_store %arg8[%c7_22, %c0_23], %30 {strides = array<i32>} : memref<8x256xf32, #tpu.memory_space<vmem>>, vector<1x256xf32>,
    %c0_24 = arith.constant 0 : index
    %c0_25 = arith.constant 0 : index
    %32 = vector.load %arg8[%c0_24, %c0_25] : memref<8x256xf32, #tpu.memory_space<vmem>>, vector<8x256xf32>
    %33 = arith.truncf %32 : vector<8x256xf32> to vector<8x256xbf16>
    %c0_26 = arith.constant 0 : index
    %c0_27 = arith.constant 0 : index
    %34 = vector.load %arg3[%c0_26, %c0_27] : memref<256x768xbf16, #tpu.memory_space<vmem>>, vector<256x768xbf16>
    %cst = arith.constant dense<0.000000e+00> : vector<8x768xf32>
    %35 = tpu.matmul %33, %34, %cst {dimension_numbers = #tpu.dot_dimension_numbers<[1], [0], [0], [1], [0, 0, 1, 1], [], []>} : vector<8x256xbf16>, vector<256x768xbf16>, vector<8x768xf32> -> vector<8x768xf32>
    %c0_28 = arith.constant 0 : index
    %c0_29 = arith.constant 0 : index
    %36 = vector.load %arg5[%c0_28, %c0_29] : memref<1x768xf32, #tpu.memory_space<vmem>>, vector<1x768xf32>
    %37 = vector.broadcast %36 : vector<1x768xf32> to vector<8x768xf32>
    %38 = arith.addf %35, %37 : vector<8x768xf32>
    %c0_30 = arith.constant 0 : index
    %c0_31 = arith.constant 0 : index
    %39 = vector.load %arg9[%c0_30, %c0_31] : memref<8x768xf32, #tpu.memory_space<vmem>>, vector<8x768xf32>
    tpu.vector_store %arg9[%c0_30, %c0_31], %38 {strides = array<i32>} : memref<8x768xf32, #tpu.memory_space<vmem>>, vector<8x768xf32>,
    %c0_32 = arith.constant 0 : index
    %c0_33 = arith.constant 0 : index
    %40 = vector.load %arg6[%c0_32, %c0_33] : memref<1x256xf32, #tpu.memory_space<vmem>>, vector<1x256xf32>
    %c0_34 = arith.constant 0 : index
    %c0_35 = arith.constant 0 : index
    %41 = vector.load %arg2[%c0_34, %c0_35] : memref<1x256xf32, #tpu.memory_space<vmem>>, vector<1x256xf32>
    %c0_i32 = arith.constant 0 : i32
    %42 = arith.index_cast %c0_i32 : i32 to index
    %c0_36 = arith.constant 0 : index
    %43 = vector.load %arg9[%42, %c0_36] : memref<8x768xf32, #tpu.memory_space<vmem>>, vector<1x768xf32>
    %44 = arith.truncf %41 : vector<1x256xf32> to vector<1x256xbf16>
    %c0_37 = arith.constant 0 : index
    %c0_38 = arith.constant 0 : index
    %45 = vector.load %arg4[%c0_37, %c0_38] : memref<256x768xbf16, #tpu.memory_space<vmem>>, vector<256x768xbf16>
    %cst_39 = arith.constant dense<0.000000e+00> : vector<1x768xf32>
    %46 = tpu.matmul %44, %45, %cst_39 {dimension_numbers = #tpu.dot_dimension_numbers<[1], [0], [0], [1], [0, 0, 1, 1], [], []>} : vector<1x256xbf16>, vector<256x768xbf16>, vector<1x768xf32> -> vector<1x768xf32>
    %47 = vector.extract_strided_slice %43 {offsets = [0, 0], sizes = [1, 256], strides = [1, 1]} : vector<1x768xf32> to vector<1x256xf32>
    %48 = vector.extract_strided_slice %43 {offsets = [0, 256], sizes = [1, 256], strides = [1, 1]} : vector<1x768xf32> to vector<1x256xf32>
    %49 = vector.extract_strided_slice %43 {offsets = [0, 512], sizes = [1, 256], strides = [1, 1]} : vector<1x768xf32> to vector<1x256xf32>
    %50 = vector.extract_strided_slice %46 {offsets = [0, 0], sizes = [1, 256], strides = [1, 1]} : vector<1x768xf32> to vector<1x256xf32>
    %51 = vector.extract_strided_slice %46 {offsets = [0, 256], sizes = [1, 256], strides = [1, 1]} : vector<1x768xf32> to vector<1x256xf32>
    %52 = vector.extract_strided_slice %46 {offsets = [0, 512], sizes = [1, 256], strides = [1, 1]} : vector<1x768xf32> to vector<1x256xf32>
    %53 = arith.addf %47, %50 : vector<1x256xf32>
    %54 = arith.negf %53 : vector<1x256xf32>
    %55 = math.exp %54 : vector<1x256xf32>
    %cst_40 = arith.constant 1.000000e+00 : f32
    %56 = vector.broadcast %cst_40 : f32 to vector<1x256xf32>
    %57 = arith.addf %56, %55 : vector<1x256xf32>
    %58 = arith.divf %56, %57 : vector<1x256xf32>
    %59 = arith.addf %48, %51 : vector<1x256xf32>
    %60 = arith.negf %59 : vector<1x256xf32>
    %61 = math.exp %60 : vector<1x256xf32>
    %cst_41 = arith.constant 1.000000e+00 : f32
    %62 = vector.broadcast %cst_41 : f32 to vector<1x256xf32>
    %63 = arith.addf %62, %61 : vector<1x256xf32>
    %64 = arith.divf %62, %63 : vector<1x256xf32>
    %65 = arith.addf %52, %40 : vector<1x256xf32>
    %66 = arith.mulf %58, %65 : vector<1x256xf32>
    %67 = arith.addf %49, %66 : vector<1x256xf32>
    %68 = math.tanh %67 : vector<1x256xf32>
    %cst_42 = arith.constant 1.000000e+00 : f32
    %69 = vector.broadcast %cst_42 : f32 to vector<1x256xf32>
    %70 = arith.subf %69, %64 : vector<1x256xf32>
    %71 = arith.mulf %70, %68 : vector<1x256xf32>
    %72 = arith.mulf %64, %41 : vector<1x256xf32>
    %73 = arith.addf %71, %72 : vector<1x256xf32>
    %74 = arith.index_cast %c0_i32 : i32 to index
    %c0_43 = arith.constant 0 : index
    %75 = vector.load %arg7[%74, %c0_43] : memref<8x256xf32, #tpu.memory_space<vmem>>, vector<1x256xf32>
    tpu.vector_store %arg7[%74, %c0_43], %73 {strides = array<i32>} : memref<8x256xf32, #tpu.memory_space<vmem>>, vector<1x256xf32>,
    %c1_i32 = arith.constant 1 : i32
    %76 = arith.index_cast %c1_i32 : i32 to index
    %c0_44 = arith.constant 0 : index
    %77 = vector.load %arg9[%76, %c0_44] : memref<8x768xf32, #tpu.memory_space<vmem>>, vector<1x768xf32>
    %78 = arith.truncf %73 : vector<1x256xf32> to vector<1x256xbf16>
    %c0_45 = arith.constant 0 : index
    %c0_46 = arith.constant 0 : index
    %79 = vector.load %arg4[%c0_45, %c0_46] : memref<256x768xbf16, #tpu.memory_space<vmem>>, vector<256x768xbf16>
    %cst_47 = arith.constant dense<0.000000e+00> : vector<1x768xf32>
    %80 = tpu.matmul %78, %79, %cst_47 {dimension_numbers = #tpu.dot_dimension_numbers<[1], [0], [0], [1], [0, 0, 1, 1], [], []>} : vector<1x256xbf16>, vector<256x768xbf16>, vector<1x768xf32> -> vector<1x768xf32>
    %81 = vector.extract_strided_slice %77 {offsets = [0, 0], sizes = [1, 256], strides = [1, 1]} : vector<1x768xf32> to vector<1x256xf32>
    %82 = vector.extract_strided_slice %77 {offsets = [0, 256], sizes = [1, 256], strides = [1, 1]} : vector<1x768xf32> to vector<1x256xf32>
    %83 = vector.extract_strided_slice %77 {offsets = [0, 512], sizes = [1, 256], strides = [1, 1]} : vector<1x768xf32> to vector<1x256xf32>
    %84 = vector.extract_strided_slice %80 {offsets = [0, 0], sizes = [1, 256], strides = [1, 1]} : vector<1x768xf32> to vector<1x256xf32>
    %85 = vector.extract_strided_slice %80 {offsets = [0, 256], sizes = [1, 256], strides = [1, 1]} : vector<1x768xf32> to vector<1x256xf32>
    %86 = vector.extract_strided_slice %80 {offsets = [0, 512], sizes = [1, 256], strides = [1, 1]} : vector<1x768xf32> to vector<1x256xf32>
    %87 = arith.addf %81, %84 : vector<1x256xf32>
    %88 = arith.negf %87 : vector<1x256xf32>
    %89 = math.exp %88 : vector<1x256xf32>
    %cst_48 = arith.constant 1.000000e+00 : f32
    %90 = vector.broadcast %cst_48 : f32 to vector<1x256xf32>
    %91 = arith.addf %90, %89 : vector<1x256xf32>
    %92 = arith.divf %90, %91 : vector<1x256xf32>
    %93 = arith.addf %82, %85 : vector<1x256xf32>
    %94 = arith.negf %93 : vector<1x256xf32>
    %95 = math.exp %94 : vector<1x256xf32>
    %cst_49 = arith.constant 1.000000e+00 : f32
    %96 = vector.broadcast %cst_49 : f32 to vector<1x256xf32>
    %97 = arith.addf %96, %95 : vector<1x256xf32>
    %98 = arith.divf %96, %97 : vector<1x256xf32>
    %99 = arith.addf %86, %40 : vector<1x256xf32>
    %100 = arith.mulf %92, %99 : vector<1x256xf32>
    %101 = arith.addf %83, %100 : vector<1x256xf32>
    %102 = math.tanh %101 : vector<1x256xf32>
    %cst_50 = arith.constant 1.000000e+00 : f32
    %103 = vector.broadcast %cst_50 : f32 to vector<1x256xf32>
    %104 = arith.subf %103, %98 : vector<1x256xf32>
    %105 = arith.mulf %104, %102 : vector<1x256xf32>
    %106 = arith.mulf %98, %73 : vector<1x256xf32>
    %107 = arith.addf %105, %106 : vector<1x256xf32>
    %108 = arith.index_cast %c1_i32 : i32 to index
    %c0_51 = arith.constant 0 : index
    %109 = vector.load %arg7[%108, %c0_51] : memref<8x256xf32, #tpu.memory_space<vmem>>, vector<1x256xf32>
    tpu.vector_store %arg7[%108, %c0_51], %107 {strides = array<i32>} : memref<8x256xf32, #tpu.memory_space<vmem>>, vector<1x256xf32>,
    %c2_i32 = arith.constant 2 : i32
    %110 = arith.index_cast %c2_i32 : i32 to index
    %c0_52 = arith.constant 0 : index
    %111 = vector.load %arg9[%110, %c0_52] : memref<8x768xf32, #tpu.memory_space<vmem>>, vector<1x768xf32>
    %112 = arith.truncf %107 : vector<1x256xf32> to vector<1x256xbf16>
    %c0_53 = arith.constant 0 : index
    %c0_54 = arith.constant 0 : index
    %113 = vector.load %arg4[%c0_53, %c0_54] : memref<256x768xbf16, #tpu.memory_space<vmem>>, vector<256x768xbf16>
    %cst_55 = arith.constant dense<0.000000e+00> : vector<1x768xf32>
    %114 = tpu.matmul %112, %113, %cst_55 {dimension_numbers = #tpu.dot_dimension_numbers<[1], [0], [0], [1], [0, 0, 1, 1], [], []>} : vector<1x256xbf16>, vector<256x768xbf16>, vector<1x768xf32> -> vector<1x768xf32>
    %115 = vector.extract_strided_slice %111 {offsets = [0, 0], sizes = [1, 256], strides = [1, 1]} : vector<1x768xf32> to vector<1x256xf32>
    %116 = vector.extract_strided_slice %111 {offsets = [0, 256], sizes = [1, 256], strides = [1, 1]} : vector<1x768xf32> to vector<1x256xf32>
    %117 = vector.extract_strided_slice %111 {offsets = [0, 512], sizes = [1, 256], strides = [1, 1]} : vector<1x768xf32> to vector<1x256xf32>
    %118 = vector.extract_strided_slice %114 {offsets = [0, 0], sizes = [1, 256], strides = [1, 1]} : vector<1x768xf32> to vector<1x256xf32>
    %119 = vector.extract_strided_slice %114 {offsets = [0, 256], sizes = [1, 256], strides = [1, 1]} : vector<1x768xf32> to vector<1x256xf32>
    %120 = vector.extract_strided_slice %114 {offsets = [0, 512], sizes = [1, 256], strides = [1, 1]} : vector<1x768xf32> to vector<1x256xf32>
    %121 = arith.addf %115, %118 : vector<1x256xf32>
    %122 = arith.negf %121 : vector<1x256xf32>
    %123 = math.exp %122 : vector<1x256xf32>
    %cst_56 = arith.constant 1.000000e+00 : f32
    %124 = vector.broadcast %cst_56 : f32 to vector<1x256xf32>
    %125 = arith.addf %124, %123 : vector<1x256xf32>
    %126 = arith.divf %124, %125 : vector<1x256xf32>
    %127 = arith.addf %116, %119 : vector<1x256xf32>
    %128 = arith.negf %127 : vector<1x256xf32>
    %129 = math.exp %128 : vector<1x256xf32>
    %cst_57 = arith.constant 1.000000e+00 : f32
    %130 = vector.broadcast %cst_57 : f32 to vector<1x256xf32>
    %131 = arith.addf %130, %129 : vector<1x256xf32>
    %132 = arith.divf %130, %131 : vector<1x256xf32>
    %133 = arith.addf %120, %40 : vector<1x256xf32>
    %134 = arith.mulf %126, %133 : vector<1x256xf32>
    %135 = arith.addf %117, %134 : vector<1x256xf32>
    %136 = math.tanh %135 : vector<1x256xf32>
    %cst_58 = arith.constant 1.000000e+00 : f32
    %137 = vector.broadcast %cst_58 : f32 to vector<1x256xf32>
    %138 = arith.subf %137, %132 : vector<1x256xf32>
    %139 = arith.mulf %138, %136 : vector<1x256xf32>
    %140 = arith.mulf %132, %107 : vector<1x256xf32>
    %141 = arith.addf %139, %140 : vector<1x256xf32>
    %142 = arith.index_cast %c2_i32 : i32 to index
    %c0_59 = arith.constant 0 : index
    %143 = vector.load %arg7[%142, %c0_59] : memref<8x256xf32, #tpu.memory_space<vmem>>, vector<1x256xf32>
    tpu.vector_store %arg7[%142, %c0_59], %141 {strides = array<i32>} : memref<8x256xf32, #tpu.memory_space<vmem>>, vector<1x256xf32>,
    %c3_i32 = arith.constant 3 : i32
    %144 = arith.index_cast %c3_i32 : i32 to index
    %c0_60 = arith.constant 0 : index
    %145 = vector.load %arg9[%144, %c0_60] : memref<8x768xf32, #tpu.memory_space<vmem>>, vector<1x768xf32>
    %146 = arith.truncf %141 : vector<1x256xf32> to vector<1x256xbf16>
    %c0_61 = arith.constant 0 : index
    %c0_62 = arith.constant 0 : index
    %147 = vector.load %arg4[%c0_61, %c0_62] : memref<256x768xbf16, #tpu.memory_space<vmem>>, vector<256x768xbf16>
    %cst_63 = arith.constant dense<0.000000e+00> : vector<1x768xf32>
    %148 = tpu.matmul %146, %147, %cst_63 {dimension_numbers = #tpu.dot_dimension_numbers<[1], [0], [0], [1], [0, 0, 1, 1], [], []>} : vector<1x256xbf16>, vector<256x768xbf16>, vector<1x768xf32> -> vector<1x768xf32>
    %149 = vector.extract_strided_slice %145 {offsets = [0, 0], sizes = [1, 256], strides = [1, 1]} : vector<1x768xf32> to vector<1x256xf32>
    %150 = vector.extract_strided_slice %145 {offsets = [0, 256], sizes = [1, 256], strides = [1, 1]} : vector<1x768xf32> to vector<1x256xf32>
    %151 = vector.extract_strided_slice %145 {offsets = [0, 512], sizes = [1, 256], strides = [1, 1]} : vector<1x768xf32> to vector<1x256xf32>
    %152 = vector.extract_strided_slice %148 {offsets = [0, 0], sizes = [1, 256], strides = [1, 1]} : vector<1x768xf32> to vector<1x256xf32>
    %153 = vector.extract_strided_slice %148 {offsets = [0, 256], sizes = [1, 256], strides = [1, 1]} : vector<1x768xf32> to vector<1x256xf32>
    %154 = vector.extract_strided_slice %148 {offsets = [0, 512], sizes = [1, 256], strides = [1, 1]} : vector<1x768xf32> to vector<1x256xf32>
    %155 = arith.addf %149, %152 : vector<1x256xf32>
    %156 = arith.negf %155 : vector<1x256xf32>
    %157 = math.exp %156 : vector<1x256xf32>
    %cst_64 = arith.constant 1.000000e+00 : f32
    %158 = vector.broadcast %cst_64 : f32 to vector<1x256xf32>
    %159 = arith.addf %158, %157 : vector<1x256xf32>
    %160 = arith.divf %158, %159 : vector<1x256xf32>
    %161 = arith.addf %150, %153 : vector<1x256xf32>
    %162 = arith.negf %161 : vector<1x256xf32>
    %163 = math.exp %162 : vector<1x256xf32>
    %cst_65 = arith.constant 1.000000e+00 : f32
    %164 = vector.broadcast %cst_65 : f32 to vector<1x256xf32>
    %165 = arith.addf %164, %163 : vector<1x256xf32>
    %166 = arith.divf %164, %165 : vector<1x256xf32>
    %167 = arith.addf %154, %40 : vector<1x256xf32>
    %168 = arith.mulf %160, %167 : vector<1x256xf32>
    %169 = arith.addf %151, %168 : vector<1x256xf32>
    %170 = math.tanh %169 : vector<1x256xf32>
    %cst_66 = arith.constant 1.000000e+00 : f32
    %171 = vector.broadcast %cst_66 : f32 to vector<1x256xf32>
    %172 = arith.subf %171, %166 : vector<1x256xf32>
    %173 = arith.mulf %172, %170 : vector<1x256xf32>
    %174 = arith.mulf %166, %141 : vector<1x256xf32>
    %175 = arith.addf %173, %174 : vector<1x256xf32>
    %176 = arith.index_cast %c3_i32 : i32 to index
    %c0_67 = arith.constant 0 : index
    %177 = vector.load %arg7[%176, %c0_67] : memref<8x256xf32, #tpu.memory_space<vmem>>, vector<1x256xf32>
    tpu.vector_store %arg7[%176, %c0_67], %175 {strides = array<i32>} : memref<8x256xf32, #tpu.memory_space<vmem>>, vector<1x256xf32>,
    %c4_i32 = arith.constant 4 : i32
    %178 = arith.index_cast %c4_i32 : i32 to index
    %c0_68 = arith.constant 0 : index
    %179 = vector.load %arg9[%178, %c0_68] : memref<8x768xf32, #tpu.memory_space<vmem>>, vector<1x768xf32>
    %180 = arith.truncf %175 : vector<1x256xf32> to vector<1x256xbf16>
    %c0_69 = arith.constant 0 : index
    %c0_70 = arith.constant 0 : index
    %181 = vector.load %arg4[%c0_69, %c0_70] : memref<256x768xbf16, #tpu.memory_space<vmem>>, vector<256x768xbf16>
    %cst_71 = arith.constant dense<0.000000e+00> : vector<1x768xf32>
    %182 = tpu.matmul %180, %181, %cst_71 {dimension_numbers = #tpu.dot_dimension_numbers<[1], [0], [0], [1], [0, 0, 1, 1], [], []>} : vector<1x256xbf16>, vector<256x768xbf16>, vector<1x768xf32> -> vector<1x768xf32>
    %183 = vector.extract_strided_slice %179 {offsets = [0, 0], sizes = [1, 256], strides = [1, 1]} : vector<1x768xf32> to vector<1x256xf32>
    %184 = vector.extract_strided_slice %179 {offsets = [0, 256], sizes = [1, 256], strides = [1, 1]} : vector<1x768xf32> to vector<1x256xf32>
    %185 = vector.extract_strided_slice %179 {offsets = [0, 512], sizes = [1, 256], strides = [1, 1]} : vector<1x768xf32> to vector<1x256xf32>
    %186 = vector.extract_strided_slice %182 {offsets = [0, 0], sizes = [1, 256], strides = [1, 1]} : vector<1x768xf32> to vector<1x256xf32>
    %187 = vector.extract_strided_slice %182 {offsets = [0, 256], sizes = [1, 256], strides = [1, 1]} : vector<1x768xf32> to vector<1x256xf32>
    %188 = vector.extract_strided_slice %182 {offsets = [0, 512], sizes = [1, 256], strides = [1, 1]} : vector<1x768xf32> to vector<1x256xf32>
    %189 = arith.addf %183, %186 : vector<1x256xf32>
    %190 = arith.negf %189 : vector<1x256xf32>
    %191 = math.exp %190 : vector<1x256xf32>
    %cst_72 = arith.constant 1.000000e+00 : f32
    %192 = vector.broadcast %cst_72 : f32 to vector<1x256xf32>
    %193 = arith.addf %192, %191 : vector<1x256xf32>
    %194 = arith.divf %192, %193 : vector<1x256xf32>
    %195 = arith.addf %184, %187 : vector<1x256xf32>
    %196 = arith.negf %195 : vector<1x256xf32>
    %197 = math.exp %196 : vector<1x256xf32>
    %cst_73 = arith.constant 1.000000e+00 : f32
    %198 = vector.broadcast %cst_73 : f32 to vector<1x256xf32>
    %199 = arith.addf %198, %197 : vector<1x256xf32>
    %200 = arith.divf %198, %199 : vector<1x256xf32>
    %201 = arith.addf %188, %40 : vector<1x256xf32>
    %202 = arith.mulf %194, %201 : vector<1x256xf32>
    %203 = arith.addf %185, %202 : vector<1x256xf32>
    %204 = math.tanh %203 : vector<1x256xf32>
    %cst_74 = arith.constant 1.000000e+00 : f32
    %205 = vector.broadcast %cst_74 : f32 to vector<1x256xf32>
    %206 = arith.subf %205, %200 : vector<1x256xf32>
    %207 = arith.mulf %206, %204 : vector<1x256xf32>
    %208 = arith.mulf %200, %175 : vector<1x256xf32>
    %209 = arith.addf %207, %208 : vector<1x256xf32>
    %210 = arith.index_cast %c4_i32 : i32 to index
    %c0_75 = arith.constant 0 : index
    %211 = vector.load %arg7[%210, %c0_75] : memref<8x256xf32, #tpu.memory_space<vmem>>, vector<1x256xf32>
    tpu.vector_store %arg7[%210, %c0_75], %209 {strides = array<i32>} : memref<8x256xf32, #tpu.memory_space<vmem>>, vector<1x256xf32>,
    %c5_i32 = arith.constant 5 : i32
    %212 = arith.index_cast %c5_i32 : i32 to index
    %c0_76 = arith.constant 0 : index
    %213 = vector.load %arg9[%212, %c0_76] : memref<8x768xf32, #tpu.memory_space<vmem>>, vector<1x768xf32>
    %214 = arith.truncf %209 : vector<1x256xf32> to vector<1x256xbf16>
    %c0_77 = arith.constant 0 : index
    %c0_78 = arith.constant 0 : index
    %215 = vector.load %arg4[%c0_77, %c0_78] : memref<256x768xbf16, #tpu.memory_space<vmem>>, vector<256x768xbf16>
    %cst_79 = arith.constant dense<0.000000e+00> : vector<1x768xf32>
    %216 = tpu.matmul %214, %215, %cst_79 {dimension_numbers = #tpu.dot_dimension_numbers<[1], [0], [0], [1], [0, 0, 1, 1], [], []>} : vector<1x256xbf16>, vector<256x768xbf16>, vector<1x768xf32> -> vector<1x768xf32>
    %217 = vector.extract_strided_slice %213 {offsets = [0, 0], sizes = [1, 256], strides = [1, 1]} : vector<1x768xf32> to vector<1x256xf32>
    %218 = vector.extract_strided_slice %213 {offsets = [0, 256], sizes = [1, 256], strides = [1, 1]} : vector<1x768xf32> to vector<1x256xf32>
    %219 = vector.extract_strided_slice %213 {offsets = [0, 512], sizes = [1, 256], strides = [1, 1]} : vector<1x768xf32> to vector<1x256xf32>
    %220 = vector.extract_strided_slice %216 {offsets = [0, 0], sizes = [1, 256], strides = [1, 1]} : vector<1x768xf32> to vector<1x256xf32>
    %221 = vector.extract_strided_slice %216 {offsets = [0, 256], sizes = [1, 256], strides = [1, 1]} : vector<1x768xf32> to vector<1x256xf32>
    %222 = vector.extract_strided_slice %216 {offsets = [0, 512], sizes = [1, 256], strides = [1, 1]} : vector<1x768xf32> to vector<1x256xf32>
    %223 = arith.addf %217, %220 : vector<1x256xf32>
    %224 = arith.negf %223 : vector<1x256xf32>
    %225 = math.exp %224 : vector<1x256xf32>
    %cst_80 = arith.constant 1.000000e+00 : f32
    %226 = vector.broadcast %cst_80 : f32 to vector<1x256xf32>
    %227 = arith.addf %226, %225 : vector<1x256xf32>
    %228 = arith.divf %226, %227 : vector<1x256xf32>
    %229 = arith.addf %218, %221 : vector<1x256xf32>
    %230 = arith.negf %229 : vector<1x256xf32>
    %231 = math.exp %230 : vector<1x256xf32>
    %cst_81 = arith.constant 1.000000e+00 : f32
    %232 = vector.broadcast %cst_81 : f32 to vector<1x256xf32>
    %233 = arith.addf %232, %231 : vector<1x256xf32>
    %234 = arith.divf %232, %233 : vector<1x256xf32>
    %235 = arith.addf %222, %40 : vector<1x256xf32>
    %236 = arith.mulf %228, %235 : vector<1x256xf32>
    %237 = arith.addf %219, %236 : vector<1x256xf32>
    %238 = math.tanh %237 : vector<1x256xf32>
    %cst_82 = arith.constant 1.000000e+00 : f32
    %239 = vector.broadcast %cst_82 : f32 to vector<1x256xf32>
    %240 = arith.subf %239, %234 : vector<1x256xf32>
    %241 = arith.mulf %240, %238 : vector<1x256xf32>
    %242 = arith.mulf %234, %209 : vector<1x256xf32>
    %243 = arith.addf %241, %242 : vector<1x256xf32>
    %244 = arith.index_cast %c5_i32 : i32 to index
    %c0_83 = arith.constant 0 : index
    %245 = vector.load %arg7[%244, %c0_83] : memref<8x256xf32, #tpu.memory_space<vmem>>, vector<1x256xf32>
    tpu.vector_store %arg7[%244, %c0_83], %243 {strides = array<i32>} : memref<8x256xf32, #tpu.memory_space<vmem>>, vector<1x256xf32>,
    %c6_i32 = arith.constant 6 : i32
    %246 = arith.index_cast %c6_i32 : i32 to index
    %c0_84 = arith.constant 0 : index
    %247 = vector.load %arg9[%246, %c0_84] : memref<8x768xf32, #tpu.memory_space<vmem>>, vector<1x768xf32>
    %248 = arith.truncf %243 : vector<1x256xf32> to vector<1x256xbf16>
    %c0_85 = arith.constant 0 : index
    %c0_86 = arith.constant 0 : index
    %249 = vector.load %arg4[%c0_85, %c0_86] : memref<256x768xbf16, #tpu.memory_space<vmem>>, vector<256x768xbf16>
    %cst_87 = arith.constant dense<0.000000e+00> : vector<1x768xf32>
    %250 = tpu.matmul %248, %249, %cst_87 {dimension_numbers = #tpu.dot_dimension_numbers<[1], [0], [0], [1], [0, 0, 1, 1], [], []>} : vector<1x256xbf16>, vector<256x768xbf16>, vector<1x768xf32> -> vector<1x768xf32>
    %251 = vector.extract_strided_slice %247 {offsets = [0, 0], sizes = [1, 256], strides = [1, 1]} : vector<1x768xf32> to vector<1x256xf32>
    %252 = vector.extract_strided_slice %247 {offsets = [0, 256], sizes = [1, 256], strides = [1, 1]} : vector<1x768xf32> to vector<1x256xf32>
    %253 = vector.extract_strided_slice %247 {offsets = [0, 512], sizes = [1, 256], strides = [1, 1]} : vector<1x768xf32> to vector<1x256xf32>
    %254 = vector.extract_strided_slice %250 {offsets = [0, 0], sizes = [1, 256], strides = [1, 1]} : vector<1x768xf32> to vector<1x256xf32>
    %255 = vector.extract_strided_slice %250 {offsets = [0, 256], sizes = [1, 256], strides = [1, 1]} : vector<1x768xf32> to vector<1x256xf32>
    %256 = vector.extract_strided_slice %250 {offsets = [0, 512], sizes = [1, 256], strides = [1, 1]} : vector<1x768xf32> to vector<1x256xf32>
    %257 = arith.addf %251, %254 : vector<1x256xf32>
    %258 = arith.negf %257 : vector<1x256xf32>
    %259 = math.exp %258 : vector<1x256xf32>
    %cst_88 = arith.constant 1.000000e+00 : f32
    %260 = vector.broadcast %cst_88 : f32 to vector<1x256xf32>
    %261 = arith.addf %260, %259 : vector<1x256xf32>
    %262 = arith.divf %260, %261 : vector<1x256xf32>
    %263 = arith.addf %252, %255 : vector<1x256xf32>
    %264 = arith.negf %263 : vector<1x256xf32>
    %265 = math.exp %264 : vector<1x256xf32>
    %cst_89 = arith.constant 1.000000e+00 : f32
    %266 = vector.broadcast %cst_89 : f32 to vector<1x256xf32>
    %267 = arith.addf %266, %265 : vector<1x256xf32>
    %268 = arith.divf %266, %267 : vector<1x256xf32>
    %269 = arith.addf %256, %40 : vector<1x256xf32>
    %270 = arith.mulf %262, %269 : vector<1x256xf32>
    %271 = arith.addf %253, %270 : vector<1x256xf32>
    %272 = math.tanh %271 : vector<1x256xf32>
    %cst_90 = arith.constant 1.000000e+00 : f32
    %273 = vector.broadcast %cst_90 : f32 to vector<1x256xf32>
    %274 = arith.subf %273, %268 : vector<1x256xf32>
    %275 = arith.mulf %274, %272 : vector<1x256xf32>
    %276 = arith.mulf %268, %243 : vector<1x256xf32>
    %277 = arith.addf %275, %276 : vector<1x256xf32>
    %278 = arith.index_cast %c6_i32 : i32 to index
    %c0_91 = arith.constant 0 : index
    %279 = vector.load %arg7[%278, %c0_91] : memref<8x256xf32, #tpu.memory_space<vmem>>, vector<1x256xf32>
    tpu.vector_store %arg7[%278, %c0_91], %277 {strides = array<i32>} : memref<8x256xf32, #tpu.memory_space<vmem>>, vector<1x256xf32>,
    %c7_i32 = arith.constant 7 : i32
    %280 = arith.index_cast %c7_i32 : i32 to index
    %c0_92 = arith.constant 0 : index
    %281 = vector.load %arg9[%280, %c0_92] : memref<8x768xf32, #tpu.memory_space<vmem>>, vector<1x768xf32>
    %282 = arith.truncf %277 : vector<1x256xf32> to vector<1x256xbf16>
    %c0_93 = arith.constant 0 : index
    %c0_94 = arith.constant 0 : index
    %283 = vector.load %arg4[%c0_93, %c0_94] : memref<256x768xbf16, #tpu.memory_space<vmem>>, vector<256x768xbf16>
    %cst_95 = arith.constant dense<0.000000e+00> : vector<1x768xf32>
    %284 = tpu.matmul %282, %283, %cst_95 {dimension_numbers = #tpu.dot_dimension_numbers<[1], [0], [0], [1], [0, 0, 1, 1], [], []>} : vector<1x256xbf16>, vector<256x768xbf16>, vector<1x768xf32> -> vector<1x768xf32>
    %285 = vector.extract_strided_slice %281 {offsets = [0, 0], sizes = [1, 256], strides = [1, 1]} : vector<1x768xf32> to vector<1x256xf32>
    %286 = vector.extract_strided_slice %281 {offsets = [0, 256], sizes = [1, 256], strides = [1, 1]} : vector<1x768xf32> to vector<1x256xf32>
    %287 = vector.extract_strided_slice %281 {offsets = [0, 512], sizes = [1, 256], strides = [1, 1]} : vector<1x768xf32> to vector<1x256xf32>
    %288 = vector.extract_strided_slice %284 {offsets = [0, 0], sizes = [1, 256], strides = [1, 1]} : vector<1x768xf32> to vector<1x256xf32>
    %289 = vector.extract_strided_slice %284 {offsets = [0, 256], sizes = [1, 256], strides = [1, 1]} : vector<1x768xf32> to vector<1x256xf32>
    %290 = vector.extract_strided_slice %284 {offsets = [0, 512], sizes = [1, 256], strides = [1, 1]} : vector<1x768xf32> to vector<1x256xf32>
    %291 = arith.addf %285, %288 : vector<1x256xf32>
    %292 = arith.negf %291 : vector<1x256xf32>
    %293 = math.exp %292 : vector<1x256xf32>
    %cst_96 = arith.constant 1.000000e+00 : f32
    %294 = vector.broadcast %cst_96 : f32 to vector<1x256xf32>
    %295 = arith.addf %294, %293 : vector<1x256xf32>
    %296 = arith.divf %294, %295 : vector<1x256xf32>
    %297 = arith.addf %286, %289 : vector<1x256xf32>
    %298 = arith.negf %297 : vector<1x256xf32>
    %299 = math.exp %298 : vector<1x256xf32>
    %cst_97 = arith.constant 1.000000e+00 : f32
    %300 = vector.broadcast %cst_97 : f32 to vector<1x256xf32>
    %301 = arith.addf %300, %299 : vector<1x256xf32>
    %302 = arith.divf %300, %301 : vector<1x256xf32>
    %303 = arith.addf %290, %40 : vector<1x256xf32>
    %304 = arith.mulf %296, %303 : vector<1x256xf32>
    %305 = arith.addf %287, %304 : vector<1x256xf32>
    %306 = math.tanh %305 : vector<1x256xf32>
    %cst_98 = arith.constant 1.000000e+00 : f32
    %307 = vector.broadcast %cst_98 : f32 to vector<1x256xf32>
    %308 = arith.subf %307, %302 : vector<1x256xf32>
    %309 = arith.mulf %308, %306 : vector<1x256xf32>
    %310 = arith.mulf %302, %277 : vector<1x256xf32>
    %311 = arith.addf %309, %310 : vector<1x256xf32>
    %312 = arith.index_cast %c7_i32 : i32 to index
    %c0_99 = arith.constant 0 : index
    %313 = vector.load %arg7[%312, %c0_99] : memref<8x256xf32, #tpu.memory_space<vmem>>, vector<1x256xf32>
    tpu.vector_store %arg7[%312, %c0_99], %311 {strides = array<i32>} : memref<8x256xf32, #tpu.memory_space<vmem>>, vector<1x256xf32>,
    %c8_i32 = arith.constant 8 : i32
    return
  }
}

</mosaic_0001>

<bundles_post_ra>
// kernel: tpu_custom_call.1
= control target key start
LH: loop header
LB: loop body
LE: loop exit
PB: predicated region body
PF: predicated region fallthrough
CT: control target
= control target key end

     0   :  { %12 = vsyncpa [#allocation7], 0  ;;  %s11026_s0 = inlined_call_operand.hbm [shape: s32[8], index: 0, kind: input, shape index: {}]   ;;  %s11027_s1 = inlined_call_operand.hbm [shape: f32[1000,256], index: 1, kind: input, shape index: {}]   ;;  %s11028_s2 = inlined_call_operand.vmem [shape: f32[1,256], index: 2, kind: input, shape index: {}]   ;;  %s11029_s3 = inlined_call_operand.hbm [shape: bf16[256,768], index: 3, kind: input, shape index: {}]   ;;  %s11030_s4 = inlined_call_operand.hbm [shape: bf16[256,768], index: 4, kind: input, shape index: {}]   ;;  %s11031_s5 = inlined_call_operand.vmem [shape: f32[1,768], index: 5, kind: input, shape index: {}]   ;;  %s11032_s6 = inlined_call_operand.vmem [shape: f32[1,256], index: 6, kind: input, shape index: {}]   ;;  %s11033_s7 = inlined_call_operand.hbm [shape: f32[8,256], index: 7, kind: output, shape index: {}]  }
   0x1   :  { %13 = vsyncpa [#allocation5], 0 }
   0x2   :  { %14 = vsyncpa [#allocation10], 0 }
   0x3   :  { %15 = vsyncpa [#allocation6], 0  ;;  %s9257_s24 = smov [#allocation9]   ;;  %s9151_s28 = scalar_lea.hbm %s11029_s3, 12288 }
   0x4   :  { %s43_s25 = sshll.u32 %s9257_s24, 4  ;;  %p9152_p0 = scmp.ne.s32.totalorder %s11029_s3, %s9151_s28  ;;  %s44_s25 = int_to_ptr.vmem [resolvable:$true] %s43_s25 }
   0x5   :  { %p9155_p1 = scmp.lt.u32.totalorder %s9151_s28, %s11029_s3 }
   0x7   :  { %p9157_p2 = pnand %p9155_p1, %p9152_p0 }
   0x9   :  { %9160 = shalt.err (!%p9157_p2)
}
   0xa   :  { %s9161_s10 = scalar_lea.vmem %s44_s25, 12288  ;;  %p9166_p4 = scmp.lt.s32.totalorder %s44_s25, %s44_s25 }
   0xb   :  { %p9162_p3 = scmp.ne.s32.totalorder %s44_s25, %s9161_s10  ;;  %p9167_p5 = scmp.lt.s32.totalorder %s9161_s10, %s9161_s10 }
   0xd   :  { %p9168_p6 = por %p9167_p5, %p9166_p4 }
   0xf   :  { %p9169_p7 = pnand %p9168_p6, %p9162_p3 }
  0x11   :  { %9172 = shalt.err (!%p9169_p7)
}
  0x12   :  { %s9258_s11 = smov 384   ;;  %s9259_s12 = smov 24  }
  0x13   :  { %49 = dma.hbm_to_vmem [thread:$0]  %s11029_s3, 12288, %s44_s25, [#allocation10], %s9258_s11, %s9258_s11, %s9259_s12  }
  0x14   :  { %s9173_s17 = scalar_lea.hbm %s11026_s0, 16 }
  0x15   :  { %p9174_p8 = scmp.ne.s32.totalorder %s11026_s0, %s9173_s17  ;;  %p9177_p9 = scmp.lt.u32.totalorder %s9173_s17, %s11026_s0 }
  0x17   :  { %p9179_p10 = pnand %p9177_p9, %p9174_p8 }
  0x19   :  { %9182 = shalt.err (!%p9179_p10)
}
  0x1a   :  { %s9260_s22 = smov [#allocation4]   ;;  %s9261_s3 = smov [#allocation8]  }
  0x1b   :  { %23 = dma.hbm_to_smem %s11026_s0, 16, %s9260_s22, [#allocation7]  }
  0x1c   :  { %s29_s25 = sshll.u32 %s9261_s3, 4  ;;  %s9183_s28 = scalar_lea.hbm %s11027_s1, 32000  ;;  %s30_s25 = int_to_ptr.vmem [resolvable:$true] %s29_s25 }
  0x1d   :  { %p9184_p11 = scmp.ne.s32.totalorder %s11027_s1, %s9183_s28  ;;  %p9187_p12 = scmp.lt.u32.totalorder %s9183_s28, %s11027_s1 }
  0x1f   :  { %p9189_p13 = pnand %p9187_p12, %p9184_p11 }
  0x21   :  { %9192 = shalt.err (!%p9189_p13)
}
  0x22   :  { %s9193_s10 = scalar_lea.vmem %s30_s25, 32000  ;;  %p9198_p1 = scmp.lt.s32.totalorder %s30_s25, %s30_s25 }
  0x23   :  { %p9194_p0 = scmp.ne.s32.totalorder %s30_s25, %s9193_s10  ;;  %p9199_p2 = scmp.lt.s32.totalorder %s9193_s10, %s9193_s10 }
  0x25   :  { %p9200_p3 = por %p9199_p2, %p9198_p1 }
  0x27   :  { %p9201_p4 = pnand %p9200_p3, %p9194_p0 }
  0x29   :  { %9204 = shalt.err (!%p9201_p4)
}
  0x2a   :  { %s9262_s0 = smov 256   ;;  %s9263_s13 = smov 16  }
  0x2b   :  { %35 = dma.hbm_to_vmem [thread:$0]  %s11027_s1, 32000, %s30_s25, [#allocation5], %s9262_s0, %s9262_s0, %s9263_s13  }
  0x2c   :  { %s9264_s16 = smov [#allocation11]   ;;  %s9205_s20 = scalar_lea.hbm %s11030_s4, 12288 }
  0x2d   :  { %s55_s17 = sshll.u32 %s9264_s16, 4  ;;  %p9206_p5 = scmp.ne.s32.totalorder %s11030_s4, %s9205_s20  ;;  %s56_s17 = int_to_ptr.vmem [resolvable:$true] %s55_s17 }
  0x2e   :  { %p9209_p6 = scmp.lt.u32.totalorder %s9205_s20, %s11030_s4 }
  0x30   :  { %p9211_p7 = pnand %p9209_p6, %p9206_p5 }
  0x32   :  { %9214 = shalt.err (!%p9211_p7)
}
  0x33   :  { %s9215_s3 = scalar_lea.vmem %s56_s17, 12288  ;;  %p9220_p9 = scmp.lt.s32.totalorder %s56_s17, %s56_s17 }
  0x34   :  { %p9216_p8 = scmp.ne.s32.totalorder %s56_s17, %s9215_s3  ;;  %p9221_p10 = scmp.lt.s32.totalorder %s9215_s3, %s9215_s3 }
  0x36   :  { %p9222_p11 = por %p9221_p10, %p9220_p9 }
  0x38   :  { %p9223_p12 = pnand %p9222_p11, %p9216_p8 }
  0x3a   :  { %9226 = shalt.err (!%p9223_p12)
}
  0x3b   :  { %61 = dma.hbm_to_vmem [thread:$0]  %s11030_s4, 12288, %s56_s17, [#allocation10], %s9258_s11, %s9258_s11, %s9259_s12  }
  0x3c   :  { %9249 = dma.done.wait [#allocation7], 16  }
  0x3d   :  { %9250 = vsyncadd [#allocation7], 4294967280 }
  0x3e   :  { %9251 = dma.done.wait [#allocation5], 32000  }
  0x3f   :  { %9252 = vsyncadd [#allocation5], 4294935296 }
  0x40   :  { %9253 = dma.done.wait [#allocation10], 24576  }
  0x41   :  { %9254 = vsyncadd [#allocation10], 4294942720 }
  0x42   :  { %78 = sfence }
  0x43   :  { %v8308_v0 = vld [vmem:[#allocation9 + $0x4] ss:$24 sps:$4 sm:$0xff]   ;;  %v8312_v2 = vld [vmem:[#allocation9] ss:$24 sps:$4 sm:$0xff]   ;;  %v8314_v4 = vld [vmem:[#allocation9 + $0x34] ss:$24 sps:$4 sm:$0xff]   ;;  %v89_v40 = vlaneseq }
  0x44   :  { %v8310_v1 = vld [vmem:[#allocation9 + $0xc] ss:$24 sps:$4 sm:$0xff]   ;;  %798 = vmatprep.subr.bf16.mxu0 %v8308_v0  ;;  %v8313_v3 = vld [vmem:[#allocation9 + $0x8] ss:$24 sps:$4 sm:$0xff]   ;;  %v8316_v5 = vld [vmem:[#allocation9 + $0x3c] ss:$24 sps:$4 sm:$0xff]  }
  0x45   :  { %839 = vmatprep.subr.bf16.mxu1 %v8310_v1  ;;  %799 = vmatpush1.bf16.msra.mxu0 %v8312_v2  ;;  %v8318_v6 = vld [vmem:[#allocation9 + $0x30] ss:$24 sps:$4 sm:$0xff]   ;;  %v8320_v8 = vld [vmem:[#allocation9 + $0x64] ss:$24 sps:$4 sm:$0xff]   ;;  %v8324_v10 = vld [vmem:[#allocation9 + $0x60] ss:$24 sps:$4 sm:$0xff]  }
  0x46   :  { %840 = vmatpush1.bf16.msra.mxu1 %v8313_v3  ;;  %800 = vmatprep.subr.bf16.mxu0 %v8314_v4  ;;  %v8319_v7 = vld [vmem:[#allocation9 + $0x38] ss:$24 sps:$4 sm:$0xff]   ;;  %v8322_v9 = vld [vmem:[#allocation9 + $0x6c] ss:$24 sps:$4 sm:$0xff]   ;;  %v8325_v11 = vld [vmem:[#allocation9 + $0x68] ss:$24 sps:$4 sm:$0xff]  }
  0x47   :  { %841 = vmatprep.subr.bf16.mxu1 %v8316_v5  ;;  %v8326_v12 = vld [vmem:[#allocation9 + $0x94] ss:$24 sps:$4 sm:$0xff]   ;;  %s9361_s4 = sld [smem:[#allocation4]]  ;;  %s9363_s11 = sld [smem:[#allocation4 + $0x1]]  ;;  %v8330_v14 = vld [vmem:[#allocation9 + $0x90] ss:$24 sps:$4 sm:$0xff]  }
  0x48   :  { %v8328_v13 = vld [vmem:[#allocation9 + $0x9c] ss:$24 sps:$4 sm:$0xff]   ;;  %v8331_v15 = vld [vmem:[#allocation9 + $0x98] ss:$24 sps:$4 sm:$0xff]   ;;  %v8334_v17 = vld [vmem:[#allocation9 + $0xcc] ss:$24 sps:$4 sm:$0xff]  }
  0x49   :  { %801 = vmatpush1.bf16.msra.mxu0 %v8318_v6  ;;  %v8332_v16 = vld [vmem:[#allocation9 + $0xc4] ss:$24 sps:$4 sm:$0xff]   ;;  %s9365_s12 = sld [smem:[#allocation4 + $0x2]]  ;;  %v8336_v18 = vld [vmem:[#allocation9 + $0xc0] ss:$24 sps:$4 sm:$0xff]   ;;  %s9369_s28 = sld [smem:[#allocation4 + $0x3]] }
  0x4a   :  { %842 = vmatpush1.bf16.msra.mxu1 %v8319_v7  ;;  %802 = vmatprep.subr.bf16.mxu0 %v8320_v8  ;;  %v8337_v19 = vld [vmem:[#allocation9 + $0xc8] ss:$24 sps:$4 sm:$0xff]   ;;  %v8338_v20 = vld [vmem:[#allocation9 + $0xf4] ss:$24 sps:$4 sm:$0xff]   ;;  %v8343_v23 = vld [vmem:[#allocation9 + $0xf8] ss:$24 sps:$4 sm:$0xff]  }
  0x4b   :  { %843 = vmatprep.subr.bf16.mxu1 %v8322_v9  ;;  %v8340_v21 = vld [vmem:[#allocation9 + $0xfc] ss:$24 sps:$4 sm:$0xff]   ;;  %v8342_v22 = vld [vmem:[#allocation9 + $0xf0] ss:$24 sps:$4 sm:$0xff]   ;;  %v8346_v25 = vld [vmem:[#allocation9 + $0x12c] ss:$24 sps:$4 sm:$0xff]  }
  0x4c   :  { %v8344_v24 = vld [vmem:[#allocation9 + $0x124] ss:$24 sps:$4 sm:$0xff]   ;;  %s9374_s0 = sld [smem:[#allocation4 + $0x4]]  ;;  %v8348_v26 = vld [vmem:[#allocation9 + $0x120] ss:$24 sps:$4 sm:$0xff]   ;;  %s9376_s13 = sld [smem:[#allocation4 + $0x5]] }
  0x4d   :  { %803 = vmatpush1.bf16.msra.mxu0 %v8324_v10  ;;  %s80_s26 = sshra.s32 %s9361_s4, 3  ;;  %s96_s27 = sshra.s32 %s9363_s11, 3  ;;  %v8349_v27 = vld [vmem:[#allocation9 + $0x128] ss:$24 sps:$4 sm:$0xff]   ;;  %v8350_v28 = vld [vmem:[#allocation9 + $0x154] ss:$24 sps:$4 sm:$0xff]  }
  0x4e   :  { %844 = vmatpush1.bf16.msra.mxu1 %v8325_v11  ;;  %804 = vmatprep.subr.bf16.mxu0 %v8326_v12  ;;  %s83_s29 = sand.u32 7, %s9361_s4  ;;  %s8290_s30 = sshll.u32 %s80_s26, 4  ;;  %v8352_v29 = vld [vmem:[#allocation9 + $0x15c] ss:$24 sps:$4 sm:$0xff]   ;;  %v8354_v30 = vld [vmem:[#allocation9 + $0x150] ss:$24 sps:$4 sm:$0xff]  }
  0x4f   :  { %845 = vmatprep.subr.bf16.mxu1 %v8328_v13  ;;  %s99_s8 = sand.u32 7, %s9363_s11  ;;  %s8291_s9 = sshll.u32 %s96_s27, 4  ;;  %v8355_v31 = vld [vmem:[#allocation9 + $0x158] ss:$24 sps:$4 sm:$0xff]   ;;  %v8356_v32 = vld [vmem:[#allocation9 + $0x184] ss:$24 sps:$4 sm:$0xff]  }
  0x50   :  { %s109_s10 = sshra.s32 %s9365_s12, 3  ;;  %s9378_s14 = sadd.s32 %s8290_s30, %s83_s29  ;;  %v8358_v33 = vld [vmem:[#allocation9 + $0x18c] ss:$24 sps:$4 sm:$0xff]   ;;  %v8360_v34 = vld [vmem:[#allocation9 + $0x180] ss:$24 sps:$4 sm:$0xff]   ;;  %vm9406_vm0 = vcmp.lt.s32.totalorder %v89_v40, 256 }
  0x51   :  { %805 = vmatpush1.bf16.msra.mxu0 %v8330_v14  ;;  %s9380_s15 = sadd.s32 %s8291_s9, %s99_s8  ;;  %s9382_s16 = sld [smem:[#allocation4 + $0x6]]  ;;  %v8361_v35 = vld [vmem:[#allocation9 + $0x188] ss:$24 sps:$4 sm:$0xff]   ;;  %v8362_v36 = vld [vmem:[#allocation9 + $0x1b4] ss:$24 sps:$4 sm:$0xff]  }
  0x52   :  { %846 = vmatpush1.bf16.msra.mxu1 %v8331_v15  ;;  %806 = vmatprep.subr.bf16.mxu0 %v8332_v16  ;;  %s112_s17 = sand.u32 7, %s9365_s12  ;;  %s8292_s18 = sshll.u32 %s109_s10, 4  ;;  %v8364_v37 = vld [vmem:[#allocation9 + $0x1bc] ss:$24 sps:$4 sm:$0xff]   ;;  %v8366_v38 = vld [vmem:[#allocation9 + $0x1b0] ss:$24 sps:$4 sm:$0xff]  }
  0x53   :  { %847 = vmatprep.subr.bf16.mxu1 %v8334_v17  ;;  %s9385_s19 = sld [smem:[#allocation4 + $0x7]]  ;;  %s122_s20 = sshra.s32 %s9369_s28, 3  ;;  %v8367_v39 = vld [vmem:[#allocation9 + $0x1b8] ss:$24 sps:$4 sm:$0xff]   ;;  %v8368_v41 = vld [vmem:[#allocation9 + $0x1e4] ss:$24 sps:$4 sm:$0xff]  }
  0x54   :  { %s9388_s21 = sadd.s32 %s8292_s18, %s112_s17  ;;  %s135_s22 = sshra.s32 %s9374_s0, 3  ;;  %v8370_v42 = vld [vmem:[#allocation9 + $0x1ec] ss:$24 sps:$4 sm:$0xff]   ;;  %v8372_v43 = vld [vmem:[#allocation9 + $0x1e0] ss:$24 sps:$4 sm:$0xff]  }
  0x55   :  { %807 = vmatpush1.bf16.msra.mxu0 %v8336_v18  ;;  %s125_s23 = sand.u32 7, %s9369_s28  ;;  %s148_s24 = sshra.s32 %s9376_s13, 3  ;;  %v8373_v44 = vld [vmem:[#allocation9 + $0x1e8] ss:$24 sps:$4 sm:$0xff]   ;;  %v8374_v46 = vld [vmem:[#allocation9 + $0x214] ss:$24 sps:$4 sm:$0xff]  }
  0x56   :  { %848 = vmatpush1.bf16.msra.mxu1 %v8337_v19  ;;  %808 = vmatprep.subr.bf16.mxu0 %v8338_v20  ;;  %s8293_s3 = sshll.u32 %s122_s20, 4  ;;  %s138_s1 = sand.u32 7, %s9374_s0  ;;  %v8376_v47 = vld [vmem:[#allocation9 + $0x21c] ss:$24 sps:$4 sm:$0xff]   ;;  %v8378_v48 = vld [vmem:[#allocation9 + $0x210] ss:$24 sps:$4 sm:$0xff]  }
  0x57   :  { %849 = vmatprep.subr.bf16.mxu1 %v8340_v21  ;;  %s8294_s25 = sshll.u32 %s135_s22, 4  ;;  %s161_s4 = sshra.s32 %s9382_s16, 3  ;;  %v8379_v49 = vld [vmem:[#allocation9 + $0x218] ss:$24 sps:$4 sm:$0xff]   ;;  %v8380_v50 = vld [vmem:[#allocation9 + $0x244] ss:$24 sps:$4 sm:$0xff]  }
  0x58   :  { %s151_s11 = sand.u32 7, %s9376_s13  ;;  %s8295_s12 = sshll.u32 %s148_s24, 4  ;;  %v8382_v51 = vld [vmem:[#allocation9 + $0x24c] ss:$24 sps:$4 sm:$0xff]   ;;  %v8384_v60 = vld [vmem:[#allocation9 + $0x240] ss:$24 sps:$4 sm:$0xff]  }
  0x59   :  { %809 = vmatpush1.bf16.msra.mxu0 %v8342_v22  ;;  %s164_s26 = sand.u32 7, %s9382_s16  ;;  %s174_s27 = sshra.s32 %s9385_s19, 3  ;;  %v8385_v61 = vld [vmem:[#allocation9 + $0x248] ss:$24 sps:$4 sm:$0xff]   ;;  %v8386_v62 = vld [vmem:[#allocation9 + $0x274] ss:$24 sps:$4 sm:$0xff]  }
  0x5a   :  { %850 = vmatpush1.bf16.msra.mxu1 %v8343_v23  ;;  %810 = vmatprep.subr.bf16.mxu0 %v8344_v24  ;;  %s8296_s28 = sshll.u32 %s161_s4, 4  ;;  %s177_s29 = sand.u32 7, %s9385_s19  ;;  %v8388_v63 = vld [vmem:[#allocation9 + $0x27c] ss:$24 sps:$4 sm:$0xff]   ;;  %v8390_v0 = vld [vmem:[#allocation9 + $0x270] ss:$24 sps:$4 sm:$0xff]  }
  0x5b   :  { %851 = vmatprep.subr.bf16.mxu1 %v8346_v25  ;;  %s9399_s30 = sadd.s32 %s8293_s3, %s125_s23  ;;  %s8297_s8 = sshll.u32 %s174_s27, 4  ;;  %v8391_v1 = vld [vmem:[#allocation9 + $0x278] ss:$24 sps:$4 sm:$0xff]   ;;  %v8392_v2 = vld [vmem:[#allocation9 + $0x2a4] ss:$24 sps:$4 sm:$0xff]  }
  0x5c   :  { %s9401_s9 = sadd.s32 %s8294_s25, %s138_s1  ;;  %s9403_s10 = sadd.s32 %s8295_s12, %s151_s11  ;;  %v8394_v3 = vld [vmem:[#allocation9 + $0x2ac] ss:$24 sps:$4 sm:$0xff]   ;;  %v8396_v6 = vld [vmem:[#allocation9 + $0x2a0] ss:$24 sps:$4 sm:$0xff]   ;;  %v8400_v9 = vld [vmem:[#allocation9 + $0x2dc] ss:$24 sps:$4 sm:$0xff]  }
  0x5d   :  { %811 = vmatpush1.bf16.msra.mxu0 %v8348_v26  ;;  %s9410_s0 = sadd.s32 %s8296_s28, %s164_s26  ;;  %s9412_s13 = sadd.s32 %s8297_s8, %s177_s29  ;;  %v8397_v7 = vld [vmem:[#allocation9 + $0x2a8] ss:$24 sps:$4 sm:$0xff]   ;;  %v8398_v8 = vld [vmem:[#allocation9 + $0x2d4] ss:$24 sps:$4 sm:$0xff]   ;;  %v8403_v11 = vld [vmem:[#allocation9 + $0x2d8] ss:$24 sps:$4 sm:$0xff]  }
  0x5e   :  { %852 = vmatpush1.bf16.msra.mxu1 %v8349_v27  ;;  %812 = vmatprep.subr.bf16.mxu0 %v8350_v28  ;;  %s87_s16 = scalar_lea.vmem [#allocation8], %s9378_s14  ;;  %s103_s17 = scalar_lea.vmem [#allocation8], %s9380_s15  ;;  %v8402_v10 = vld [vmem:[#allocation9 + $0x2d0] ss:$24 sps:$4 sm:$0xff]   ;;  %v8406_v13 = vld [vmem:[#allocation9 + $0x14] ss:$24 sps:$4 sm:$0xff]  }
  0x5f   :  { %853 = vmatprep.subr.bf16.mxu1 %v8352_v29  ;;  %v88_v52 = vld [vmem:[%s87_s16] ss:$8 sm:$0x3]  ;;  %s116_s18 = scalar_lea.vmem [#allocation8], %s9388_s21  ;;  %s129_s19 = scalar_lea.vmem [#allocation8], %s9399_s30 }
  0x60   :  { %v104_v53 = vld [vmem:[%s103_s17] ss:$8 sm:$0x3]  ;;  %93 = vst.msk [vmem:[#allocation2] ss:$8 sm:$0x3] %vm9406_vm0, %v88_v52 }
  0x61   :  { %813 = vmatpush1.bf16.msra.mxu0 %v8354_v30  ;;  %106 = vst.msk [vmem:[#allocation2 + $0x1] ss:$8 sm:$0x3] %vm9406_vm0, %v104_v53  ;;  %v117_v54 = vld [vmem:[%s116_s18] ss:$8 sm:$0x3] }
  0x62   :  { %854 = vmatpush1.bf16.msra.mxu1 %v8355_v31  ;;  %814 = vmatprep.subr.bf16.mxu0 %v8356_v32  ;;  %v130_v55 = vld [vmem:[%s129_s19] ss:$8 sm:$0x3]  ;;  %119 = vst.msk [vmem:[#allocation2 + $0x2] ss:$8 sm:$0x3] %vm9406_vm0, %v117_v54 }
  0x63   :  { %855 = vmatprep.subr.bf16.mxu1 %v8358_v33  ;;  %132 = vst.msk [vmem:[#allocation2 + $0x3] ss:$8 sm:$0x3] %vm9406_vm0, %v130_v55  ;;  %s142_s14 = scalar_lea.vmem [#allocation8], %s9401_s9  ;;  %s155_s15 = scalar_lea.vmem [#allocation8], %s9403_s10 }
  0x64   :  { %v143_v56 = vld [vmem:[%s142_s14] ss:$8 sm:$0x3]  ;;  %s168_s20 = scalar_lea.vmem [#allocation8], %s9410_s0  ;;  %s181_s21 = scalar_lea.vmem [#allocation8], %s9412_s13 }
  0x65   :  { %815 = vmatpush1.bf16.msra.mxu0 %v8360_v34  ;;  %v156_v57 = vld [vmem:[%s155_s15] ss:$8 sm:$0x3]  ;;  %145 = vst.msk [vmem:[#allocation2 + $0x4] ss:$8 sm:$0x3] %vm9406_vm0, %v143_v56 }
  0x66   :  { %856 = vmatpush1.bf16.msra.mxu1 %v8361_v35  ;;  %816 = vmatprep.subr.bf16.mxu0 %v8362_v36  ;;  %158 = vst.msk [vmem:[#allocation2 + $0x5] ss:$8 sm:$0x3] %vm9406_vm0, %v156_v57  ;;  %v169_v58 = vld [vmem:[%s168_s20] ss:$8 sm:$0x3] }
  0x67   :  { %857 = vmatprep.subr.bf16.mxu1 %v8364_v37  ;;  %v182_v59 = vld [vmem:[%s181_s21] ss:$8 sm:$0x3]  ;;  %171 = vst.msk [vmem:[#allocation2 + $0x6] ss:$8 sm:$0x3] %vm9406_vm0, %v169_v58 }
  0x68   :  { %184 = vst.msk [vmem:[#allocation2 + $0x7] ss:$8 sm:$0x3] %vm9406_vm0, %v182_v59  ;;  %v8409_v14 = vld [vmem:[#allocation11 + $0x4] ss:$24 sps:$4 sm:$0xff]   ;;  %v9443_v36 = vshrl.u32 %v89_v40, 7 }
  0x69   :  { %817 = vmatpush1.bf16.msra.mxu0 %v8366_v38  ;;  %v8404_v16 = vld [vmem:[#allocation9 + $0x10] ss:$24 sps:$4 sm:$0xff]   ;;  %v8407_v17 = vld [vmem:[#allocation11] ss:$24 sps:$4 sm:$0xff]   ;;  %v8412_v18 = vld [vmem:[#allocation9 + $0x44] ss:$24 sps:$4 sm:$0xff]  }
  0x6a   :  { %858 = vmatpush1.bf16.msra.mxu1 %v8367_v39  ;;  %818 = vmatprep.subr.bf16.mxu0 %v8368_v41  ;;  %v8415_v19 = vld [vmem:[#allocation11 + $0x34] ss:$24 sps:$4 sm:$0xff]   ;;  %v8410_v20 = vld [vmem:[#allocation9 + $0x40] ss:$24 sps:$4 sm:$0xff]   ;;  %v8413_v21 = vld [vmem:[#allocation11 + $0x30] ss:$24 sps:$4 sm:$0xff]  }
  0x6b   :  { %859 = vmatprep.subr.bf16.mxu1 %v8370_v42  ;;  %v8418_v22 = vld [vmem:[#allocation9 + $0x74] ss:$24 sps:$4 sm:$0xff]   ;;  %v8421_v23 = vld [vmem:[#allocation11 + $0x64] ss:$24 sps:$4 sm:$0xff]   ;;  %v8416_v24 = vld [vmem:[#allocation9 + $0x70] ss:$24 sps:$4 sm:$0xff]  }
  0x6c   :  { %v8419_v25 = vld [vmem:[#allocation11 + $0x60] ss:$24 sps:$4 sm:$0xff]   ;;  %v8424_v26 = vld [vmem:[#allocation9 + $0xa4] ss:$24 sps:$4 sm:$0xff]   ;;  %v8427_v27 = vld [vmem:[#allocation11 + $0x94] ss:$24 sps:$4 sm:$0xff]  }
  0x6d   :  { %819 = vmatpush1.bf16.msra.mxu0 %v8372_v43  ;;  %v8422_v28 = vld [vmem:[#allocation9 + $0xa0] ss:$24 sps:$4 sm:$0xff]   ;;  %v8425_v29 = vld [vmem:[#allocation11 + $0x90] ss:$24 sps:$4 sm:$0xff]   ;;  %v8430_v30 = vld [vmem:[#allocation9 + $0xd4] ss:$24 sps:$4 sm:$0xff]  }
  0x6e   :  { %860 = vmatpush1.bf16.msra.mxu1 %v8373_v44  ;;  %820 = vmatprep.subr.bf16.mxu0 %v8374_v46  ;;  %v8433_v31 = vld [vmem:[#allocation11 + $0xc4] ss:$24 sps:$4 sm:$0xff]   ;;  %v8428_v32 = vld [vmem:[#allocation9 + $0xd0] ss:$24 sps:$4 sm:$0xff]   ;;  %v8431_v33 = vld [vmem:[#allocation11 + $0xc0] ss:$24 sps:$4 sm:$0xff]  }
  0x6f   :  { %861 = vmatprep.subr.bf16.mxu1 %v8376_v47  ;;  %v187_v4 = vld [vmem:[#allocation2 + $0x8] sm:$0xff]  ;;  %v186_v12 = vld [vmem:[#allocation2] sm:$0xff]  ;;  %v9446_v42 = vsub.s32 1, %v9443_v36 }
  0x70   :  { %v189_v5 = vpack.c.bf16 %v187_v4, %v187_v4  ;;  %v9438_v15 = vpack.c.bf16 %v186_v12, %v186_v12  ;;  %v8436_v34 = vld [vmem:[#allocation9 + $0x104] ss:$24 sps:$4 sm:$0xff]   ;;  %v8439_v35 = vld [vmem:[#allocation11 + $0xf4] ss:$24 sps:$4 sm:$0xff]   ;;  %v8434_v37 = vld [vmem:[#allocation9 + $0x100] ss:$24 sps:$4 sm:$0xff]  }
  0x71   :  { %821 = vmatpush1.bf16.msra.mxu0 %v8378_v48  ;;  %v8437_v38 = vld [vmem:[#allocation11 + $0xf0] ss:$24 sps:$4 sm:$0xff]   ;;  %v8442_v39 = vld [vmem:[#allocation9 + $0x134] ss:$24 sps:$4 sm:$0xff]   ;;  %v8445_v41 = vld [vmem:[#allocation11 + $0x124] ss:$24 sps:$4 sm:$0xff]  }
  0x72   :  { %862 = vmatpush1.bf16.msra.mxu1 %v8379_v49  ;;  %822 = vmatprep.subr.bf16.mxu0 %v8380_v50  ;;  %v8440_v43 = vld [vmem:[#allocation9 + $0x130] ss:$24 sps:$4 sm:$0xff]   ;;  %v8443_v44 = vld [vmem:[#allocation11 + $0x120] ss:$24 sps:$4 sm:$0xff]   ;;  %v8448_v46 = vld [vmem:[#allocation9 + $0x164] ss:$24 sps:$4 sm:$0xff]  }
  0x73   :  { %863 = vmatprep.subr.bf16.mxu1 %v8382_v51  ;;  %830 = vmatprep.mubr.bf16.mxu0 %v189_v5  ;;  %v8451_v40 = vld [vmem:[#allocation11 + $0x154] ss:$24 sps:$4 sm:$0xff]   ;;  %v9451_v47 = vld [vmem:[%s11028_s2] sm:$0x3]  ;;  %v8449_v50 = vld [vmem:[#allocation11 + $0x150] ss:$24 sps:$4 sm:$0xff]  }
  0x74   :  { %871 = vmatprep.mubr.bf16.mxu1 %v189_v5  ;;  %v8446_v48 = vld [vmem:[#allocation9 + $0x160] ss:$24 sps:$4 sm:$0xff]   ;;  %v940_v49 = vrot.slane %v9451_v47, %v9446_v42  ;;  %v8454_v51 = vld [vmem:[#allocation9 + $0x194] ss:$24 sps:$4 sm:$0xff]   ;;  %v8457_v52 = vld [vmem:[#allocation11 + $0x184] ss:$24 sps:$4 sm:$0xff]  }
  0x75   :  { %823 = vmatpush1.bf16.msra.mxu0 %v8384_v60  ;;  %v8452_v54 = vld [vmem:[#allocation9 + $0x190] ss:$24 sps:$4 sm:$0xff]   ;;  %v8455_v55 = vld [vmem:[#allocation11 + $0x180] ss:$24 sps:$4 sm:$0xff]   ;;  %v8460_v56 = vld [vmem:[#allocation9 + $0x1c4] ss:$24 sps:$4 sm:$0xff]  }
  0x76   :  { %864 = vmatpush1.bf16.msra.mxu1 %v8385_v61  ;;  %824 = vmatprep.subr.bf16.mxu0 %v8386_v62  ;;  %v9455_v53 = vpack.c.bf16 %v940_v49, %v940_v49  ;;  %v8463_v57 = vld [vmem:[#allocation11 + $0x1b4] ss:$24 sps:$4 sm:$0xff]   ;;  %v8458_v58 = vld [vmem:[#allocation9 + $0x1c0] ss:$24 sps:$4 sm:$0xff]   ;;  %v8461_v59 = vld [vmem:[#allocation11 + $0x1b0] ss:$24 sps:$4 sm:$0xff]  }
  0x77   :  { %865 = vmatprep.subr.bf16.mxu1 %v8388_v63  ;;  %v8466_v60 = vld [vmem:[#allocation9 + $0x1f4] ss:$24 sps:$4 sm:$0xff]   ;;  %v8469_v61 = vld [vmem:[#allocation11 + $0x1e4] ss:$24 sps:$4 sm:$0xff]   ;;  %v8464_v62 = vld [vmem:[#allocation9 + $0x1f0] ss:$24 sps:$4 sm:$0xff]  }
  0x78   :  { %v8467_v63 = vld [vmem:[#allocation11 + $0x1e0] ss:$24 sps:$4 sm:$0xff]   ;;  %v8478_v4 = vld [vmem:[#allocation9 + $0x254] ss:$24 sps:$4 sm:$0xff]  }
  0x79   :  { %825 = vmatpush1.bf16.msra.mxu0 %v8390_v0  ;;  %v8472_v0 = vld [vmem:[#allocation9 + $0x224] ss:$24 sps:$4 sm:$0xff]   ;;  %v8490_v12 = vld [vmem:[#allocation9 + $0x2b4] ss:$24 sps:$4 sm:$0xff]   ;;  %v8533_v49 = vld [vmem:[#allocation11 + $0x100] ss:$24 sps:$4 sm:$0xff]  }
  0x7a   :  { %866 = vmatpush1.bf16.msra.mxu1 %v8391_v1  ;;  %826 = vmatprep.subr.bf16.mxu0 %v8392_v2  ;;  %v8475_v1 = vld [vmem:[#allocation11 + $0x214] ss:$24 sps:$4 sm:$0xff]   ;;  %v8470_v2 = vld [vmem:[#allocation9 + $0x220] ss:$24 sps:$4 sm:$0xff]  }
  0x7b   :  { %867 = vmatprep.subr.bf16.mxu1 %v8394_v3  ;;  %v8473_v3 = vld [vmem:[#allocation11 + $0x210] ss:$24 sps:$4 sm:$0xff]  }
  0x7d   :  { %827 = vmatpush1.bf16.msra.mxu0 %v8396_v6  ;;  %v8476_v6 = vld [vmem:[#allocation9 + $0x250] ss:$24 sps:$4 sm:$0xff]  }
  0x7e   :  { %868 = vmatpush1.bf16.msra.mxu1 %v8397_v7  ;;  %828 = vmatprep.subr.bf16.mxu0 %v8398_v8  ;;  %v8479_v7 = vld [vmem:[#allocation11 + $0x240] ss:$24 sps:$4 sm:$0xff]   ;;  %v8484_v8 = vld [vmem:[#allocation9 + $0x284] ss:$24 sps:$4 sm:$0xff]  }
  0x7f   :  { %869 = vmatprep.subr.bf16.mxu1 %v8400_v9  ;;  %v8487_v9 = vld [vmem:[#allocation11 + $0x274] ss:$24 sps:$4 sm:$0xff]  }
  0x81   :  { %829 = vmatpush1.bf16.msra.mxu0 %v8402_v10  ;;  %v8482_v10 = vld [vmem:[#allocation9 + $0x280] ss:$24 sps:$4 sm:$0xff]  }
  0x82   :  { %870 = vmatpush1.bf16.msra.mxu1 %v8403_v11  ;;  %880 = vmatprep.subr.bf16.mxu0 %v8406_v13  ;;  %v8485_v11 = vld [vmem:[#allocation11 + $0x270] ss:$24 sps:$4 sm:$0xff]   ;;  %v8493_v13 = vld [vmem:[#allocation11 + $0x2a4] ss:$24 sps:$4 sm:$0xff]  }
  0x83   :  { %1521 = vmatprep.subr.bf16.mxu1 %v8409_v14  ;;  %v8488_v14 = vld [vmem:[#allocation9 + $0x2b0] ss:$24 sps:$4 sm:$0xff]  }
  0x84   :  { %831 = vmatmul.mubr.bf16.vlgmr.msra.gmra.mrb[0].mxu0 %v9438_v15 }
  0x85   :  { %872 = vmatmul.mubr.bf16.vlgmr.msra.gmra.mrb[0].mxu1 %v9438_v15  ;;  %881 = vmatpush1.bf16.msra.mxu0 %v8404_v16  ;;  %v9459_v16 = vsub.s32 0, %v9443_v36 }
  0x86   :  { %1522 = vmatpush1.bf16.msra.mxu1 %v8407_v17  ;;  %882 = vmatprep.subr.bf16.mxu0 %v8412_v18  ;;  %v8491_v17 = vld [vmem:[#allocation11 + $0x2a0] ss:$24 sps:$4 sm:$0xff]   ;;  %v8496_v18 = vld [vmem:[#allocation9 + $0x2e4] ss:$24 sps:$4 sm:$0xff]  }
  0x87   :  { %1523 = vmatprep.subr.bf16.mxu1 %v8415_v19  ;;  %912 = vmatprep.mubr.bf16.mxu0 %v189_v5  ;;  %v8481_v5 = vld [vmem:[#allocation11 + $0x244] ss:$24 sps:$4 sm:$0xff]   ;;  %v9461_v19 = vld [vmem:[#allocation11 + $0x2d4] ss:$24 sps:$4 sm:$0xff]  }
  0x88   :  { %1553 = vmatprep.mubr.bf16.mxu1 %v9455_v53 }
  0x89   :  { %883 = vmatpush1.bf16.msra.mxu0 %v8410_v20  ;;  %v8494_v20 = vld [vmem:[#allocation9 + $0x2e0] ss:$24 sps:$4 sm:$0xff]  }
  0x8a   :  { %1524 = vmatpush1.bf16.msra.mxu1 %v8413_v21  ;;  %884 = vmatprep.subr.bf16.mxu0 %v8418_v22  ;;  %v936_v21 = vrot.slane %v9451_v47, %v9459_v16  ;;  %v9465_v22 = vld [vmem:[#allocation11 + $0x2d0] ss:$24 sps:$4 sm:$0xff]   ;;  %v8535_v47 = vld [vmem:[#allocation11 + $0x104] ss:$24 sps:$4 sm:$0xff]  }
  0x8b   :  { %1525 = vmatprep.subr.bf16.mxu1 %v8421_v23  ;;  %v9467_v23 = vld [vmem:[#allocation11 + $0xc] ss:$24 sps:$4 sm:$0xff]  }
  0x8d   :  { %885 = vmatpush1.bf16.msra.mxu0 %v8416_v24  ;;  %v9470_v24 = vld [vmem:[#allocation11 + $0x14] ss:$24 sps:$4 sm:$0xff]  }
  0x8e   :  { %1526 = vmatpush1.bf16.msra.mxu1 %v8419_v25  ;;  %886 = vmatprep.subr.bf16.mxu0 %v8424_v26  ;;  %v9472_v25 = vld [vmem:[#allocation11 + $0x8] ss:$24 sps:$4 sm:$0xff]   ;;  %v9474_v26 = vpack.c.bf16 %v936_v21, %v936_v21  ;;  %v9601_v21 = vld [vmem:[#allocation11 + $0x2ac] ss:$24 sps:$4 sm:$0xff]  }
  0x8f   :  { %1527 = vmatprep.subr.bf16.mxu1 %v8427_v27  ;;  %v8503_v27 = vld [vmem:[#allocation11 + $0x10] ss:$24 sps:$4 sm:$0xff]  }
  0x91   :  { %887 = vmatpush1.bf16.msra.mxu0 %v8422_v28  ;;  %v9477_v28 = vld [vmem:[#allocation11 + $0x3c] ss:$24 sps:$4 sm:$0xff]  }
  0x92   :  { %1528 = vmatpush1.bf16.msra.mxu1 %v8425_v29  ;;  %888 = vmatprep.subr.bf16.mxu0 %v8430_v30  ;;  %v8511_v29 = vld [vmem:[#allocation11 + $0x44] ss:$24 sps:$4 sm:$0xff]   ;;  %v9483_v30 = vld [vmem:[#allocation11 + $0x38] ss:$24 sps:$4 sm:$0xff]  }
  0x93   :  { %1529 = vmatprep.subr.bf16.mxu1 %v8433_v31  ;;  %v8509_v31 = vld [vmem:[#allocation11 + $0x40] ss:$24 sps:$4 sm:$0xff]  }
  0x95   :  { %889 = vmatpush1.bf16.msra.mxu0 %v8428_v32  ;;  %v9486_v32 = vld [vmem:[#allocation11 + $0x6c] ss:$24 sps:$4 sm:$0xff]  }
  0x96   :  { %1530 = vmatpush1.bf16.msra.mxu1 %v8431_v33  ;;  %890 = vmatprep.subr.bf16.mxu0 %v8436_v34  ;;  %v8517_v33 = vld [vmem:[#allocation11 + $0x74] ss:$24 sps:$4 sm:$0xff]   ;;  %v9489_v34 = vld [vmem:[#allocation11 + $0x68] ss:$24 sps:$4 sm:$0xff]  }
  0x97   :  { %1531 = vmatprep.subr.bf16.mxu1 %v8439_v35  ;;  %v8515_v35 = vld [vmem:[#allocation11 + $0x70] ss:$24 sps:$4 sm:$0xff]  }
  0x99   :  { %891 = vmatpush1.bf16.msra.mxu0 %v8434_v37  ;;  %v8523_v37 = vld [vmem:[#allocation11 + $0xa4] ss:$24 sps:$4 sm:$0xff]  }
  0x9a   :  { %1532 = vmatpush1.bf16.msra.mxu1 %v8437_v38  ;;  %892 = vmatprep.subr.bf16.mxu0 %v8442_v39  ;;  %v9497_v38 = vld [vmem:[#allocation11 + $0x98] ss:$24 sps:$4 sm:$0xff]  }
  0x9b   :  { %1533 = vmatprep.subr.bf16.mxu1 %v8445_v41  ;;  %v8521_v39 = vld [vmem:[#allocation11 + $0xa0] ss:$24 sps:$4 sm:$0xff]   ;;  %v9499_v41 = vld [vmem:[#allocation11 + $0xcc] ss:$24 sps:$4 sm:$0xff]  }
  0x9d   :  { %893 = vmatpush1.bf16.msra.mxu0 %v8440_v43  ;;  %v8529_v43 = vld [vmem:[#allocation11 + $0xd4] ss:$24 sps:$4 sm:$0xff]  }
  0x9e   :  { %1534 = vmatpush1.bf16.msra.mxu1 %v8443_v44  ;;  %894 = vmatprep.subr.bf16.mxu0 %v8448_v46  ;;  %v9503_v44 = vld [vmem:[#allocation11 + $0xc8] ss:$24 sps:$4 sm:$0xff]  }
  0x9f   :  { %1535 = vmatprep.subr.bf16.mxu1 %v8451_v40  ;;  %v8527_v46 = vld [vmem:[#allocation11 + $0xd0] ss:$24 sps:$4 sm:$0xff]   ;;  %v9505_v40 = vld [vmem:[#allocation11 + $0xfc] ss:$24 sps:$4 sm:$0xff]  }
  0xa1   :  { %895 = vmatpush1.bf16.msra.mxu0 %v8446_v48  ;;  %v9509_v48 = vld [vmem:[#allocation11 + $0xf8] ss:$24 sps:$4 sm:$0xff]  }
  0xa2   :  { %1536 = vmatpush1.bf16.msra.mxu1 %v8449_v50  ;;  %896 = vmatprep.subr.bf16.mxu0 %v8454_v51  ;;  %v9511_v50 = vld [vmem:[#allocation11 + $0x12c] ss:$24 sps:$4 sm:$0xff]  }
  0xa3   :  { %1537 = vmatprep.subr.bf16.mxu1 %v8457_v52  ;;  %v8541_v51 = vld [vmem:[#allocation11 + $0x134] ss:$24 sps:$4 sm:$0xff]   ;;  %v9515_v52 = vld [vmem:[#allocation11 + $0x128] ss:$24 sps:$4 sm:$0xff]  }
  0xa5   :  { %897 = vmatpush1.bf16.msra.mxu0 %v8452_v54  ;;  %v9519_v54 = vld [vmem:[#allocation11 + $0x15c] ss:$24 sps:$4 sm:$0xff]  }
  0xa6   :  { %1538 = vmatpush1.bf16.msra.mxu1 %v8455_v55  ;;  %898 = vmatprep.subr.bf16.mxu0 %v8460_v56  ;;  %v9521_v55 = vld [vmem:[#allocation11 + $0x164] ss:$24 sps:$4 sm:$0xff]   ;;  %v9525_v56 = vld [vmem:[#allocation11 + $0x158] ss:$24 sps:$4 sm:$0xff]  }
  0xa7   :  { %1539 = vmatprep.subr.bf16.mxu1 %v8463_v57  ;;  %v9527_v57 = vld [vmem:[#allocation11 + $0x160] ss:$24 sps:$4 sm:$0xff]  }
  0xa9   :  { %899 = vmatpush1.bf16.msra.mxu0 %v8458_v58  ;;  %v9529_v58 = vld [vmem:[#allocation11 + $0x18c] ss:$24 sps:$4 sm:$0xff]  }
  0xaa   :  { %1540 = vmatpush1.bf16.msra.mxu1 %v8461_v59  ;;  %900 = vmatprep.subr.bf16.mxu0 %v8466_v60  ;;  %v9531_v59 = vld [vmem:[#allocation11 + $0x194] ss:$24 sps:$4 sm:$0xff]   ;;  %v9537_v60 = vld [vmem:[#allocation11 + $0x188] ss:$24 sps:$4 sm:$0xff]  }
  0xab   :  { %1541 = vmatprep.subr.bf16.mxu1 %v8469_v61  ;;  %v9539_v61 = vld [vmem:[#allocation11 + $0x190] ss:$24 sps:$4 sm:$0xff]  }
  0xad   :  { %901 = vmatpush1.bf16.msra.mxu0 %v8464_v62  ;;  %v9541_v62 = vld [vmem:[#allocation11 + $0x1bc] ss:$24 sps:$4 sm:$0xff]  }
  0xae   :  { %1542 = vmatpush1.bf16.msra.mxu1 %v8467_v63  ;;  %902 = vmatprep.subr.bf16.mxu0 %v8472_v0  ;;  %v9543_v63 = vld [vmem:[#allocation11 + $0x1c4] ss:$24 sps:$4 sm:$0xff]   ;;  %v9549_v0 = vld [vmem:[#allocation11 + $0x1b8] ss:$24 sps:$4 sm:$0xff]  }
  0xaf   :  { %1543 = vmatprep.subr.bf16.mxu1 %v8475_v1  ;;  %v9551_v1 = vld [vmem:[#allocation11 + $0x1c0] ss:$24 sps:$4 sm:$0xff]  }
  0xb1   :  { %903 = vmatpush1.bf16.msra.mxu0 %v8470_v2  ;;  %v9553_v2 = vld [vmem:[#allocation11 + $0x1ec] ss:$24 sps:$4 sm:$0xff]  }
  0xb2   :  { %1544 = vmatpush1.bf16.msra.mxu1 %v8473_v3  ;;  %904 = vmatprep.subr.bf16.mxu0 %v8478_v4  ;;  %v9555_v3 = vld [vmem:[#allocation11 + $0x1f4] ss:$24 sps:$4 sm:$0xff]   ;;  %v9561_v4 = vld [vmem:[#allocation11 + $0x1e8] ss:$24 sps:$4 sm:$0xff]  }
  0xb3   :  { %1545 = vmatprep.subr.bf16.mxu1 %v8481_v5  ;;  %v9563_v5 = vld [vmem:[#allocation11 + $0x1f0] ss:$24 sps:$4 sm:$0xff]  }
  0xb5   :  { %905 = vmatpush1.bf16.msra.mxu0 %v8476_v6  ;;  %v9565_v6 = vld [vmem:[#allocation11 + $0x21c] ss:$24 sps:$4 sm:$0xff]  }
  0xb6   :  { %1546 = vmatpush1.bf16.msra.mxu1 %v8479_v7  ;;  %906 = vmatprep.subr.bf16.mxu0 %v8484_v8  ;;  %v9567_v7 = vld [vmem:[#allocation11 + $0x224] ss:$24 sps:$4 sm:$0xff]   ;;  %v9573_v8 = vld [vmem:[#allocation11 + $0x218] ss:$24 sps:$4 sm:$0xff]  }
  0xb7   :  { %1547 = vmatprep.subr.bf16.mxu1 %v8487_v9  ;;  %v9575_v9 = vld [vmem:[#allocation11 + $0x220] ss:$24 sps:$4 sm:$0xff]  }
  0xb9   :  { %907 = vmatpush1.bf16.msra.mxu0 %v8482_v10  ;;  %v9577_v10 = vld [vmem:[#allocation11 + $0x24c] ss:$24 sps:$4 sm:$0xff]  }
  0xba   :  { %1548 = vmatpush1.bf16.msra.mxu1 %v8485_v11  ;;  %908 = vmatprep.subr.bf16.mxu0 %v8490_v12  ;;  %v9579_v11 = vld [vmem:[#allocation11 + $0x254] ss:$24 sps:$4 sm:$0xff]   ;;  %v9585_v12 = vld [vmem:[#allocation11 + $0x248] ss:$24 sps:$4 sm:$0xff]  }
  0xbb   :  { %1549 = vmatprep.subr.bf16.mxu1 %v8493_v13  ;;  %v9587_v13 = vld [vmem:[#allocation11 + $0x250] ss:$24 sps:$4 sm:$0xff]  }
  0xbd   :  { %909 = vmatpush1.bf16.msra.mxu0 %v8488_v14  ;;  %v9589_v14 = vld [vmem:[#allocation11 + $0x27c] ss:$24 sps:$4 sm:$0xff]  }
  0xbe   :  { %1550 = vmatpush1.bf16.msra.mxu1 %v8491_v17  ;;  %910 = vmatprep.subr.bf16.mxu0 %v8496_v18  ;;  %v9591_v17 = vld [vmem:[#allocation11 + $0x284] ss:$24 sps:$4 sm:$0xff]   ;;  %v9597_v18 = vld [vmem:[#allocation11 + $0x278] ss:$24 sps:$4 sm:$0xff]  }
  0xbf   :  { %1551 = vmatprep.subr.bf16.mxu1 %v9461_v19 }
  0xc1   :  { %911 = vmatpush1.bf16.msra.mxu0 %v8494_v20  ;;  %v9599_v20 = vld [vmem:[#allocation11 + $0x280] ss:$24 sps:$4 sm:$0xff]  }
  0xc2   :  { %1552 = vmatpush1.bf16.msra.mxu1 %v9465_v22  ;;  %1562 = vmatprep.subr.bf16.mxu0 %v9467_v23 }
  0xc3   :  { %1603 = vmatprep.subr.bf16.mxu1 %v9470_v24 }
  0xc4   :  { %913 = vmatmul.mubr.bf16.vlgmr.msra.gmra.mrb[4].mxu0 %v9438_v15  ;;  %v9493_v15 = vld [vmem:[#allocation11 + $0x9c] ss:$24 sps:$4 sm:$0xff]  }
  0xc5   :  { %1554 = vmatmul.mubr.bf16.vlgmr.msra.gmra.mrb[4].mxu1 %v9474_v26  ;;  %1563 = vmatpush1.bf16.msra.mxu0 %v9472_v25 }
  0xc6   :  { %1604 = vmatpush1.bf16.msra.mxu1 %v8503_v27  ;;  %1564 = vmatprep.subr.bf16.mxu0 %v9477_v28  ;;  %v9603_v27 = vld [vmem:[#allocation11 + $0x2b4] ss:$24 sps:$4 sm:$0xff]  }
  0xc7   :  { %1605 = vmatprep.subr.bf16.mxu1 %v8511_v29  ;;  %1594 = vmatprep.mubr.bf16.mxu0 %v9455_v53  ;;  %v9609_v29 = vld [vmem:[#allocation11 + $0x2a8] ss:$24 sps:$4 sm:$0xff]  }
  0xc8   :  { %1635 = vmatprep.mubr.bf16.mxu1 %v9455_v53  ;;  %v9517_v53 = vld [vmem:[#allocation11 + $0x130] ss:$24 sps:$4 sm:$0xff]  }
  0xc9   :  { %1565 = vmatpush1.bf16.msra.mxu0 %v9483_v30 }
  0xca   :  { %1606 = vmatpush1.bf16.msra.mxu1 %v8509_v31  ;;  %1566 = vmatprep.subr.bf16.mxu0 %v9486_v32  ;;  %v9611_v31 = vld [vmem:[#allocation11 + $0x2b0] ss:$24 sps:$4 sm:$0xff]  }
  0xcb   :  { %1607 = vmatprep.subr.bf16.mxu1 %v8517_v33  ;;  %v9613_v33 = vld [vmem:[#allocation11 + $0x2dc] ss:$24 sps:$4 sm:$0xff]  }
  0xcd   :  { %1567 = vmatpush1.bf16.msra.mxu0 %v9489_v34 }
  0xce   :  { %1608 = vmatpush1.bf16.msra.mxu1 %v8515_v35  ;;  %1568 = vmatprep.subr.bf16.mxu0 %v9493_v15  ;;  %v9615_v35 = vld [vmem:[#allocation11 + $0x2e4] ss:$24 sps:$4 sm:$0xff]  }
  0xcf   :  { %1609 = vmatprep.subr.bf16.mxu1 %v8523_v37  ;;  %v9621_v37 = vld [vmem:[#allocation11 + $0x2d8] ss:$24 sps:$4 sm:$0xff]  }
  0xd1   :  { %1569 = vmatpush1.bf16.msra.mxu0 %v9497_v38 }
  0xd2   :  { %1610 = vmatpush1.bf16.msra.mxu1 %v8521_v39  ;;  %1570 = vmatprep.subr.bf16.mxu0 %v9499_v41  ;;  %v9623_v39 = vld [vmem:[#allocation11 + $0x2e0] ss:$24 sps:$4 sm:$0xff]  }
  0xd3   :  { %1611 = vmatprep.subr.bf16.mxu1 %v8529_v43  ;;  %v9108_v43 = vld [vmem:[#allocation11 + $0x4] ss:$24 sps:$4 sm:$0xff]  }
  0xd5   :  { %1571 = vmatpush1.bf16.msra.mxu0 %v9503_v44 }
  0xd6   :  { %1612 = vmatpush1.bf16.msra.mxu1 %v8527_v46  ;;  %1572 = vmatprep.subr.bf16.mxu0 %v9505_v40  ;;  %v9109_v46 = vld [vmem:[#allocation11] ss:$24 sps:$4 sm:$0xff]  }
  0xd7   :  { %1613 = vmatprep.subr.bf16.mxu1 %v8535_v47  ;;  %v9110_v47 = vld [vmem:[#allocation11 + $0x34] ss:$24 sps:$4 sm:$0xff]  }
  0xd9   :  { %1573 = vmatpush1.bf16.msra.mxu0 %v9509_v48 }
  0xda   :  { %1614 = vmatpush1.bf16.msra.mxu1 %v8533_v49  ;;  %1574 = vmatprep.subr.bf16.mxu0 %v9511_v50  ;;  %v9111_v49 = vld [vmem:[#allocation11 + $0x30] ss:$24 sps:$4 sm:$0xff]  }
  0xdb   :  { %1615 = vmatprep.subr.bf16.mxu1 %v8541_v51  ;;  %v9112_v51 = vld [vmem:[#allocation11 + $0x64] ss:$24 sps:$4 sm:$0xff]  }
  0xdd   :  { %1575 = vmatpush1.bf16.msra.mxu0 %v9515_v52 }
  0xde   :  { %1616 = vmatpush1.bf16.msra.mxu1 %v9517_v53  ;;  %1576 = vmatprep.subr.bf16.mxu0 %v9519_v54 }
  0xdf   :  { %1617 = vmatprep.subr.bf16.mxu1 %v9521_v55 }
  0xe1   :  { %1577 = vmatpush1.bf16.msra.mxu0 %v9525_v56 }
  0xe2   :  { %1618 = vmatpush1.bf16.msra.mxu1 %v9527_v57  ;;  %1578 = vmatprep.subr.bf16.mxu0 %v9529_v58 }
  0xe3   :  { %1619 = vmatprep.subr.bf16.mxu1 %v9531_v59 }
  0xe5   :  { %1579 = vmatpush1.bf16.msra.mxu0 %v9537_v60 }
  0xe6   :  { %1620 = vmatpush1.bf16.msra.mxu1 %v9539_v61  ;;  %1580 = vmatprep.subr.bf16.mxu0 %v9541_v62 }
  0xe7   :  { %1621 = vmatprep.subr.bf16.mxu1 %v9543_v63 }
  0xe9   :  { %1581 = vmatpush1.bf16.msra.mxu0 %v9549_v0 }
  0xea   :  { %1622 = vmatpush1.bf16.msra.mxu1 %v9551_v1  ;;  %1582 = vmatprep.subr.bf16.mxu0 %v9553_v2 }
  0xeb   :  { %1623 = vmatprep.subr.bf16.mxu1 %v9555_v3 }
  0xed   :  { %1583 = vmatpush1.bf16.msra.mxu0 %v9561_v4 }
  0xee   :  { %1624 = vmatpush1.bf16.msra.mxu1 %v9563_v5  ;;  %1584 = vmatprep.subr.bf16.mxu0 %v9565_v6 }
  0xef   :  { %1625 = vmatprep.subr.bf16.mxu1 %v9567_v7 }
  0xf1   :  { %1585 = vmatpush1.bf16.msra.mxu0 %v9573_v8 }
  0xf2   :  { %1626 = vmatpush1.bf16.msra.mxu1 %v9575_v9  ;;  %1586 = vmatprep.subr.bf16.mxu0 %v9577_v10 }
  0xf3   :  { %1627 = vmatprep.subr.bf16.mxu1 %v9579_v11 }
  0xf5   :  { %1587 = vmatpush1.bf16.msra.mxu0 %v9585_v12 }
  0xf6   :  { %1628 = vmatpush1.bf16.msra.mxu1 %v9587_v13  ;;  %1588 = vmatprep.subr.bf16.mxu0 %v9589_v14 }
  0xf7   :  { %1629 = vmatprep.subr.bf16.mxu1 %v9591_v17 }
  0xf9   :  { %1589 = vmatpush1.bf16.msra.mxu0 %v9597_v18 }
  0xfa   :  { %1630 = vmatpush1.bf16.msra.mxu1 %v9599_v20  ;;  %1590 = vmatprep.subr.bf16.mxu0 %v9601_v21 }
  0xfb   :  { %1631 = vmatprep.subr.bf16.mxu1 %v9603_v27 }
  0xfd   :  { %1591 = vmatpush1.bf16.msra.mxu0 %v9609_v29 }
  0xfe   :  { %1632 = vmatpush1.bf16.msra.mxu1 %v9611_v31  ;;  %1592 = vmatprep.subr.bf16.mxu0 %v9613_v33 }
  0xff   :  { %1633 = vmatprep.subr.bf16.mxu1 %v9615_v35 }
 0x101   :  { %1593 = vmatpush1.bf16.msra.mxu0 %v9621_v37 }
 0x102   :  { %1634 = vmatpush1.bf16.msra.mxu1 %v9623_v39  ;;  %2332 = vmatprep.subr.bf16.mxu0 %v9108_v43 }
 0x103   :  { %2373 = vmatprep.subr.bf16.mxu1 %v9467_v23  ;;  %v9113_v23 = vld [vmem:[#allocation11 + $0x60] ss:$24 sps:$4 sm:$0xff]  }
 0x104   :  { %1595 = vmatmul.mubr.bf16.vlgmr.msra.gmra.mrb[8].mxu0 %v9474_v26 }
 0x105   :  { %1636 = vmatmul.mubr.bf16.vlgmr.msra.gmra.mrb[8].mxu1 %v9474_v26  ;;  %2333 = vmatpush1.bf16.msra.mxu0 %v9109_v46  ;;  %v9114_v26 = vld [vmem:[#allocation11 + $0x94] ss:$24 sps:$4 sm:$0xff]  }
 0x106   :  { %2374 = vmatpush1.bf16.msra.mxu1 %v9472_v25  ;;  %2334 = vmatprep.subr.bf16.mxu0 %v9110_v47  ;;  %v9115_v25 = vld [vmem:[#allocation11 + $0x90] ss:$24 sps:$4 sm:$0xff]  }
 0x107   :  { %2375 = vmatprep.subr.bf16.mxu1 %v9477_v28  ;;  %v9116_v28 = vld [vmem:[#allocation11 + $0xc4] ss:$24 sps:$4 sm:$0xff]  }
 0x109   :  { %2335 = vmatpush1.bf16.msra.mxu0 %v9111_v49 }
 0x10a   :  { %2376 = vmatpush1.bf16.msra.mxu1 %v9483_v30  ;;  %2336 = vmatprep.subr.bf16.mxu0 %v9112_v51  ;;  %v9117_v30 = vld [vmem:[#allocation11 + $0xc0] ss:$24 sps:$4 sm:$0xff]  }
 0x10b   :  { %2377 = vmatprep.subr.bf16.mxu1 %v9486_v32  ;;  %v9118_v32 = vld [vmem:[#allocation11 + $0xf4] ss:$24 sps:$4 sm:$0xff]  }
 0x10d   :  { %2337 = vmatpush1.bf16.msra.mxu0 %v9113_v23 }
 0x10e   :  { %2378 = vmatpush1.bf16.msra.mxu1 %v9489_v34  ;;  %2338 = vmatprep.subr.bf16.mxu0 %v9114_v26  ;;  %v9119_v34 = vld [vmem:[#allocation11 + $0xf0] ss:$24 sps:$4 sm:$0xff]  }
 0x10f   :  { %2379 = vmatprep.subr.bf16.mxu1 %v9493_v15  ;;  %v9120_v15 = vld [vmem:[#allocation11 + $0x124] ss:$24 sps:$4 sm:$0xff]  }
 0x111   :  { %2339 = vmatpush1.bf16.msra.mxu0 %v9115_v25 }
 0x112   :  { %2380 = vmatpush1.bf16.msra.mxu1 %v9497_v38  ;;  %2340 = vmatprep.subr.bf16.mxu0 %v9116_v28  ;;  %v9121_v38 = vld [vmem:[#allocation11 + $0x120] ss:$24 sps:$4 sm:$0xff]   ;;  %v306_v28 = vsub.s32 4, %v9443_v36 }
 0x113   :  { %2381 = vmatprep.subr.bf16.mxu1 %v9499_v41  ;;  %v9122_v41 = vld [vmem:[#allocation11 + $0x154] ss:$24 sps:$4 sm:$0xff]  }
 0x115   :  { %2341 = vmatpush1.bf16.msra.mxu0 %v9117_v30  ;;  %v310_v30 = vsub.s32 5, %v9443_v36 }
 0x116   :  { %2382 = vmatpush1.bf16.msra.mxu1 %v9503_v44  ;;  %2342 = vmatprep.subr.bf16.mxu0 %v9118_v32  ;;  %v9123_v44 = vld [vmem:[#allocation11 + $0x150] ss:$24 sps:$4 sm:$0xff]  }
 0x117   :  { %2383 = vmatprep.subr.bf16.mxu1 %v9505_v40  ;;  %v9124_v40 = vld [vmem:[#allocation11 + $0x184] ss:$24 sps:$4 sm:$0xff]  }
 0x119   :  { %2343 = vmatpush1.bf16.msra.mxu0 %v9119_v34 }
 0x11a   :  { %2384 = vmatpush1.bf16.msra.mxu1 %v9509_v48  ;;  %2344 = vmatprep.subr.bf16.mxu0 %v9120_v15  ;;  %v9125_v48 = vld [vmem:[#allocation11 + $0x180] ss:$24 sps:$4 sm:$0xff]  }
 0x11b   :  { %2385 = vmatprep.subr.bf16.mxu1 %v9511_v50  ;;  %v9126_v50 = vld [vmem:[#allocation11 + $0x1b4] ss:$24 sps:$4 sm:$0xff]  }
 0x11d   :  { %2345 = vmatpush1.bf16.msra.mxu0 %v9121_v38 }
 0x11e   :  { %2386 = vmatpush1.bf16.msra.mxu1 %v9515_v52  ;;  %2346 = vmatprep.subr.bf16.mxu0 %v9122_v41  ;;  %v9127_v52 = vld [vmem:[#allocation11 + $0x1b0] ss:$24 sps:$4 sm:$0xff]  }
 0x11f   :  { %2387 = vmatprep.subr.bf16.mxu1 %v9519_v54  ;;  %v9128_v54 = vld [vmem:[#allocation11 + $0x1e4] ss:$24 sps:$4 sm:$0xff]  }
 0x121   :  { %2347 = vmatpush1.bf16.msra.mxu0 %v9123_v44 }
 0x122   :  { %2388 = vmatpush1.bf16.msra.mxu1 %v9525_v56  ;;  %2348 = vmatprep.subr.bf16.mxu0 %v9124_v40  ;;  %v9129_v56 = vld [vmem:[#allocation11 + $0x1e0] ss:$24 sps:$4 sm:$0xff]  }
 0x123   :  { %2389 = vmatprep.subr.bf16.mxu1 %v9529_v58  ;;  %v9130_v58 = vld [vmem:[#allocation11 + $0x214] ss:$24 sps:$4 sm:$0xff]  }
 0x125   :  { %2349 = vmatpush1.bf16.msra.mxu0 %v9125_v48 }
 0x126   :  { %2390 = vmatpush1.bf16.msra.mxu1 %v9537_v60  ;;  %2350 = vmatprep.subr.bf16.mxu0 %v9126_v50  ;;  %v9131_v60 = vld [vmem:[#allocation11 + $0x210] ss:$24 sps:$4 sm:$0xff]  }
 0x127   :  { %2391 = vmatprep.subr.bf16.mxu1 %v9541_v62  ;;  %v9132_v62 = vld [vmem:[#allocation11 + $0x244] ss:$24 sps:$4 sm:$0xff]  }
 0x129   :  { %2351 = vmatpush1.bf16.msra.mxu0 %v9127_v52 }
 0x12a   :  { %2392 = vmatpush1.bf16.msra.mxu1 %v9549_v0  ;;  %2352 = vmatprep.subr.bf16.mxu0 %v9128_v54  ;;  %v9133_v0 = vld [vmem:[#allocation11 + $0x240] ss:$24 sps:$4 sm:$0xff]  }
 0x12b   :  { %2393 = vmatprep.subr.bf16.mxu1 %v9553_v2  ;;  %v9134_v2 = vld [vmem:[#allocation11 + $0x274] ss:$24 sps:$4 sm:$0xff]  }
 0x12d   :  { %2353 = vmatpush1.bf16.msra.mxu0 %v9129_v56 }
 0x12e   :  { %2394 = vmatpush1.bf16.msra.mxu1 %v9561_v4  ;;  %2354 = vmatprep.subr.bf16.mxu0 %v9130_v58  ;;  %v9135_v4 = vld [vmem:[#allocation11 + $0x270] ss:$24 sps:$4 sm:$0xff]  }
 0x12f   :  { %2395 = vmatprep.subr.bf16.mxu1 %v9565_v6  ;;  %v9136_v6 = vld [vmem:[#allocation11 + $0x2a4] ss:$24 sps:$4 sm:$0xff]  }
 0x131   :  { %2355 = vmatpush1.bf16.msra.mxu0 %v9131_v60  ;;  %v9265_v60 = vmov 1966171168  }
 0x132   :  { %2396 = vmatpush1.bf16.msra.mxu1 %v9573_v8  ;;  %2356 = vmatprep.subr.bf16.mxu0 %v9132_v62  ;;  %v9137_v8 = vld [vmem:[#allocation11 + $0x2a0] ss:$24 sps:$4 sm:$0xff]   ;;  %v1648_v62 = vunpack.c.l.s4 %v9265_v60 }
 0x133   :  { %2397 = vmatprep.subr.bf16.mxu1 %v9577_v10  ;;  %v298_v10 = vsub.s32 2, %v9443_v36 }
 0x135   :  { %2357 = vmatpush1.bf16.msra.mxu0 %v9133_v0  ;;  %v1649_v0 = vunpack.c.0.s8 %v1648_v62 }
 0x136   :  { %2398 = vmatpush1.bf16.msra.mxu1 %v9585_v12  ;;  %2358 = vmatprep.subr.bf16.mxu0 %v9134_v2  ;;  %v286_v12 = vld [vmem:[%s11031_s5] sm:$0x3f] }
 0x137   :  { %2399 = vmatprep.subr.bf16.mxu1 %v9589_v14  ;;  %v302_v14 = vsub.s32 3, %v9443_v36  ;;  %v307_v32 = vrot.slane %v286_v12, %v306_v28  ;;  %v311_v34 = vrot.slane %v286_v12, %v310_v30  ;;  %v9678_v2 = vsub.s32 %v1649_v0, %v9443_v36 }
 0x139   :  { %2359 = vmatpush1.bf16.msra.mxu0 %v9135_v4 }
 0x13a   :  { %2400 = vmatpush1.bf16.msra.mxu1 %v9597_v18  ;;  %2360 = vmatprep.subr.bf16.mxu0 %v9136_v6  ;;  %v291_v18 = vrot.slane %v286_v12, %v9459_v16 }
 0x13b   :  { %2401 = vmatprep.subr.bf16.mxu1 %v9601_v21  ;;  %v299_v21 = vrot.slane %v286_v12, %v298_v10 }
 0x13d   :  { %2361 = vmatpush1.bf16.msra.mxu0 %v9137_v8 }
 0x13e   :  { %2402 = vmatpush1.bf16.msra.mxu1 %v9609_v29  ;;  %2362 = vmatprep.subr.bf16.mxu0 %v9461_v19  ;;  %v295_v19 = vrot.slane %v286_v12, %v9446_v42  ;;  %v303_v29 = vrot.slane %v286_v12, %v302_v14 }
 0x13f   :  { %2403 = vmatprep.subr.bf16.mxu1 %v9613_v33 }
 0x141   :  { %2363 = vmatpush1.bf16.msra.mxu0 %v9465_v22 }
 0x142   :  { %2404 = vmatpush1.bf16.msra.mxu1 %v9621_v37  ;;  %2414 = vmatprep.subr.bf16.mxu0 %v9470_v24 }
 0x157   :  { %v832_v33 = vpop.f32.mrb[0].mxu0 }
 0x158   :  { %v873_v22 = vpop.f32.mrb[0].mxu1  ;;  %v833_v43 = vadd.f32 %v832_v33, %v291_v18  ;;  %v834_v46 = vpop.f32.mrb[1].mxu0 }
 0x159   :  { %v874_v37 = vadd.f32 %v873_v22, %v299_v21  ;;  %v875_v24 = vpop.f32.mrb[1].mxu1  ;;  %v835_v47 = vadd.f32 %v834_v46, %v295_v19  ;;  %v836_v51 = vpop.f32.mrb[2].mxu0  ;;  %v927_v19 = vld [vmem:[%s11032_s6] sm:$0x3] }
 0x15a   :  { %v876_v49 = vadd.f32 %v875_v24, %v303_v29  ;;  %v877_v23 = vpop.f32.mrb[2].mxu1  ;;  %921 = vst [vmem:[#allocation3] sm:$0xff] %v833_v43  ;;  %v837_v26 = vpop.f32.mrb[3].mxu0  ;;  %v9686_v33 = vrot.slane %v927_v19, %v9459_v16  ;;  %v9689_v36 = vrot.slane %v927_v19, %v9446_v42  ;;  %v9140_v19 = vld [vmem:[#allocation11 + $0x44] ss:$24 sps:$4 sm:$0xff]  }
 0x15b   :  { %923 = vst [vmem:[#allocation3 + $0x10] sm:$0xff] %v874_v37  ;;  %v878_v25 = vpop.f32.mrb[3].mxu1  ;;  %922 = vst [vmem:[#allocation3 + $0x8] sm:$0xff] %v835_v47 }
 0x15c   :  { %924 = vst [vmem:[#allocation3 + $0x18] sm:$0xff] %v876_v49 }
 0x163   :  { %v929_v8 = vld [vmem:[#allocation3] ss:$8 sm:$0xf] }
 0x197   :  { %v914_v15 = vpop.f32.mrb[4].mxu0 }
 0x198   :  { %v1555_v38 = vpop.f32.mrb[4].mxu1  ;;  %v915_v41 = vadd.f32 %v914_v15, %v307_v32  ;;  %v916_v44 = vpop.f32.mrb[5].mxu0 }
 0x199   :  { %v1557_v40 = vpop.f32.mrb[5].mxu1  ;;  %v917_v48 = vadd.f32 %v916_v44, %v311_v34  ;;  %v918_v50 = vpop.f32.mrb[6].mxu0 }
 0x19a   :  { %v1646_v52 = vcombine.low %v1555_v38, %v1557_v40  ;;  %v1559_v54 = vpop.f32.mrb[6].mxu1  ;;  %925 = vst [vmem:[#allocation3 + $0x20] sm:$0xff] %v915_v41  ;;  %v919_v56 = vpop.f32.mrb[7].mxu0 }
 0x19b   :  { %v1560_v58 = vpop.f32.mrb[7].mxu1  ;;  %926 = vst [vmem:[#allocation3 + $0x28] sm:$0xff] %v917_v48 }
 0x19c   :  { %v1653_v4 = vrot.slane %v1646_v52, %v9678_v2 }
 0x19e   :  { %v1660_v12 = vrot.slane %v1653_v4, %v9678_v2  ;;  %v9138_v4 = vld [vmem:[%s11028_s2] sm:$0x3]  ;;  %s9266_s2 = smov [#allocation12]  }
 0x19f   :  { %s7352_s4 = sshll.u32 %s9266_s2, 4  ;;  %s7353_s4 = int_to_ptr.vmem [resolvable:$true] %s7352_s4 }
 0x1a0   :  { %s9227_s11 = scalar_lea.vmem %s7353_s4, 256  ;;  %p9232_p0 = scmp.lt.s32.totalorder %s7353_s4, %s7353_s4 }
 0x1a1   :  { %p9228_p13 = scmp.ne.s32.totalorder %s7353_s4, %s9227_s11  ;;  %p9233_p1 = scmp.lt.s32.totalorder %s9227_s11, %s9227_s11 }
 0x1a2   :  { %v930_v6 = vld [vmem:[#allocation3] ss:$8 sm:$0x30] }
 0x1a3   :  { %v931_v10 = vor.u32 %v930_v6, %v929_v8  ;;  %p9234_p2 = por %p9233_p1, %p9232_p0 }
 0x1a5   :  { %v1662_v14 = vadd.f32 %v1660_v12, %v931_v10  ;;  %v1670_v32 = vrot.slane %v931_v10, 2  ;;  %v1729_v50 = vrot.slane %v931_v10, 4  ;;  %p9235_p3 = pnand %p9234_p2, %p9228_p13 }
 0x1a7   :  { %v7602_v18 = vmul.f32 -1.442695, %v1662_v14 }
 0x1a9   :  { %9028 = vpow2.f32 %v7602_v18 }
 0x1b3   :  { %v9029_v21 = vpop.eup %9028 }
 0x1b4   :  { %v1666_v29 = vadd.f32 1.0, %v9029_v21  ;;  %v9139_v21 = vld [vmem:[#allocation11 + $0x10] ss:$24 sps:$4 sm:$0xff]  }
 0x1b6   :  { %9030 = vrcp.f32 %v1666_v29  ;;  %v9141_v29 = vld [vmem:[#allocation11 + $0x40] ss:$24 sps:$4 sm:$0xff]  }
 0x1c0   :  { %v9031_v44 = vpop.eup %9030 }
 0x1d7   :  { %v1596_v22 = vpop.f32.mrb[8].mxu0 }
 0x1d8   :  { %v1637_v43 = vpop.f32.mrb[8].mxu1  ;;  %v1598_v46 = vpop.f32.mrb[9].mxu0 }
 0x1d9   :  { %v1708_v37 = vadd.f32 %v9686_v33, %v1637_v43  ;;  %v1639_v24 = vpop.f32.mrb[9].mxu1  ;;  %v1674_v47 = vcombine.low %v1596_v22, %v1598_v46  ;;  %v1600_v51 = vpop.f32.mrb[10].mxu0  ;;  %v9142_v22 = vld [vmem:[#allocation11 + $0x74] ss:$24 sps:$4 sm:$0xff]   ;;  %v9143_v43 = vld [vmem:[#allocation11 + $0x70] ss:$24 sps:$4 sm:$0xff]  }
 0x1da   :  { %v1709_v49 = vadd.f32 %v9689_v36, %v1639_v24  ;;  %v1641_v23 = vpop.f32.mrb[10].mxu1  ;;  %v1601_v26 = vpop.f32.mrb[11].mxu0  ;;  %v9145_v46 = vld [vmem:[#allocation11 + $0xa0] ss:$24 sps:$4 sm:$0xff]   ;;  %v9146_v24 = vld [vmem:[#allocation11 + $0xd4] ss:$24 sps:$4 sm:$0xff]  }
 0x1db   :  { %v1642_v25 = vpop.f32.mrb[11].mxu1  ;;  %v1681_v28 = vrot.slane %v1674_v47, %v9678_v2  ;;  %v9147_v47 = vld [vmem:[#allocation11 + $0xd0] ss:$24 sps:$4 sm:$0xff]   ;;  %v9149_v51 = vld [vmem:[#allocation11 + $0x100] ss:$24 sps:$4 sm:$0xff]  }
 0x1dc   :  { %v1712_v30 = vcombine.low %v1708_v37, %v1709_v49  ;;  %v9144_v37 = vld [vmem:[#allocation11 + $0xa4] ss:$24 sps:$4 sm:$0xff]   ;;  %v9150_v23 = vld [vmem:[#allocation11 + $0x134] ss:$24 sps:$4 sm:$0xff]   ;;  %v9783_v26 = vld [vmem:[#allocation11 + $0xc8] ss:$24 sps:$4 sm:$0xff]  }
 0x1dd   :  { %v1688_v34 = vrot.slane %v1681_v28, %v9678_v2  ;;  %v9148_v49 = vld [vmem:[#allocation11 + $0x104] ss:$24 sps:$4 sm:$0xff]   ;;  %11117 = vst [vmem:[#allocation20_spill] sm:$0xff] %v9783_v26  ;;  %v9785_v25 = vld [vmem:[#allocation11 + $0xf4] ss:$24 sps:$4 sm:$0xff]  }
 0x1de   :  { %v1719_v15 = vrot.slane %v1712_v30, %v9678_v2  ;;  %v9788_v28 = vld [vmem:[#allocation11 + $0xfc] ss:$24 sps:$4 sm:$0xff]   ;;  %v9791_v30 = vld [vmem:[#allocation11 + $0xf0] ss:$24 sps:$4 sm:$0xff]  }
 0x1df   :  { %v1690_v38 = vadd.f32 %v1688_v34, %v1670_v32  ;;  %11118 = vst [vmem:[#allocation21_spill] sm:$0xff] %v9788_v28  ;;  %v9795_v32 = vld [vmem:[#allocation11 + $0xf8] ss:$24 sps:$4 sm:$0xff]   ;;  %v9797_v34 = vld [vmem:[#allocation11 + $0x124] ss:$24 sps:$4 sm:$0xff]  }
 0x1e0   :  { %v1726_v41 = vrot.slane %v1719_v15, %v9678_v2  ;;  %11119 = vst [vmem:[#allocation22_spill] sm:$0xff] %v9795_v32  ;;  %v9800_v15 = vld [vmem:[#allocation11 + $0x12c] ss:$24 sps:$4 sm:$0xff]  }
 0x1e1   :  { %v7603_v40 = vmul.f32 -1.442695, %v1690_v38  ;;  %11120 = vst [vmem:[#allocation23_spill] sm:$0xff] %v9800_v15  ;;  %v9803_v38 = vld [vmem:[#allocation11 + $0x120] ss:$24 sps:$4 sm:$0xff]  }
 0x1e2   :  { %v1728_v48 = vmul.f32 %v9031_v44, %v1726_v41  ;;  %v9807_v41 = vld [vmem:[#allocation11 + $0x128] ss:$24 sps:$4 sm:$0xff]   ;;  %v9809_v44 = vld [vmem:[#allocation11 + $0x154] ss:$24 sps:$4 sm:$0xff]  }
 0x1e3   :  { %9032 = vpow2.f32 %v7603_v40  ;;  %11121 = vst [vmem:[#allocation24_spill] sm:$0xff] %v9807_v41  ;;  %v9812_v40 = vld [vmem:[#allocation11 + $0x15c] ss:$24 sps:$4 sm:$0xff]  }
 0x1e4   :  { %v1731_v56 = vadd.f32 %v1729_v50, %v1728_v48  ;;  %11122 = vst [vmem:[#allocation25_spill] sm:$0xff] %v9812_v40  ;;  %v9815_v48 = vld [vmem:[#allocation11 + $0x150] ss:$24 sps:$4 sm:$0xff]  }
 0x1e5   :  { %v9819_v50 = vld [vmem:[#allocation11 + $0x158] ss:$24 sps:$4 sm:$0xff]  }
 0x1e6   :  { %11123 = vst [vmem:[#allocation26_spill] sm:$0xff] %v9819_v50 }
 0x1ed   :  { %v9033_v52 = vpop.eup %9032 }
 0x1ee   :  { %v1694_v54 = vadd.f32 1.0, %v9033_v52  ;;  %v9824_v52 = vld [vmem:[#allocation11 + $0x184] ss:$24 sps:$4 sm:$0xff]  }
 0x1f0   :  { %9034 = vrcp.f32 %v1694_v54  ;;  %v9826_v54 = vld [vmem:[#allocation11 + $0x180] ss:$24 sps:$4 sm:$0xff]  }
 0x1f1   :  { %9036 = vtanh.f32 %v1731_v56  ;;  %v9828_v56 = vld [vmem:[#allocation11 + $0x18c] ss:$24 sps:$4 sm:$0xff]  }
 0x1f2   :  { %11124 = vst [vmem:[#allocation27_spill] sm:$0xff] %v9828_v56 }
 0x1fa   :  { %v9035_v58 = vpop.eup %9034 }
 0x1fb   :  { %v1733_v60 = vsub.f32 1.0, %v9035_v58  ;;  %v9037_v62 = vpop.eup %9036  ;;  %v1735_v6 = vmul.f32 %v9138_v4, %v9035_v58  ;;  %v9831_v58 = vld [vmem:[#allocation11 + $0x188] ss:$24 sps:$4 sm:$0xff]   ;;  %v9843_v4 = vld [vmem:[#allocation11 + $0x1b8] ss:$24 sps:$4 sm:$0xff]  }
 0x1fc   :  { %11125 = vst [vmem:[#allocation28_spill] sm:$0xff] %v9831_v58  ;;  %11127 = vst [vmem:[#allocation30_spill] sm:$0xff] %v9843_v4 }
 0x1fd   :  { %v1734_v0 = vmul.f32 %v9037_v62, %v1733_v60  ;;  %v9836_v60 = vld [vmem:[#allocation11 + $0x1b4] ss:$24 sps:$4 sm:$0xff]   ;;  %v9838_v62 = vld [vmem:[#allocation11 + $0x1b0] ss:$24 sps:$4 sm:$0xff]  }
 0x1ff   :  { %v9700_v8 = vadd.f32 %v1735_v6, %v1734_v0  ;;  %v9840_v0 = vld [vmem:[#allocation11 + $0x1bc] ss:$24 sps:$4 sm:$0xff]  }
 0x200   :  { %11126 = vst [vmem:[#allocation29_spill] sm:$0xff] %v9840_v0  ;;  %v9848_v6 = vld [vmem:[#allocation11 + $0x1e4] ss:$24 sps:$4 sm:$0xff]  }
 0x201   :  { %v1751_v12 = vrot.slane %v9700_v8, %v9446_v42  ;;  %1737 = vst.msk [vmem:[#allocation12] ss:$8 sm:$0x3] %vm9406_vm0, %v9700_v8  ;;  %v1747_v10 = vrot.slane %v9700_v8, %v9459_v16 }
 0x203   :  { %v1755_v14 = vpack.c.bf16 %v1751_v12, %v1751_v12  ;;  %v1754_v18 = vpack.c.bf16 %v1747_v10, %v1747_v10  ;;  %v9850_v12 = vld [vmem:[#allocation11 + $0x1e0] ss:$24 sps:$4 sm:$0xff]   ;;  %v9852_v10 = vld [vmem:[#allocation11 + $0x1ec] ss:$24 sps:$4 sm:$0xff]  }
 0x204   :  { %11128 = vst [vmem:[#allocation31_spill] sm:$0xff] %v9852_v10 }
 0x205   :  { %2364 = vmatprep.mubr.bf16.mxu0 %v1755_v14  ;;  %2405 = vmatprep.mubr.bf16.mxu1 %v1755_v14 }
 0x206   :  { %2365 = vmatmul.mubr.bf16.vlgmr.msra.gmra.mrb[12].mxu0 %v1754_v18  ;;  %2406 = vmatmul.mubr.bf16.vlgmr.msra.gmra.mrb[12].mxu1 %v1754_v18 }
 0x207   :  { %2415 = vmatpush1.bf16.msra.mxu0 %v9139_v21  ;;  %2446 = vmatprep.mubr.bf16.mxu0 %v1755_v14  ;;  %v9855_v14 = vld [vmem:[#allocation11 + $0x1e8] ss:$24 sps:$4 sm:$0xff]  }
 0x208   :  { %2416 = vmatprep.subr.bf16.mxu0 %v9140_v19  ;;  %11129 = vst [vmem:[#allocation32_spill] sm:$0xff] %v9855_v14  ;;  %v9862_v21 = vld [vmem:[#allocation11 + $0x210] ss:$24 sps:$4 sm:$0xff]   ;;  %v9864_v19 = vld [vmem:[#allocation11 + $0x21c] ss:$24 sps:$4 sm:$0xff]  }
 0x209   :  { %11130 = vst [vmem:[#allocation33_spill] sm:$0xff] %v9864_v19 }
 0x20b   :  { %2417 = vmatpush1.bf16.msra.mxu0 %v9141_v29  ;;  %v9867_v29 = vld [vmem:[#allocation11 + $0x218] ss:$24 sps:$4 sm:$0xff]  }
 0x20c   :  { %2418 = vmatprep.subr.bf16.mxu0 %v9142_v22  ;;  %11131 = vst [vmem:[#allocation34_spill] sm:$0xff] %v9867_v29  ;;  %v9871_v22 = vld [vmem:[#allocation11 + $0x240] ss:$24 sps:$4 sm:$0xff]  }
 0x20f   :  { %2419 = vmatpush1.bf16.msra.mxu0 %v9143_v43  ;;  %v9873_v43 = vld [vmem:[#allocation11 + $0x244] ss:$24 sps:$4 sm:$0xff]  }
 0x210   :  { %2420 = vmatprep.subr.bf16.mxu0 %v9144_v37  ;;  %v9876_v37 = vld [vmem:[#allocation11 + $0x248] ss:$24 sps:$4 sm:$0xff]  }
 0x211   :  { %11132 = vst [vmem:[#allocation35_spill] sm:$0xff] %v9876_v37 }
 0x213   :  { %2421 = vmatpush1.bf16.msra.mxu0 %v9145_v46  ;;  %v9878_v46 = vld [vmem:[#allocation11 + $0x24c] ss:$24 sps:$4 sm:$0xff]  }
 0x214   :  { %2422 = vmatprep.subr.bf16.mxu0 %v9146_v24  ;;  %11133 = vst [vmem:[#allocation36_spill] sm:$0xff] %v9878_v46  ;;  %v9880_v24 = vld [vmem:[#allocation11 + $0x274] ss:$24 sps:$4 sm:$0xff]  }
 0x217   :  { %2423 = vmatpush1.bf16.msra.mxu0 %v9147_v47  ;;  %v9883_v47 = vld [vmem:[#allocation11 + $0x27c] ss:$24 sps:$4 sm:$0xff]  }
 0x218   :  { %2424 = vmatprep.subr.bf16.mxu0 %v9148_v49  ;;  %11134 = vst [vmem:[#allocation37_spill] sm:$0xff] %v9883_v47  ;;  %v9887_v49 = vld [vmem:[#allocation11 + $0x270] ss:$24 sps:$4 sm:$0xff]  }
 0x21b   :  { %2425 = vmatpush1.bf16.msra.mxu0 %v9149_v51  ;;  %v9891_v51 = vld [vmem:[#allocation11 + $0x278] ss:$24 sps:$4 sm:$0xff]  }
 0x21c   :  { %2426 = vmatprep.subr.bf16.mxu0 %v9150_v23  ;;  %11135 = vst [vmem:[#allocation38_spill] sm:$0xff] %v9891_v51  ;;  %v9893_v23 = vld [vmem:[#allocation11 + $0x2a4] ss:$24 sps:$4 sm:$0xff]  }
 0x21f   :  { %2427 = vmatpush1.bf16.msra.mxu0 %v9517_v53  ;;  %v9728_v53 = vld [vmem:[#allocation11] ss:$24 sps:$4 sm:$0xff]  }
 0x220   :  { %2428 = vmatprep.subr.bf16.mxu0 %v9521_v55  ;;  %v9730_v55 = vld [vmem:[#allocation11 + $0x4] ss:$24 sps:$4 sm:$0xff]  }
 0x221   :  { %3133 = vmatprep.subr.bf16.mxu1 %v9730_v55 }
 0x222   :  { %3134 = vmatpush1.bf16.msra.mxu1 %v9728_v53 }
 0x223   :  { %2429 = vmatpush1.bf16.msra.mxu0 %v9527_v57  ;;  %v9732_v57 = vld [vmem:[#allocation11 + $0x8] ss:$24 sps:$4 sm:$0xff]  }
 0x224   :  { %2430 = vmatprep.subr.bf16.mxu0 %v9531_v59  ;;  %v9734_v59 = vld [vmem:[#allocation11 + $0xc] ss:$24 sps:$4 sm:$0xff]  }
 0x227   :  { %2431 = vmatpush1.bf16.msra.mxu0 %v9539_v61  ;;  %v9736_v61 = vld [vmem:[#allocation11 + $0x34] ss:$24 sps:$4 sm:$0xff]  }
 0x228   :  { %2432 = vmatprep.subr.bf16.mxu0 %v9543_v63  ;;  %v9739_v63 = vld [vmem:[#allocation11 + $0x3c] ss:$24 sps:$4 sm:$0xff]   ;;  %3135 = vmatprep.subr.bf16.mxu1 %v9736_v61 }
 0x22b   :  { %2433 = vmatpush1.bf16.msra.mxu0 %v9551_v1  ;;  %v9743_v1 = vld [vmem:[#allocation11 + $0x30] ss:$24 sps:$4 sm:$0xff]  }
 0x22c   :  { %2434 = vmatprep.subr.bf16.mxu0 %v9555_v3  ;;  %v9747_v3 = vld [vmem:[#allocation11 + $0x38] ss:$24 sps:$4 sm:$0xff]   ;;  %3136 = vmatpush1.bf16.msra.mxu1 %v9743_v1 }
 0x22f   :  { %2435 = vmatpush1.bf16.msra.mxu0 %v9563_v5  ;;  %v9749_v5 = vld [vmem:[#allocation11 + $0x64] ss:$24 sps:$4 sm:$0xff]  }
 0x230   :  { %2436 = vmatprep.subr.bf16.mxu0 %v9567_v7  ;;  %v9752_v7 = vld [vmem:[#allocation11 + $0x6c] ss:$24 sps:$4 sm:$0xff]   ;;  %3137 = vmatprep.subr.bf16.mxu1 %v9749_v5 }
 0x233   :  { %2437 = vmatpush1.bf16.msra.mxu0 %v9575_v9  ;;  %v9755_v9 = vld [vmem:[#allocation11 + $0x60] ss:$24 sps:$4 sm:$0xff]  }
 0x234   :  { %2438 = vmatprep.subr.bf16.mxu0 %v9579_v11  ;;  %v9759_v11 = vld [vmem:[#allocation11 + $0x68] ss:$24 sps:$4 sm:$0xff]   ;;  %3138 = vmatpush1.bf16.msra.mxu1 %v9755_v9 }
 0x237   :  { %2439 = vmatpush1.bf16.msra.mxu0 %v9587_v13  ;;  %v9761_v13 = vld [vmem:[#allocation11 + $0x94] ss:$24 sps:$4 sm:$0xff]  }
 0x238   :  { %2440 = vmatprep.subr.bf16.mxu0 %v9591_v17  ;;  %v9764_v17 = vld [vmem:[#allocation11 + $0x9c] ss:$24 sps:$4 sm:$0xff]   ;;  %3139 = vmatprep.subr.bf16.mxu1 %v9761_v13 }
 0x239   :  { %11114 = vst [vmem:[#allocation17_spill] sm:$0xff] %v9764_v17 }
 0x23b   :  { %2441 = vmatpush1.bf16.msra.mxu0 %v9599_v20  ;;  %v9767_v20 = vld [vmem:[#allocation11 + $0x90] ss:$24 sps:$4 sm:$0xff]  }
 0x23c   :  { %2442 = vmatprep.subr.bf16.mxu0 %v9603_v27  ;;  %v9771_v27 = vld [vmem:[#allocation11 + $0x98] ss:$24 sps:$4 sm:$0xff]   ;;  %3140 = vmatpush1.bf16.msra.mxu1 %v9767_v20 }
 0x23d   :  { %11115 = vst [vmem:[#allocation18_spill] sm:$0xff] %v9771_v27 }
 0x23f   :  { %2443 = vmatpush1.bf16.msra.mxu0 %v9611_v31  ;;  %v9773_v31 = vld [vmem:[#allocation11 + $0xc4] ss:$24 sps:$4 sm:$0xff]  }
 0x240   :  { %2444 = vmatprep.subr.bf16.mxu0 %v9615_v35  ;;  %v9776_v35 = vld [vmem:[#allocation11 + $0xcc] ss:$24 sps:$4 sm:$0xff]   ;;  %3141 = vmatprep.subr.bf16.mxu1 %v9773_v31 }
 0x241   :  { %11116 = vst [vmem:[#allocation19_spill] sm:$0xff] %v9776_v35 }
 0x243   :  { %2445 = vmatpush1.bf16.msra.mxu0 %v9623_v39  ;;  %v9779_v39 = vld [vmem:[#allocation11 + $0xc0] ss:$24 sps:$4 sm:$0xff]  }
 0x244   :  { %3174 = vmatprep.subr.bf16.mxu0 %v9734_v59  ;;  %3142 = vmatpush1.bf16.msra.mxu1 %v9779_v39 }
 0x245   :  { %3143 = vmatprep.subr.bf16.mxu1 %v9785_v25 }
 0x246   :  { %2447 = vmatmul.mubr.bf16.vlgmr.msra.gmra.mrb[16].mxu0 %v1754_v18  ;;  %v9860_v18 = vld [vmem:[#allocation11 + $0x214] ss:$24 sps:$4 sm:$0xff]  }
 0x247   :  { %3175 = vmatpush1.bf16.msra.mxu0 %v9732_v57 }
 0x248   :  { %3176 = vmatprep.subr.bf16.mxu0 %v9739_v63  ;;  %3144 = vmatpush1.bf16.msra.mxu1 %v9791_v30 }
 0x249   :  { %3145 = vmatprep.subr.bf16.mxu1 %v9797_v34 }
 0x24b   :  { %3177 = vmatpush1.bf16.msra.mxu0 %v9747_v3 }
 0x24c   :  { %3178 = vmatprep.subr.bf16.mxu0 %v9752_v7  ;;  %3146 = vmatpush1.bf16.msra.mxu1 %v9803_v38 }
 0x24d   :  { %3147 = vmatprep.subr.bf16.mxu1 %v9809_v44 }
 0x24f   :  { %3179 = vmatpush1.bf16.msra.mxu0 %v9759_v11 }
 0x250   :  { %3180 = vmatprep.subr.bf16.mxu0 %v9764_v17  ;;  %3148 = vmatpush1.bf16.msra.mxu1 %v9815_v48 }
 0x251   :  { %3149 = vmatprep.subr.bf16.mxu1 %v9824_v52 }
 0x253   :  { %3181 = vmatpush1.bf16.msra.mxu0 %v9771_v27 }
 0x254   :  { %3182 = vmatprep.subr.bf16.mxu0 %v9776_v35  ;;  %3150 = vmatpush1.bf16.msra.mxu1 %v9826_v54 }
 0x255   :  { %3151 = vmatprep.subr.bf16.mxu1 %v9836_v60 }
 0x257   :  { %3183 = vmatpush1.bf16.msra.mxu0 %v9783_v26 }
 0x258   :  { %3184 = vmatprep.subr.bf16.mxu0 %v9788_v28  ;;  %3152 = vmatpush1.bf16.msra.mxu1 %v9838_v62  ;;  %v1740_v28 = vld [vmem:[#allocation3 + $0x1] ss:$8 sm:$0xf] }
 0x259   :  { %3153 = vmatprep.subr.bf16.mxu1 %v9848_v6 }
 0x25b   :  { %3185 = vmatpush1.bf16.msra.mxu0 %v9795_v32  ;;  %v1741_v32 = vld [vmem:[#allocation3 + $0x1] ss:$8 sm:$0x30] }
 0x25c   :  { %3186 = vmatprep.subr.bf16.mxu0 %v9800_v15  ;;  %3154 = vmatpush1.bf16.msra.mxu1 %v9850_v12  ;;  %v1742_v26 = vor.u32 %v1741_v32, %v1740_v28 }
 0x25d   :  { %3155 = vmatprep.subr.bf16.mxu1 %v9860_v18 }
 0x25f   :  { %3187 = vmatpush1.bf16.msra.mxu0 %v9807_v41 }
 0x260   :  { %3188 = vmatprep.subr.bf16.mxu0 %v9812_v40  ;;  %3156 = vmatpush1.bf16.msra.mxu1 %v9862_v21 }
 0x261   :  { %3157 = vmatprep.subr.bf16.mxu1 %v9873_v43 }
 0x263   :  { %3189 = vmatpush1.bf16.msra.mxu0 %v9819_v50 }
 0x264   :  { %3190 = vmatprep.subr.bf16.mxu0 %v9828_v56  ;;  %3158 = vmatpush1.bf16.msra.mxu1 %v9871_v22 }
 0x265   :  { %3159 = vmatprep.subr.bf16.mxu1 %v9880_v24 }
 0x267   :  { %3191 = vmatpush1.bf16.msra.mxu0 %v9831_v58 }
 0x268   :  { %3192 = vmatprep.subr.bf16.mxu0 %v9840_v0  ;;  %3160 = vmatpush1.bf16.msra.mxu1 %v9887_v49 }
 0x269   :  { %3161 = vmatprep.subr.bf16.mxu1 %v9893_v23 }
 0x26b   :  { %3193 = vmatpush1.bf16.msra.mxu0 %v9843_v4 }
 0x26c   :  { %3194 = vmatprep.subr.bf16.mxu0 %v9852_v10  ;;  %v9915_v10 = vld [vmem:[#allocation11 + $0x2d8] ss:$24 sps:$4 sm:$0xff]  }
 0x26d   :  { %11139 = vst [vmem:[#allocation42_spill] sm:$0xff] %v9915_v10 }
 0x26f   :  { %3195 = vmatpush1.bf16.msra.mxu0 %v9855_v14  ;;  %v9908_v14 = vld [vmem:[#allocation11 + $0x2dc] ss:$24 sps:$4 sm:$0xff]  }
 0x270   :  { %3196 = vmatprep.subr.bf16.mxu0 %v9864_v19  ;;  %v9899_v19 = vld [vmem:[#allocation11 + $0x2a0] ss:$24 sps:$4 sm:$0xff]   ;;  %11138 = vst [vmem:[#allocation41_spill] sm:$0xff] %v9908_v14 }
 0x271   :  { %3162 = vmatpush1.bf16.msra.mxu1 %v9899_v19 }
 0x273   :  { %3197 = vmatpush1.bf16.msra.mxu0 %v9867_v29  ;;  %v9896_v29 = vld [vmem:[#allocation11 + $0x2ac] ss:$24 sps:$4 sm:$0xff]  }
 0x274   :  { %3198 = vmatprep.subr.bf16.mxu0 %v9878_v46  ;;  %11136 = vst [vmem:[#allocation39_spill] sm:$0xff] %v9896_v29  ;;  %v9903_v46 = vld [vmem:[#allocation11 + $0x2a8] ss:$24 sps:$4 sm:$0xff]  }
 0x275   :  { %11137 = vst [vmem:[#allocation40_spill] sm:$0xff] %v9903_v46 }
 0x277   :  { %3199 = vmatpush1.bf16.msra.mxu0 %v9876_v37  ;;  %v9905_v37 = vld [vmem:[#allocation11 + $0x2d4] ss:$24 sps:$4 sm:$0xff]  }
 0x278   :  { %3200 = vmatprep.subr.bf16.mxu0 %v9883_v47  ;;  %v9911_v47 = vld [vmem:[#allocation11 + $0x2d0] ss:$24 sps:$4 sm:$0xff]   ;;  %3163 = vmatprep.subr.bf16.mxu1 %v9905_v37 }
 0x279   :  { %3164 = vmatpush1.bf16.msra.mxu1 %v9911_v47 }
 0x27b   :  { %3201 = vmatpush1.bf16.msra.mxu0 %v9891_v51  ;;  %v9920_v51 = vld [vmem:[#allocation11 + $0x14] ss:$24 sps:$4 sm:$0xff]  }
 0x27c   :  { %3202 = vmatprep.subr.bf16.mxu0 %v9896_v29  ;;  %3215 = vmatprep.subr.bf16.mxu1 %v9920_v51 }
 0x27f   :  { %3203 = vmatpush1.bf16.msra.mxu0 %v9903_v46 }
 0x280   :  { %3204 = vmatprep.subr.bf16.mxu0 %v9908_v14 }
 0x283   :  { %3205 = vmatpush1.bf16.msra.mxu0 %v9915_v10 }
 0x284   :  { %3934 = vmatprep.subr.bf16.mxu0 %v9730_v55 }
 0x2d9   :  { %v2366_v29 = vpop.f32.mrb[12].mxu0  ;;  %v2407_v4 = vpop.f32.mrb[12].mxu1 }
 0x2da   :  { %v2368_v0 = vpop.f32.mrb[13].mxu0  ;;  %v2409_v46 = vpop.f32.mrb[13].mxu1 }
 0x2db   :  { %v2457_v58 = vcombine.low %v2366_v29, %v2368_v0  ;;  %v2485_v56 = vcombine.low %v2407_v4, %v2409_v46  ;;  %v2370_v50 = vpop.f32.mrb[14].mxu0  ;;  %v2411_v40 = vpop.f32.mrb[14].mxu1  ;;  %v2481_v0 = vrot.slane %v1742_v26, 2 }
 0x2dc   :  { %v2371_v41 = vpop.f32.mrb[15].mxu0  ;;  %v2412_v14 = vpop.f32.mrb[15].mxu1 }
 0x2dd   :  { %v2464_v15 = vrot.slane %v2457_v58, %v9678_v2  ;;  %v2492_v35 = vrot.slane %v2485_v56, %v9678_v2 }
 0x2df   :  { %v2471_v10 = vrot.slane %v2464_v15, %v9678_v2  ;;  %v2499_v17 = vrot.slane %v2492_v35, %v9678_v2 }
 0x2e1   :  { %v2473_v55 = vadd.f32 %v2471_v10, %v1742_v26  ;;  %v2501_v4 = vadd.f32 %v2499_v17, %v2481_v0  ;;  %v2529_v0 = vrot.slane %v1742_v26, 4 }
 0x2e3   :  { %v7700_v27 = vmul.f32 -1.442695, %v2473_v55  ;;  %v7701_v50 = vmul.f32 -1.442695, %v2501_v4 }
 0x2e5   :  { %9038 = vpow2.f32 %v7700_v27 }
 0x2e6   :  { %9040 = vpow2.f32 %v7701_v50 }
 0x2ef   :  { %v9039_v40 = vpop.eup %9038 }
 0x2f0   :  { %v2477_v41 = vadd.f32 1.0, %v9039_v40  ;;  %v9041_v10 = vpop.eup %9040 }
 0x2f1   :  { %v2505_v46 = vadd.f32 1.0, %v9041_v10  ;;  %v9942_v10 = vld [vmem:[#allocation11 + $0x10] ss:$24 sps:$4 sm:$0xff]  }
 0x2f2   :  { %9042 = vrcp.f32 %v2477_v41 }
 0x2f3   :  { %9044 = vrcp.f32 %v2505_v46  ;;  %v9954_v46 = vld [vmem:[#allocation11 + $0x74] ss:$24 sps:$4 sm:$0xff]  }
 0x2fc   :  { %v9043_v35 = vpop.eup %9042 }
 0x2fd   :  { %v9045_v50 = vpop.eup %9044 }
 0x2fe   :  { %v2533_v40 = vsub.f32 1.0, %v9045_v50 }
 0x319   :  { %v2448_v58 = vpop.f32.mrb[16].mxu0 }
 0x31a   :  { %v2508_v14 = vadd.f32 %v2448_v58, %v9686_v33  ;;  %v2450_v15 = vpop.f32.mrb[17].mxu0 }
 0x31b   :  { %v2509_v28 = vadd.f32 %v2450_v15, %v9689_v36  ;;  %v2452_v32 = vpop.f32.mrb[18].mxu0  ;;  %v2535_v15 = vmul.f32 %v9045_v50, %v9700_v8  ;;  %v9951_v8 = vld [vmem:[#allocation11 + $0x40] ss:$24 sps:$4 sm:$0xff]  }
 0x31c   :  { %v2453_v56 = vpop.f32.mrb[19].mxu0  ;;  %v11157_v50 = vld [vmem:[#allocation34_spill] sm:$0xff] }
 0x31d   :  { %v2512_v29 = vcombine.low %v2508_v14, %v2509_v28 }
 0x31f   :  { %v2519_v27 = vrot.slane %v2512_v29, %v9678_v2  ;;  %v9946_v29 = vld [vmem:[#allocation11 + $0x44] ss:$24 sps:$4 sm:$0xff]  }
 0x321   :  { %v2526_v17 = vrot.slane %v2519_v27, %v9678_v2  ;;  %v9959_v27 = vld [vmem:[#allocation11 + $0x70] ss:$24 sps:$4 sm:$0xff]  }
 0x323   :  { %v2528_v55 = vmul.f32 %v9043_v35, %v2526_v17  ;;  %v9962_v17 = vld [vmem:[#allocation11 + $0xa4] ss:$24 sps:$4 sm:$0xff]   ;;  %v9967_v35 = vld [vmem:[#allocation11 + $0xa0] ss:$24 sps:$4 sm:$0xff]  }
 0x325   :  { %v2531_v4 = vadd.f32 %v2529_v0, %v2528_v55  ;;  %v11154_v55 = vld [vmem:[#allocation31_spill] sm:$0xff]  ;;  %v11155_v0 = vld [vmem:[#allocation32_spill] sm:$0xff] }
 0x327   :  { %9046 = vtanh.f32 %v2531_v4  ;;  %v11156_v4 = vld [vmem:[#allocation33_spill] sm:$0xff] }
 0x331   :  { %v9047_v41 = vpop.eup %9046 }
 0x332   :  { %v2534_v58 = vmul.f32 %v9047_v41, %v2533_v40  ;;  %v11158_v40 = vld [vmem:[#allocation36_spill] sm:$0xff]  ;;  %v11159_v41 = vld [vmem:[#allocation35_spill] sm:$0xff] }
 0x334   :  { %v9933_v32 = vadd.f32 %v2535_v15, %v2534_v58  ;;  %v11160_v58 = vld [vmem:[#allocation37_spill] sm:$0xff]  ;;  %v11161_v15 = vld [vmem:[#allocation38_spill] sm:$0xff] }
 0x336   :  { %v2552_v14 = vrot.slane %v9933_v32, %v9446_v42  ;;  %2538 = vst.msk [vmem:[#allocation12 + $0x1] ss:$8 sm:$0x3] %vm9406_vm0, %v9933_v32  ;;  %v2548_v26 = vrot.slane %v9933_v32, %v9459_v16 }
 0x338   :  { %v2556_v28 = vpack.c.bf16 %v2552_v14, %v2552_v14  ;;  %v9944_v56 = vpack.c.bf16 %v2548_v26, %v2548_v26  ;;  %v11162_v14 = vld [vmem:[#allocation39_spill] sm:$0xff]  ;;  %v11163_v26 = vld [vmem:[#allocation40_spill] sm:$0xff] }
 0x33a   :  { %3165 = vmatprep.mubr.bf16.mxu1 %v2556_v28  ;;  %3206 = vmatprep.mubr.bf16.mxu0 %v2556_v28 }
 0x33b   :  { %3166 = vmatmul.mubr.bf16.vlgmr.msra.gmra.mrb[16].mxu1 %v9944_v56  ;;  %3207 = vmatmul.mubr.bf16.vlgmr.msra.gmra.mrb[20].mxu0 %v9944_v56 }
 0x33c   :  { %3216 = vmatpush1.bf16.msra.mxu1 %v9942_v10  ;;  %3247 = vmatprep.mubr.bf16.mxu1 %v2556_v28  ;;  %v11164_v28 = vld [vmem:[#allocation41_spill] sm:$0xff] }
 0x33d   :  { %3217 = vmatprep.subr.bf16.mxu1 %v9946_v29  ;;  %3935 = vmatpush1.bf16.msra.mxu0 %v9728_v53  ;;  %v9970_v53 = vld [vmem:[#allocation11 + $0xd4] ss:$24 sps:$4 sm:$0xff]  }
 0x33e   :  { %3936 = vmatprep.subr.bf16.mxu0 %v9736_v61  ;;  %v9975_v61 = vld [vmem:[#allocation11 + $0xd0] ss:$24 sps:$4 sm:$0xff]  }
 0x340   :  { %3218 = vmatpush1.bf16.msra.mxu1 %v9951_v8 }
 0x341   :  { %3219 = vmatprep.subr.bf16.mxu1 %v9954_v46  ;;  %3937 = vmatpush1.bf16.msra.mxu0 %v9743_v1  ;;  %v9978_v1 = vld [vmem:[#allocation11 + $0x104] ss:$24 sps:$4 sm:$0xff]  }
 0x342   :  { %3938 = vmatprep.subr.bf16.mxu0 %v9749_v5  ;;  %v9983_v5 = vld [vmem:[#allocation11 + $0x100] ss:$24 sps:$4 sm:$0xff]  }
 0x344   :  { %3220 = vmatpush1.bf16.msra.mxu1 %v9959_v27 }
 0x345   :  { %3221 = vmatprep.subr.bf16.mxu1 %v9962_v17  ;;  %3939 = vmatpush1.bf16.msra.mxu0 %v9755_v9  ;;  %v9986_v9 = vld [vmem:[#allocation11 + $0x134] ss:$24 sps:$4 sm:$0xff]  }
 0x346   :  { %3940 = vmatprep.subr.bf16.mxu0 %v9761_v13  ;;  %v9991_v13 = vld [vmem:[#allocation11 + $0x130] ss:$24 sps:$4 sm:$0xff]  }
 0x348   :  { %3222 = vmatpush1.bf16.msra.mxu1 %v9967_v35 }
 0x349   :  { %3223 = vmatprep.subr.bf16.mxu1 %v9970_v53  ;;  %3941 = vmatpush1.bf16.msra.mxu0 %v9767_v20  ;;  %v9994_v20 = vld [vmem:[#allocation11 + $0x164] ss:$24 sps:$4 sm:$0xff]  }
 0x34a   :  { %3942 = vmatprep.subr.bf16.mxu0 %v9773_v31  ;;  %v9999_v31 = vld [vmem:[#allocation11 + $0x160] ss:$24 sps:$4 sm:$0xff]  }
 0x34c   :  { %3224 = vmatpush1.bf16.msra.mxu1 %v9975_v61 }
 0x34d   :  { %3225 = vmatprep.subr.bf16.mxu1 %v9978_v1  ;;  %3943 = vmatpush1.bf16.msra.mxu0 %v9779_v39  ;;  %v10002_v39 = vld [vmem:[#allocation11 + $0x194] ss:$24 sps:$4 sm:$0xff]  }
 0x34e   :  { %3944 = vmatprep.subr.bf16.mxu0 %v9785_v25  ;;  %v10007_v25 = vld [vmem:[#allocation11 + $0x190] ss:$24 sps:$4 sm:$0xff]  }
 0x350   :  { %3226 = vmatpush1.bf16.msra.mxu1 %v9983_v5 }
 0x351   :  { %3227 = vmatprep.subr.bf16.mxu1 %v9986_v9  ;;  %3945 = vmatpush1.bf16.msra.mxu0 %v9791_v30  ;;  %v10010_v30 = vld [vmem:[#allocation11 + $0x1c4] ss:$24 sps:$4 sm:$0xff]  }
 0x352   :  { %3946 = vmatprep.subr.bf16.mxu0 %v9797_v34  ;;  %v10015_v34 = vld [vmem:[#allocation11 + $0x1c0] ss:$24 sps:$4 sm:$0xff]  }
 0x354   :  { %3228 = vmatpush1.bf16.msra.mxu1 %v9991_v13 }
 0x355   :  { %3229 = vmatprep.subr.bf16.mxu1 %v9994_v20  ;;  %3947 = vmatpush1.bf16.msra.mxu0 %v9803_v38  ;;  %v10018_v38 = vld [vmem:[#allocation11 + $0x1f4] ss:$24 sps:$4 sm:$0xff]  }
 0x356   :  { %3948 = vmatprep.subr.bf16.mxu0 %v9809_v44  ;;  %v10023_v44 = vld [vmem:[#allocation11 + $0x1f0] ss:$24 sps:$4 sm:$0xff]  }
 0x358   :  { %3230 = vmatpush1.bf16.msra.mxu1 %v9999_v31 }
 0x359   :  { %3231 = vmatprep.subr.bf16.mxu1 %v10002_v39  ;;  %3949 = vmatpush1.bf16.msra.mxu0 %v9815_v48  ;;  %v10026_v48 = vld [vmem:[#allocation11 + $0x224] ss:$24 sps:$4 sm:$0xff]  }
 0x35a   :  { %3950 = vmatprep.subr.bf16.mxu0 %v9824_v52  ;;  %v10031_v52 = vld [vmem:[#allocation11 + $0x220] ss:$24 sps:$4 sm:$0xff]  }
 0x35c   :  { %3232 = vmatpush1.bf16.msra.mxu1 %v10007_v25 }
 0x35d   :  { %3233 = vmatprep.subr.bf16.mxu1 %v10010_v30  ;;  %3951 = vmatpush1.bf16.msra.mxu0 %v9826_v54  ;;  %v10034_v54 = vld [vmem:[#allocation11 + $0x254] ss:$24 sps:$4 sm:$0xff]  }
 0x35e   :  { %3952 = vmatprep.subr.bf16.mxu0 %v9836_v60  ;;  %v10039_v60 = vld [vmem:[#allocation11 + $0x250] ss:$24 sps:$4 sm:$0xff]  }
 0x360   :  { %3234 = vmatpush1.bf16.msra.mxu1 %v10015_v34 }
 0x361   :  { %3235 = vmatprep.subr.bf16.mxu1 %v10018_v38  ;;  %3953 = vmatpush1.bf16.msra.mxu0 %v9838_v62  ;;  %v10042_v62 = vld [vmem:[#allocation11 + $0x284] ss:$24 sps:$4 sm:$0xff]  }
 0x362   :  { %3954 = vmatprep.subr.bf16.mxu0 %v9848_v6  ;;  %v10047_v6 = vld [vmem:[#allocation11 + $0x280] ss:$24 sps:$4 sm:$0xff]  }
 0x364   :  { %3236 = vmatpush1.bf16.msra.mxu1 %v10023_v44 }
 0x365   :  { %3237 = vmatprep.subr.bf16.mxu1 %v10026_v48  ;;  %3955 = vmatpush1.bf16.msra.mxu0 %v9850_v12  ;;  %v10050_v12 = vld [vmem:[#allocation11 + $0x2b4] ss:$24 sps:$4 sm:$0xff]  }
 0x366   :  { %3956 = vmatprep.subr.bf16.mxu0 %v9860_v18  ;;  %v10055_v18 = vld [vmem:[#allocation11 + $0x2b0] ss:$24 sps:$4 sm:$0xff]  }
 0x368   :  { %3238 = vmatpush1.bf16.msra.mxu1 %v10031_v52 }
 0x369   :  { %3239 = vmatprep.subr.bf16.mxu1 %v10034_v54  ;;  %3957 = vmatpush1.bf16.msra.mxu0 %v9862_v21  ;;  %v10058_v21 = vld [vmem:[#allocation11 + $0x2e4] ss:$24 sps:$4 sm:$0xff]  }
 0x36a   :  { %3958 = vmatprep.subr.bf16.mxu0 %v9873_v43  ;;  %v10063_v43 = vld [vmem:[#allocation11 + $0x2e0] ss:$24 sps:$4 sm:$0xff]  }
 0x36c   :  { %3240 = vmatpush1.bf16.msra.mxu1 %v10039_v60 }
 0x36d   :  { %3241 = vmatprep.subr.bf16.mxu1 %v10042_v62  ;;  %3959 = vmatpush1.bf16.msra.mxu0 %v9871_v22  ;;  %v11141_v22 = vld [vmem:[#allocation18_spill] sm:$0xff] }
 0x36e   :  { %3960 = vmatprep.subr.bf16.mxu0 %v9880_v24  ;;  %v11144_v24 = vld [vmem:[#allocation21_spill] sm:$0xff] }
 0x370   :  { %3242 = vmatpush1.bf16.msra.mxu1 %v10047_v6 }
 0x371   :  { %3243 = vmatprep.subr.bf16.mxu1 %v10050_v12  ;;  %3961 = vmatpush1.bf16.msra.mxu0 %v9887_v49  ;;  %v11151_v49 = vld [vmem:[#allocation28_spill] sm:$0xff] }
 0x372   :  { %3962 = vmatprep.subr.bf16.mxu0 %v9893_v23  ;;  %v11153_v23 = vld [vmem:[#allocation30_spill] sm:$0xff] }
 0x374   :  { %3244 = vmatpush1.bf16.msra.mxu1 %v10055_v18 }
 0x375   :  { %3245 = vmatprep.subr.bf16.mxu1 %v10058_v21  ;;  %3963 = vmatpush1.bf16.msra.mxu0 %v9899_v19  ;;  %v11140_v19 = vld [vmem:[#allocation17_spill] sm:$0xff] }
 0x376   :  { %3964 = vmatprep.subr.bf16.mxu0 %v9905_v37  ;;  %v11143_v37 = vld [vmem:[#allocation20_spill] sm:$0xff] }
 0x378   :  { %3246 = vmatpush1.bf16.msra.mxu1 %v10063_v43 }
 0x379   :  { %3975 = vmatprep.subr.bf16.mxu1 %v9734_v59  ;;  %3965 = vmatpush1.bf16.msra.mxu0 %v9911_v47  ;;  %v11142_v59 = vld [vmem:[#allocation19_spill] sm:$0xff]  ;;  %v11145_v47 = vld [vmem:[#allocation22_spill] sm:$0xff] }
 0x37a   :  { %4016 = vmatprep.subr.bf16.mxu0 %v9920_v51  ;;  %v11152_v51 = vld [vmem:[#allocation29_spill] sm:$0xff] }
 0x37b   :  { %3248 = vmatmul.mubr.bf16.vlgmr.msra.gmra.mrb[20].mxu1 %v9944_v56  ;;  %v11165_v56 = vld [vmem:[#allocation42_spill] sm:$0xff] }
 0x37c   :  { %3976 = vmatpush1.bf16.msra.mxu1 %v9732_v57  ;;  %v11146_v57 = vld [vmem:[#allocation23_spill] sm:$0xff] }
 0x37d   :  { %3977 = vmatprep.subr.bf16.mxu1 %v9739_v63  ;;  %v11147_v63 = vld [vmem:[#allocation24_spill] sm:$0xff] }
 0x380   :  { %3978 = vmatpush1.bf16.msra.mxu1 %v9747_v3  ;;  %v11148_v3 = vld [vmem:[#allocation25_spill] sm:$0xff] }
 0x381   :  { %3979 = vmatprep.subr.bf16.mxu1 %v9752_v7  ;;  %v11149_v7 = vld [vmem:[#allocation26_spill] sm:$0xff] }
 0x384   :  { %3980 = vmatpush1.bf16.msra.mxu1 %v9759_v11  ;;  %v11150_v11 = vld [vmem:[#allocation27_spill] sm:$0xff] }
 0x385   :  { %3981 = vmatprep.subr.bf16.mxu1 %v11140_v19 }
 0x388   :  { %3982 = vmatpush1.bf16.msra.mxu1 %v11141_v22 }
 0x389   :  { %3983 = vmatprep.subr.bf16.mxu1 %v11142_v59 }
 0x38c   :  { %3984 = vmatpush1.bf16.msra.mxu1 %v11143_v37 }
 0x38d   :  { %3985 = vmatprep.subr.bf16.mxu1 %v11144_v24 }
 0x390   :  { %3986 = vmatpush1.bf16.msra.mxu1 %v11145_v47 }
 0x391   :  { %3987 = vmatprep.subr.bf16.mxu1 %v11146_v57 }
 0x394   :  { %3988 = vmatpush1.bf16.msra.mxu1 %v11147_v63 }
 0x395   :  { %3989 = vmatprep.subr.bf16.mxu1 %v11148_v3 }
 0x398   :  { %3990 = vmatpush1.bf16.msra.mxu1 %v11149_v7 }
 0x399   :  { %3991 = vmatprep.subr.bf16.mxu1 %v11150_v11 }
 0x39c   :  { %3992 = vmatpush1.bf16.msra.mxu1 %v11151_v49  ;;  %v2542_v49 = vld [vmem:[#allocation3 + $0x2] ss:$8 sm:$0x30] }
 0x39d   :  { %3993 = vmatprep.subr.bf16.mxu1 %v11152_v51 }
 0x3a0   :  { %3994 = vmatpush1.bf16.msra.mxu1 %v11153_v23  ;;  %v2541_v23 = vld [vmem:[#allocation3 + $0x2] ss:$8 sm:$0xf] }
 0x3a1   :  { %3995 = vmatprep.subr.bf16.mxu1 %v11154_v55  ;;  %v2543_v55 = vor.u32 %v2542_v49, %v2541_v23 }
 0x3a3   :  { %v3330_v49 = vrot.slane %v2543_v55, 4 }
 0x3a4   :  { %3996 = vmatpush1.bf16.msra.mxu1 %v11155_v0 }
 0x3a5   :  { %3997 = vmatprep.subr.bf16.mxu1 %v11156_v4 }
 0x3a8   :  { %3998 = vmatpush1.bf16.msra.mxu1 %v11157_v50 }
 0x3a9   :  { %3999 = vmatprep.subr.bf16.mxu1 %v11158_v40 }
 0x3ac   :  { %4000 = vmatpush1.bf16.msra.mxu1 %v11159_v41  ;;  %v3282_v41 = vrot.slane %v2543_v55, 2 }
 0x3ad   :  { %4001 = vmatprep.subr.bf16.mxu1 %v11160_v58 }
 0x3b0   :  { %4002 = vmatpush1.bf16.msra.mxu1 %v11161_v15 }
 0x3b1   :  { %4003 = vmatprep.subr.bf16.mxu1 %v11162_v14 }
 0x3b4   :  { %4004 = vmatpush1.bf16.msra.mxu1 %v11163_v26 }
 0x3b5   :  { %4005 = vmatprep.subr.bf16.mxu1 %v11164_v28 }
 0x3b8   :  { %4006 = vmatpush1.bf16.msra.mxu1 %v11165_v56 }
 0x40e   :  { %v3167_v19 = vpop.f32.mrb[16].mxu1  ;;  %v3208_v22 = vpop.f32.mrb[20].mxu0 }
 0x40f   :  { %v3169_v59 = vpop.f32.mrb[17].mxu1  ;;  %v3210_v37 = vpop.f32.mrb[21].mxu0 }
 0x410   :  { %v3258_v24 = vcombine.low %v3167_v19, %v3169_v59  ;;  %v3286_v47 = vcombine.low %v3208_v22, %v3210_v37  ;;  %v3171_v57 = vpop.f32.mrb[18].mxu1  ;;  %v3212_v63 = vpop.f32.mrb[22].mxu0 }
 0x411   :  { %v3172_v3 = vpop.f32.mrb[19].mxu1  ;;  %v3213_v7 = vpop.f32.mrb[23].mxu0 }
 0x412   :  { %v3265_v11 = vrot.slane %v3258_v24, %v9678_v2  ;;  %v3293_v4 = vrot.slane %v3286_v47, %v9678_v2 }
 0x414   :  { %v3272_v51 = vrot.slane %v3265_v11, %v9678_v2  ;;  %v3300_v40 = vrot.slane %v3293_v4, %v9678_v2 }
 0x416   :  { %v3274_v0 = vadd.f32 %v3272_v51, %v2543_v55  ;;  %v3302_v58 = vadd.f32 %v3300_v40, %v3282_v41 }
 0x418   :  { %v7798_v50 = vmul.f32 -1.442695, %v3274_v0  ;;  %v7799_v15 = vmul.f32 -1.442695, %v3302_v58 }
 0x41a   :  { %9048 = vpow2.f32 %v7798_v50 }
 0x41b   :  { %9050 = vpow2.f32 %v7799_v15 }
 0x424   :  { %v9049_v14 = vpop.eup %9048 }
 0x425   :  { %v3278_v26 = vadd.f32 1.0, %v9049_v14  ;;  %v9051_v37 = vpop.eup %9050 }
 0x426   :  { %v3306_v57 = vadd.f32 1.0, %v9051_v37  ;;  %v10265_v37 = vld [vmem:[#allocation11 + $0x1bc] ss:$24 sps:$4 sm:$0xff]  }
 0x427   :  { %9052 = vrcp.f32 %v3278_v26  ;;  %v10249_v26 = vld [vmem:[#allocation11 + $0x184] ss:$24 sps:$4 sm:$0xff]   ;;  %11178 = vst [vmem:[#allocation29_spill] sm:$0xff] %v10265_v37 }
 0x428   :  { %9054 = vrcp.f32 %v3306_v57  ;;  %v10275_v57 = vld [vmem:[#allocation11 + $0x1e0] ss:$24 sps:$4 sm:$0xff]  }
 0x431   :  { %v9053_v7 = vpop.eup %9052 }
 0x432   :  { %v9055_v23 = vpop.eup %9054 }
 0x433   :  { %v3334_v0 = vsub.f32 1.0, %v9055_v23  ;;  %v3336_v40 = vmul.f32 %v9055_v23, %v9933_v32  ;;  %v10153_v32 = vld [vmem:[#allocation11] ss:$24 sps:$4 sm:$0xff]  }
 0x434   :  { %v10296_v23 = vld [vmem:[#allocation11 + $0x240] ss:$24 sps:$4 sm:$0xff]  }
 0x44e   :  { %v3249_v28 = vpop.f32.mrb[20].mxu1 }
 0x44f   :  { %v3309_v56 = vadd.f32 %v3249_v28, %v9686_v33  ;;  %v3251_v19 = vpop.f32.mrb[21].mxu1  ;;  %v10251_v28 = vld [vmem:[#allocation11 + $0x180] ss:$24 sps:$4 sm:$0xff]  }
 0x450   :  { %v3310_v22 = vadd.f32 %v3251_v19, %v9689_v36  ;;  %v3253_v59 = vpop.f32.mrb[22].mxu1  ;;  %v10256_v19 = vld [vmem:[#allocation11 + $0x188] ss:$24 sps:$4 sm:$0xff]  }
 0x451   :  { %v3254_v24 = vpop.f32.mrb[23].mxu1  ;;  %11177 = vst [vmem:[#allocation28_spill] sm:$0xff] %v10256_v19  ;;  %v10263_v59 = vld [vmem:[#allocation11 + $0x1b0] ss:$24 sps:$4 sm:$0xff]  }
 0x452   :  { %v3313_v47 = vcombine.low %v3309_v56, %v3310_v22  ;;  %v10253_v56 = vld [vmem:[#allocation11 + $0x18c] ss:$24 sps:$4 sm:$0xff]   ;;  %v10268_v24 = vld [vmem:[#allocation11 + $0x1b8] ss:$24 sps:$4 sm:$0xff]  }
 0x453   :  { %11176 = vst [vmem:[#allocation27_spill] sm:$0xff] %v10253_v56  ;;  %v10261_v22 = vld [vmem:[#allocation11 + $0x1b4] ss:$24 sps:$4 sm:$0xff]   ;;  %11179 = vst [vmem:[#allocation30_spill] sm:$0xff] %v10268_v24 }
 0x454   :  { %v3320_v63 = vrot.slane %v3313_v47, %v9678_v2  ;;  %v10273_v47 = vld [vmem:[#allocation11 + $0x1e4] ss:$24 sps:$4 sm:$0xff]  }
 0x456   :  { %v3327_v3 = vrot.slane %v3320_v63, %v9678_v2  ;;  %v10277_v63 = vld [vmem:[#allocation11 + $0x1ec] ss:$24 sps:$4 sm:$0xff]  }
 0x457   :  { %11180 = vst [vmem:[#allocation31_spill] sm:$0xff] %v10277_v63 }
 0x458   :  { %v3329_v11 = vmul.f32 %v9053_v7, %v3327_v3  ;;  %v10280_v3 = vld [vmem:[#allocation11 + $0x1e8] ss:$24 sps:$4 sm:$0xff]   ;;  %v10285_v7 = vld [vmem:[#allocation11 + $0x214] ss:$24 sps:$4 sm:$0xff]  }
 0x459   :  { %11181 = vst [vmem:[#allocation32_spill] sm:$0xff] %v10280_v3 }
 0x45a   :  { %v3332_v51 = vadd.f32 %v3330_v49, %v3329_v11  ;;  %v10287_v11 = vld [vmem:[#allocation11 + $0x210] ss:$24 sps:$4 sm:$0xff]   ;;  %v10289_v49 = vld [vmem:[#allocation11 + $0x21c] ss:$24 sps:$4 sm:$0xff]  }
 0x45b   :  { %11182 = vst [vmem:[#allocation33_spill] sm:$0xff] %v10289_v49 }
 0x45c   :  { %9056 = vtanh.f32 %v3332_v51  ;;  %v10292_v51 = vld [vmem:[#allocation11 + $0x218] ss:$24 sps:$4 sm:$0xff]  }
 0x45d   :  { %11183 = vst [vmem:[#allocation34_spill] sm:$0xff] %v10292_v51 }
 0x466   :  { %v9057_v4 = vpop.eup %9056 }
 0x467   :  { %v3335_v50 = vmul.f32 %v9057_v4, %v3334_v0  ;;  %v10298_v0 = vld [vmem:[#allocation11 + $0x244] ss:$24 sps:$4 sm:$0xff]   ;;  %v10301_v4 = vld [vmem:[#allocation11 + $0x248] ss:$24 sps:$4 sm:$0xff]  }
 0x468   :  { %11184 = vst [vmem:[#allocation36_spill] sm:$0xff] %v10301_v4 }
 0x469   :  { %v10113_v41 = vadd.f32 %v3336_v40, %v3335_v50  ;;  %v10303_v50 = vld [vmem:[#allocation11 + $0x24c] ss:$24 sps:$4 sm:$0xff]  }
 0x46a   :  { %11185 = vst [vmem:[#allocation35_spill] sm:$0xff] %v10303_v50  ;;  %v10305_v40 = vld [vmem:[#allocation11 + $0x274] ss:$24 sps:$4 sm:$0xff]  }
 0x46b   :  { %v3353_v58 = vrot.slane %v10113_v41, %v9446_v42  ;;  %3339 = vst.msk [vmem:[#allocation12 + $0x2] ss:$8 sm:$0x3] %vm9406_vm0, %v10113_v41  ;;  %v3349_v55 = vrot.slane %v10113_v41, %v9459_v16 }
 0x46d   :  { %v3357_v15 = vpack.c.bf16 %v3353_v58, %v3353_v58  ;;  %v3356_v14 = vpack.c.bf16 %v3349_v55, %v3349_v55  ;;  %v10308_v58 = vld [vmem:[#allocation11 + $0x27c] ss:$24 sps:$4 sm:$0xff]   ;;  %v10312_v55 = vld [vmem:[#allocation11 + $0x270] ss:$24 sps:$4 sm:$0xff]  }
 0x46e   :  { %11186 = vst [vmem:[#allocation37_spill] sm:$0xff] %v10308_v58 }
 0x46f   :  { %3966 = vmatprep.mubr.bf16.mxu0 %v3357_v15  ;;  %4007 = vmatprep.mubr.bf16.mxu1 %v3357_v15 }
 0x470   :  { %3967 = vmatmul.mubr.bf16.vlgmr.msra.gmra.mrb[24].mxu0 %v3356_v14  ;;  %4008 = vmatmul.mubr.bf16.vlgmr.msra.gmra.mrb[24].mxu1 %v3356_v14 }
 0x471   :  { %4017 = vmatpush1.bf16.msra.mxu0 %v9942_v10  ;;  %4048 = vmatprep.mubr.bf16.mxu0 %v3357_v15  ;;  %v10155_v10 = vld [vmem:[#allocation11 + $0x4] ss:$24 sps:$4 sm:$0xff]   ;;  %v10316_v15 = vld [vmem:[#allocation11 + $0x278] ss:$24 sps:$4 sm:$0xff]  }
 0x472   :  { %4018 = vmatprep.subr.bf16.mxu0 %v9946_v29  ;;  %v10157_v29 = vld [vmem:[#allocation11 + $0x8] ss:$24 sps:$4 sm:$0xff]   ;;  %4735 = vmatprep.subr.bf16.mxu1 %v10155_v10  ;;  %11187 = vst [vmem:[#allocation38_spill] sm:$0xff] %v10316_v15 }
 0x473   :  { %4736 = vmatpush1.bf16.msra.mxu1 %v10153_v32 }
 0x475   :  { %4019 = vmatpush1.bf16.msra.mxu0 %v9951_v8  ;;  %v10159_v8 = vld [vmem:[#allocation11 + $0xc] ss:$24 sps:$4 sm:$0xff]  }
 0x476   :  { %4020 = vmatprep.subr.bf16.mxu0 %v9954_v46  ;;  %v10161_v46 = vld [vmem:[#allocation11 + $0x34] ss:$24 sps:$4 sm:$0xff]  }
 0x477   :  { %4737 = vmatprep.subr.bf16.mxu1 %v10161_v46 }
 0x479   :  { %4021 = vmatpush1.bf16.msra.mxu0 %v9959_v27  ;;  %v10164_v27 = vld [vmem:[#allocation11 + $0x3c] ss:$24 sps:$4 sm:$0xff]  }
 0x47a   :  { %4022 = vmatprep.subr.bf16.mxu0 %v9962_v17  ;;  %v10168_v17 = vld [vmem:[#allocation11 + $0x30] ss:$24 sps:$4 sm:$0xff]  }
 0x47b   :  { %4738 = vmatpush1.bf16.msra.mxu1 %v10168_v17 }
 0x47d   :  { %4023 = vmatpush1.bf16.msra.mxu0 %v9967_v35  ;;  %v10172_v35 = vld [vmem:[#allocation11 + $0x38] ss:$24 sps:$4 sm:$0xff]  }
 0x47e   :  { %4024 = vmatprep.subr.bf16.mxu0 %v9970_v53  ;;  %v10174_v53 = vld [vmem:[#allocation11 + $0x64] ss:$24 sps:$4 sm:$0xff]  }
 0x47f   :  { %4739 = vmatprep.subr.bf16.mxu1 %v10174_v53 }
 0x481   :  { %4025 = vmatpush1.bf16.msra.mxu0 %v9975_v61  ;;  %v10177_v61 = vld [vmem:[#allocation11 + $0x6c] ss:$24 sps:$4 sm:$0xff]  }
 0x482   :  { %4026 = vmatprep.subr.bf16.mxu0 %v9978_v1  ;;  %v10180_v1 = vld [vmem:[#allocation11 + $0x60] ss:$24 sps:$4 sm:$0xff]  }
 0x483   :  { %4740 = vmatpush1.bf16.msra.mxu1 %v10180_v1 }
 0x485   :  { %4027 = vmatpush1.bf16.msra.mxu0 %v9983_v5  ;;  %v10184_v5 = vld [vmem:[#allocation11 + $0x68] ss:$24 sps:$4 sm:$0xff]  }
 0x486   :  { %4028 = vmatprep.subr.bf16.mxu0 %v9986_v9  ;;  %v10186_v9 = vld [vmem:[#allocation11 + $0x94] ss:$24 sps:$4 sm:$0xff]  }
 0x487   :  { %4741 = vmatprep.subr.bf16.mxu1 %v10186_v9 }
 0x489   :  { %4029 = vmatpush1.bf16.msra.mxu0 %v9991_v13  ;;  %v10189_v13 = vld [vmem:[#allocation11 + $0x9c] ss:$24 sps:$4 sm:$0xff]  }
 0x48a   :  { %4030 = vmatprep.subr.bf16.mxu0 %v9994_v20  ;;  %11166 = vst [vmem:[#allocation17_spill] sm:$0xff] %v10189_v13  ;;  %v10192_v20 = vld [vmem:[#allocation11 + $0x90] ss:$24 sps:$4 sm:$0xff]  }
 0x48b   :  { %4742 = vmatpush1.bf16.msra.mxu1 %v10192_v20 }
 0x48d   :  { %4031 = vmatpush1.bf16.msra.mxu0 %v9999_v31  ;;  %v10196_v31 = vld [vmem:[#allocation11 + $0x98] ss:$24 sps:$4 sm:$0xff]  }
 0x48e   :  { %4032 = vmatprep.subr.bf16.mxu0 %v10002_v39  ;;  %11167 = vst [vmem:[#allocation18_spill] sm:$0xff] %v10196_v31  ;;  %v10198_v39 = vld [vmem:[#allocation11 + $0xc4] ss:$24 sps:$4 sm:$0xff]  }
 0x48f   :  { %4743 = vmatprep.subr.bf16.mxu1 %v10198_v39 }
 0x491   :  { %4033 = vmatpush1.bf16.msra.mxu0 %v10007_v25  ;;  %v10201_v25 = vld [vmem:[#allocation11 + $0xcc] ss:$24 sps:$4 sm:$0xff]  }
 0x492   :  { %4034 = vmatprep.subr.bf16.mxu0 %v10010_v30  ;;  %11168 = vst [vmem:[#allocation19_spill] sm:$0xff] %v10201_v25  ;;  %v10204_v30 = vld [vmem:[#allocation11 + $0xc0] ss:$24 sps:$4 sm:$0xff]  }
 0x493   :  { %4744 = vmatpush1.bf16.msra.mxu1 %v10204_v30 }
 0x495   :  { %4035 = vmatpush1.bf16.msra.mxu0 %v10015_v34  ;;  %v10208_v34 = vld [vmem:[#allocation11 + $0xc8] ss:$24 sps:$4 sm:$0xff]  }
 0x496   :  { %4036 = vmatprep.subr.bf16.mxu0 %v10018_v38  ;;  %11169 = vst [vmem:[#allocation20_spill] sm:$0xff] %v10208_v34  ;;  %v10210_v38 = vld [vmem:[#allocation11 + $0xf4] ss:$24 sps:$4 sm:$0xff]  }
 0x497   :  { %4745 = vmatprep.subr.bf16.mxu1 %v10210_v38 }
 0x499   :  { %4037 = vmatpush1.bf16.msra.mxu0 %v10023_v44  ;;  %v10213_v44 = vld [vmem:[#allocation11 + $0xfc] ss:$24 sps:$4 sm:$0xff]  }
 0x49a   :  { %4038 = vmatprep.subr.bf16.mxu0 %v10026_v48  ;;  %11170 = vst [vmem:[#allocation21_spill] sm:$0xff] %v10213_v44  ;;  %v10216_v48 = vld [vmem:[#allocation11 + $0xf0] ss:$24 sps:$4 sm:$0xff]  }
 0x49b   :  { %4746 = vmatpush1.bf16.msra.mxu1 %v10216_v48 }
 0x49d   :  { %4039 = vmatpush1.bf16.msra.mxu0 %v10031_v52  ;;  %v10220_v52 = vld [vmem:[#allocation11 + $0xf8] ss:$24 sps:$4 sm:$0xff]  }
 0x49e   :  { %4040 = vmatprep.subr.bf16.mxu0 %v10034_v54  ;;  %11171 = vst [vmem:[#allocation22_spill] sm:$0xff] %v10220_v52  ;;  %v10222_v54 = vld [vmem:[#allocation11 + $0x124] ss:$24 sps:$4 sm:$0xff]  }
 0x49f   :  { %4747 = vmatprep.subr.bf16.mxu1 %v10222_v54 }
 0x4a1   :  { %4041 = vmatpush1.bf16.msra.mxu0 %v10039_v60  ;;  %v10225_v60 = vld [vmem:[#allocation11 + $0x12c] ss:$24 sps:$4 sm:$0xff]  }
 0x4a2   :  { %4042 = vmatprep.subr.bf16.mxu0 %v10042_v62  ;;  %11172 = vst [vmem:[#allocation23_spill] sm:$0xff] %v10225_v60  ;;  %v10228_v62 = vld [vmem:[#allocation11 + $0x120] ss:$24 sps:$4 sm:$0xff]  }
 0x4a3   :  { %4748 = vmatpush1.bf16.msra.mxu1 %v10228_v62 }
 0x4a5   :  { %4043 = vmatpush1.bf16.msra.mxu0 %v10047_v6  ;;  %v10232_v6 = vld [vmem:[#allocation11 + $0x128] ss:$24 sps:$4 sm:$0xff]  }
 0x4a6   :  { %4044 = vmatprep.subr.bf16.mxu0 %v10050_v12  ;;  %11173 = vst [vmem:[#allocation24_spill] sm:$0xff] %v10232_v6  ;;  %v10234_v12 = vld [vmem:[#allocation11 + $0x154] ss:$24 sps:$4 sm:$0xff]  }
 0x4a7   :  { %4749 = vmatprep.subr.bf16.mxu1 %v10234_v12 }
 0x4a9   :  { %4045 = vmatpush1.bf16.msra.mxu0 %v10055_v18  ;;  %v10237_v18 = vld [vmem:[#allocation11 + $0x15c] ss:$24 sps:$4 sm:$0xff]  }
 0x4aa   :  { %4046 = vmatprep.subr.bf16.mxu0 %v10058_v21  ;;  %11174 = vst [vmem:[#allocation25_spill] sm:$0xff] %v10237_v18  ;;  %v10240_v21 = vld [vmem:[#allocation11 + $0x150] ss:$24 sps:$4 sm:$0xff]  }
 0x4ab   :  { %4750 = vmatpush1.bf16.msra.mxu1 %v10240_v21 }
 0x4ac   :  { %4751 = vmatprep.subr.bf16.mxu1 %v10249_v26 }
 0x4ad   :  { %4047 = vmatpush1.bf16.msra.mxu0 %v10063_v43  ;;  %v10244_v43 = vld [vmem:[#allocation11 + $0x158] ss:$24 sps:$4 sm:$0xff]  }
 0x4ae   :  { %4776 = vmatprep.subr.bf16.mxu0 %v10159_v8  ;;  %11175 = vst [vmem:[#allocation26_spill] sm:$0xff] %v10244_v43 }
 0x4af   :  { %4752 = vmatpush1.bf16.msra.mxu1 %v10251_v28 }
 0x4b0   :  { %4049 = vmatmul.mubr.bf16.vlgmr.msra.gmra.mrb[28].mxu0 %v3356_v14  ;;  %4753 = vmatprep.subr.bf16.mxu1 %v10261_v22  ;;  %v10318_v14 = vld [vmem:[#allocation11 + $0x2a4] ss:$24 sps:$4 sm:$0xff]  }
 0x4b1   :  { %4777 = vmatpush1.bf16.msra.mxu0 %v10157_v29 }
 0x4b2   :  { %4778 = vmatprep.subr.bf16.mxu0 %v10164_v27 }
 0x4b3   :  { %4754 = vmatpush1.bf16.msra.mxu1 %v10263_v59 }
 0x4b4   :  { %4755 = vmatprep.subr.bf16.mxu1 %v10273_v47 }
 0x4b5   :  { %4779 = vmatpush1.bf16.msra.mxu0 %v10172_v35 }
 0x4b6   :  { %4780 = vmatprep.subr.bf16.mxu0 %v10177_v61 }
 0x4b7   :  { %4756 = vmatpush1.bf16.msra.mxu1 %v10275_v57 }
 0x4b8   :  { %4757 = vmatprep.subr.bf16.mxu1 %v10285_v7 }
 0x4b9   :  { %4781 = vmatpush1.bf16.msra.mxu0 %v10184_v5 }
 0x4ba   :  { %4782 = vmatprep.subr.bf16.mxu0 %v10189_v13 }
 0x4bb   :  { %4758 = vmatpush1.bf16.msra.mxu1 %v10287_v11 }
 0x4bc   :  { %4759 = vmatprep.subr.bf16.mxu1 %v10298_v0 }
 0x4bd   :  { %4783 = vmatpush1.bf16.msra.mxu0 %v10196_v31 }
 0x4be   :  { %4784 = vmatprep.subr.bf16.mxu0 %v10201_v25 }
 0x4bf   :  { %4760 = vmatpush1.bf16.msra.mxu1 %v10296_v23 }
 0x4c0   :  { %4761 = vmatprep.subr.bf16.mxu1 %v10305_v40 }
 0x4c1   :  { %4785 = vmatpush1.bf16.msra.mxu0 %v10208_v34 }
 0x4c2   :  { %4786 = vmatprep.subr.bf16.mxu0 %v10213_v44  ;;  %v3342_v44 = vld [vmem:[#allocation3 + $0x3] ss:$8 sm:$0xf] }
 0x4c3   :  { %4762 = vmatpush1.bf16.msra.mxu1 %v10312_v55 }
 0x4c4   :  { %4763 = vmatprep.subr.bf16.mxu1 %v10318_v14 }
 0x4c5   :  { %4787 = vmatpush1.bf16.msra.mxu0 %v10220_v52  ;;  %v3343_v52 = vld [vmem:[#allocation3 + $0x3] ss:$8 sm:$0x30] }
 0x4c6   :  { %4788 = vmatprep.subr.bf16.mxu0 %v10225_v60  ;;  %v3344_v34 = vor.u32 %v3343_v52, %v3342_v44 }
 0x4c9   :  { %4789 = vmatpush1.bf16.msra.mxu0 %v10232_v6 }
 0x4ca   :  { %4790 = vmatprep.subr.bf16.mxu0 %v10237_v18 }
 0x4cd   :  { %4791 = vmatpush1.bf16.msra.mxu0 %v10244_v43 }
 0x4ce   :  { %4792 = vmatprep.subr.bf16.mxu0 %v10253_v56 }
 0x4d1   :  { %4793 = vmatpush1.bf16.msra.mxu0 %v10256_v19 }
 0x4d2   :  { %4794 = vmatprep.subr.bf16.mxu0 %v10265_v37 }
 0x4d5   :  { %4795 = vmatpush1.bf16.msra.mxu0 %v10268_v24 }
 0x4d6   :  { %4796 = vmatprep.subr.bf16.mxu0 %v10277_v63  ;;  %v10340_v63 = vld [vmem:[#allocation11 + $0x2d8] ss:$24 sps:$4 sm:$0xff]  }
 0x4d7   :  { %11191 = vst [vmem:[#allocation42_spill] sm:$0xff] %v10340_v63 }
 0x4d9   :  { %4797 = vmatpush1.bf16.msra.mxu0 %v10280_v3  ;;  %v10333_v3 = vld [vmem:[#allocation11 + $0x2dc] ss:$24 sps:$4 sm:$0xff]  }
 0x4da   :  { %4798 = vmatprep.subr.bf16.mxu0 %v10289_v49  ;;  %v10324_v49 = vld [vmem:[#allocation11 + $0x2a0] ss:$24 sps:$4 sm:$0xff]   ;;  %11190 = vst [vmem:[#allocation41_spill] sm:$0xff] %v10333_v3 }
 0x4db   :  { %4764 = vmatpush1.bf16.msra.mxu1 %v10324_v49 }
 0x4dd   :  { %4799 = vmatpush1.bf16.msra.mxu0 %v10292_v51  ;;  %v10321_v51 = vld [vmem:[#allocation11 + $0x2ac] ss:$24 sps:$4 sm:$0xff]  }
 0x4de   :  { %4800 = vmatprep.subr.bf16.mxu0 %v10303_v50  ;;  %11188 = vst [vmem:[#allocation39_spill] sm:$0xff] %v10321_v51  ;;  %v10328_v50 = vld [vmem:[#allocation11 + $0x2a8] ss:$24 sps:$4 sm:$0xff]  }
 0x4df   :  { %11189 = vst [vmem:[#allocation40_spill] sm:$0xff] %v10328_v50 }
 0x4e1   :  { %4801 = vmatpush1.bf16.msra.mxu0 %v10301_v4  ;;  %v10330_v4 = vld [vmem:[#allocation11 + $0x2d4] ss:$24 sps:$4 sm:$0xff]  }
 0x4e2   :  { %4802 = vmatprep.subr.bf16.mxu0 %v10308_v58  ;;  %v10336_v58 = vld [vmem:[#allocation11 + $0x2d0] ss:$24 sps:$4 sm:$0xff]   ;;  %4765 = vmatprep.subr.bf16.mxu1 %v10330_v4 }
 0x4e3   :  { %4766 = vmatpush1.bf16.msra.mxu1 %v10336_v58 }
 0x4e5   :  { %4803 = vmatpush1.bf16.msra.mxu0 %v10316_v15  ;;  %v10345_v15 = vld [vmem:[#allocation11 + $0x14] ss:$24 sps:$4 sm:$0xff]  }
 0x4e6   :  { %4804 = vmatprep.subr.bf16.mxu0 %v10321_v51  ;;  %4817 = vmatprep.subr.bf16.mxu1 %v10345_v15 }
 0x4e9   :  { %4805 = vmatpush1.bf16.msra.mxu0 %v10328_v50 }
 0x4ea   :  { %4806 = vmatprep.subr.bf16.mxu0 %v10333_v3 }
 0x4ed   :  { %4807 = vmatpush1.bf16.msra.mxu0 %v10340_v63 }
 0x4ee   :  { %5536 = vmatprep.subr.bf16.mxu0 %v10155_v10 }
 0x543   :  { %v3968_v51 = vpop.f32.mrb[24].mxu0  ;;  %v4009_v24 = vpop.f32.mrb[24].mxu1 }
 0x544   :  { %v3970_v37 = vpop.f32.mrb[25].mxu0  ;;  %v4011_v50 = vpop.f32.mrb[25].mxu1 }
 0x545   :  { %v4059_v19 = vcombine.low %v3968_v51, %v3970_v37  ;;  %v4087_v56 = vcombine.low %v4009_v24, %v4011_v50  ;;  %v3972_v43 = vpop.f32.mrb[26].mxu0  ;;  %v4013_v18 = vpop.f32.mrb[26].mxu1  ;;  %v4083_v37 = vrot.slane %v3344_v34, 2 }
 0x546   :  { %v3973_v6 = vpop.f32.mrb[27].mxu0  ;;  %v4014_v3 = vpop.f32.mrb[27].mxu1 }
 0x547   :  { %v4066_v60 = vrot.slane %v4059_v19, %v9678_v2  ;;  %v4094_v25 = vrot.slane %v4087_v56, %v9678_v2 }
 0x549   :  { %v4073_v63 = vrot.slane %v4066_v60, %v9678_v2  ;;  %v4101_v13 = vrot.slane %v4094_v25, %v9678_v2 }
 0x54b   :  { %v4075_v10 = vadd.f32 %v4073_v63, %v3344_v34  ;;  %v4103_v24 = vadd.f32 %v4101_v13, %v4083_v37  ;;  %v4131_v37 = vrot.slane %v3344_v34, 4 }
 0x54d   :  { %v7896_v31 = vmul.f32 -1.442695, %v4075_v10  ;;  %v7897_v43 = vmul.f32 -1.442695, %v4103_v24 }
 0x54f   :  { %9058 = vpow2.f32 %v7896_v31 }
 0x550   :  { %9060 = vpow2.f32 %v7897_v43 }
 0x559   :  { %v9059_v18 = vpop.eup %9058 }
 0x55a   :  { %v4079_v6 = vadd.f32 1.0, %v9059_v18  ;;  %v9061_v63 = vpop.eup %9060 }
 0x55b   :  { %v4107_v50 = vadd.f32 1.0, %v9061_v63  ;;  %v10367_v63 = vld [vmem:[#allocation11 + $0x10] ss:$24 sps:$4 sm:$0xff]  }
 0x55c   :  { %9062 = vrcp.f32 %v4079_v6 }
 0x55d   :  { %9064 = vrcp.f32 %v4107_v50  ;;  %v10379_v50 = vld [vmem:[#allocation11 + $0x74] ss:$24 sps:$4 sm:$0xff]  }
 0x566   :  { %v9063_v25 = vpop.eup %9062 }
 0x567   :  { %v9065_v43 = vpop.eup %9064 }
 0x568   :  { %v4135_v18 = vsub.f32 1.0, %v9065_v43 }
 0x583   :  { %v4050_v19 = vpop.f32.mrb[28].mxu0 }
 0x584   :  { %v4110_v3 = vadd.f32 %v4050_v19, %v9686_v33  ;;  %v4052_v60 = vpop.f32.mrb[29].mxu0 }
 0x585   :  { %v4111_v44 = vadd.f32 %v4052_v60, %v9689_v36  ;;  %v4054_v52 = vpop.f32.mrb[30].mxu0  ;;  %v4137_v60 = vmul.f32 %v9065_v43, %v10113_v41  ;;  %v10376_v41 = vld [vmem:[#allocation11 + $0x40] ss:$24 sps:$4 sm:$0xff]  }
 0x586   :  { %v4055_v56 = vpop.f32.mrb[31].mxu0  ;;  %v11209_v43 = vld [vmem:[#allocation34_spill] sm:$0xff] }
 0x587   :  { %v4114_v51 = vcombine.low %v4110_v3, %v4111_v44 }
 0x589   :  { %v4121_v31 = vrot.slane %v4114_v51, %v9678_v2  ;;  %v10371_v51 = vld [vmem:[#allocation11 + $0x44] ss:$24 sps:$4 sm:$0xff]  }
 0x58b   :  { %v4128_v13 = vrot.slane %v4121_v31, %v9678_v2  ;;  %v10384_v31 = vld [vmem:[#allocation11 + $0x70] ss:$24 sps:$4 sm:$0xff]  }
 0x58d   :  { %v4130_v10 = vmul.f32 %v9063_v25, %v4128_v13  ;;  %v10387_v13 = vld [vmem:[#allocation11 + $0xa4] ss:$24 sps:$4 sm:$0xff]   ;;  %v10392_v25 = vld [vmem:[#allocation11 + $0xa0] ss:$24 sps:$4 sm:$0xff]  }
 0x58f   :  { %v4133_v24 = vadd.f32 %v4131_v37, %v4130_v10  ;;  %v11206_v10 = vld [vmem:[#allocation31_spill] sm:$0xff]  ;;  %v11207_v37 = vld [vmem:[#allocation32_spill] sm:$0xff] }
 0x591   :  { %9066 = vtanh.f32 %v4133_v24  ;;  %v11208_v24 = vld [vmem:[#allocation33_spill] sm:$0xff] }
 0x59b   :  { %v9067_v6 = vpop.eup %9066 }
 0x59c   :  { %v4136_v19 = vmul.f32 %v9067_v6, %v4135_v18  ;;  %v11210_v18 = vld [vmem:[#allocation35_spill] sm:$0xff]  ;;  %v11211_v6 = vld [vmem:[#allocation36_spill] sm:$0xff] }
 0x59e   :  { %v10358_v52 = vadd.f32 %v4137_v60, %v4136_v19  ;;  %v11212_v19 = vld [vmem:[#allocation37_spill] sm:$0xff]  ;;  %v11213_v60 = vld [vmem:[#allocation38_spill] sm:$0xff] }
 0x5a0   :  { %v4154_v3 = vrot.slane %v10358_v52, %v9446_v42  ;;  %4140 = vst.msk [vmem:[#allocation12 + $0x3] ss:$8 sm:$0x3] %vm9406_vm0, %v10358_v52  ;;  %v4150_v34 = vrot.slane %v10358_v52, %v9459_v16 }
 0x5a2   :  { %v4158_v44 = vpack.c.bf16 %v4154_v3, %v4154_v3  ;;  %v10369_v56 = vpack.c.bf16 %v4150_v34, %v4150_v34  ;;  %v11214_v3 = vld [vmem:[#allocation39_spill] sm:$0xff]  ;;  %v11215_v34 = vld [vmem:[#allocation40_spill] sm:$0xff] }
 0x5a4   :  { %4767 = vmatprep.mubr.bf16.mxu1 %v4158_v44  ;;  %4808 = vmatprep.mubr.bf16.mxu0 %v4158_v44 }
 0x5a5   :  { %4768 = vmatmul.mubr.bf16.vlgmr.msra.gmra.mrb[28].mxu1 %v10369_v56  ;;  %4809 = vmatmul.mubr.bf16.vlgmr.msra.gmra.mrb[32].mxu0 %v10369_v56 }
 0x5a6   :  { %4818 = vmatpush1.bf16.msra.mxu1 %v10367_v63  ;;  %4849 = vmatprep.mubr.bf16.mxu1 %v4158_v44  ;;  %v11216_v44 = vld [vmem:[#allocation41_spill] sm:$0xff] }
 0x5a7   :  { %4819 = vmatprep.subr.bf16.mxu1 %v10371_v51  ;;  %5537 = vmatpush1.bf16.msra.mxu0 %v10153_v32  ;;  %v10395_v32 = vld [vmem:[#allocation11 + $0xd4] ss:$24 sps:$4 sm:$0xff]  }
 0x5a8   :  { %5538 = vmatprep.subr.bf16.mxu0 %v10161_v46  ;;  %v10400_v46 = vld [vmem:[#allocation11 + $0xd0] ss:$24 sps:$4 sm:$0xff]  }
 0x5aa   :  { %4820 = vmatpush1.bf16.msra.mxu1 %v10376_v41 }
 0x5ab   :  { %4821 = vmatprep.subr.bf16.mxu1 %v10379_v50  ;;  %5539 = vmatpush1.bf16.msra.mxu0 %v10168_v17  ;;  %v10403_v17 = vld [vmem:[#allocation11 + $0x104] ss:$24 sps:$4 sm:$0xff]  }
 0x5ac   :  { %5540 = vmatprep.subr.bf16.mxu0 %v10174_v53  ;;  %v10408_v53 = vld [vmem:[#allocation11 + $0x100] ss:$24 sps:$4 sm:$0xff]  }
 0x5ae   :  { %4822 = vmatpush1.bf16.msra.mxu1 %v10384_v31 }
 0x5af   :  { %4823 = vmatprep.subr.bf16.mxu1 %v10387_v13  ;;  %5541 = vmatpush1.bf16.msra.mxu0 %v10180_v1  ;;  %v10411_v1 = vld [vmem:[#allocation11 + $0x134] ss:$24 sps:$4 sm:$0xff]  }
 0x5b0   :  { %5542 = vmatprep.subr.bf16.mxu0 %v10186_v9  ;;  %v10416_v9 = vld [vmem:[#allocation11 + $0x130] ss:$24 sps:$4 sm:$0xff]  }
 0x5b2   :  { %4824 = vmatpush1.bf16.msra.mxu1 %v10392_v25 }
 0x5b3   :  { %4825 = vmatprep.subr.bf16.mxu1 %v10395_v32  ;;  %5543 = vmatpush1.bf16.msra.mxu0 %v10192_v20  ;;  %v10419_v20 = vld [vmem:[#allocation11 + $0x164] ss:$24 sps:$4 sm:$0xff]  }
 0x5b4   :  { %5544 = vmatprep.subr.bf16.mxu0 %v10198_v39  ;;  %v10424_v39 = vld [vmem:[#allocation11 + $0x160] ss:$24 sps:$4 sm:$0xff]  }
 0x5b6   :  { %4826 = vmatpush1.bf16.msra.mxu1 %v10400_v46 }
 0x5b7   :  { %4827 = vmatprep.subr.bf16.mxu1 %v10403_v17  ;;  %5545 = vmatpush1.bf16.msra.mxu0 %v10204_v30  ;;  %v10427_v30 = vld [vmem:[#allocation11 + $0x194] ss:$24 sps:$4 sm:$0xff]  }
 0x5b8   :  { %5546 = vmatprep.subr.bf16.mxu0 %v10210_v38  ;;  %v10432_v38 = vld [vmem:[#allocation11 + $0x190] ss:$24 sps:$4 sm:$0xff]  }
 0x5ba   :  { %4828 = vmatpush1.bf16.msra.mxu1 %v10408_v53 }
 0x5bb   :  { %4829 = vmatprep.subr.bf16.mxu1 %v10411_v1  ;;  %5547 = vmatpush1.bf16.msra.mxu0 %v10216_v48  ;;  %v10435_v48 = vld [vmem:[#allocation11 + $0x1c4] ss:$24 sps:$4 sm:$0xff]  }
 0x5bc   :  { %5548 = vmatprep.subr.bf16.mxu0 %v10222_v54  ;;  %v10440_v54 = vld [vmem:[#allocation11 + $0x1c0] ss:$24 sps:$4 sm:$0xff]  }
 0x5be   :  { %4830 = vmatpush1.bf16.msra.mxu1 %v10416_v9 }
 0x5bf   :  { %4831 = vmatprep.subr.bf16.mxu1 %v10419_v20  ;;  %5549 = vmatpush1.bf16.msra.mxu0 %v10228_v62  ;;  %v10443_v62 = vld [vmem:[#allocation11 + $0x1f4] ss:$24 sps:$4 sm:$0xff]  }
 0x5c0   :  { %5550 = vmatprep.subr.bf16.mxu0 %v10234_v12  ;;  %v10448_v12 = vld [vmem:[#allocation11 + $0x1f0] ss:$24 sps:$4 sm:$0xff]  }
 0x5c2   :  { %4832 = vmatpush1.bf16.msra.mxu1 %v10424_v39 }
 0x5c3   :  { %4833 = vmatprep.subr.bf16.mxu1 %v10427_v30  ;;  %5551 = vmatpush1.bf16.msra.mxu0 %v10240_v21  ;;  %v10451_v21 = vld [vmem:[#allocation11 + $0x224] ss:$24 sps:$4 sm:$0xff]  }
 0x5c4   :  { %5552 = vmatprep.subr.bf16.mxu0 %v10249_v26  ;;  %v10456_v26 = vld [vmem:[#allocation11 + $0x220] ss:$24 sps:$4 sm:$0xff]  }
 0x5c6   :  { %4834 = vmatpush1.bf16.msra.mxu1 %v10432_v38 }
 0x5c7   :  { %4835 = vmatprep.subr.bf16.mxu1 %v10435_v48  ;;  %5553 = vmatpush1.bf16.msra.mxu0 %v10251_v28  ;;  %v10459_v28 = vld [vmem:[#allocation11 + $0x254] ss:$24 sps:$4 sm:$0xff]  }
 0x5c8   :  { %5554 = vmatprep.subr.bf16.mxu0 %v10261_v22  ;;  %v10464_v22 = vld [vmem:[#allocation11 + $0x250] ss:$24 sps:$4 sm:$0xff]  }
 0x5ca   :  { %4836 = vmatpush1.bf16.msra.mxu1 %v10440_v54 }
 0x5cb   :  { %4837 = vmatprep.subr.bf16.mxu1 %v10443_v62  ;;  %5555 = vmatpush1.bf16.msra.mxu0 %v10263_v59  ;;  %v10467_v59 = vld [vmem:[#allocation11 + $0x284] ss:$24 sps:$4 sm:$0xff]  }
 0x5cc   :  { %5556 = vmatprep.subr.bf16.mxu0 %v10273_v47  ;;  %v10472_v47 = vld [vmem:[#allocation11 + $0x280] ss:$24 sps:$4 sm:$0xff]  }
 0x5ce   :  { %4838 = vmatpush1.bf16.msra.mxu1 %v10448_v12 }
 0x5cf   :  { %4839 = vmatprep.subr.bf16.mxu1 %v10451_v21  ;;  %5557 = vmatpush1.bf16.msra.mxu0 %v10275_v57  ;;  %v10475_v57 = vld [vmem:[#allocation11 + $0x2b4] ss:$24 sps:$4 sm:$0xff]  }
 0x5d0   :  { %5558 = vmatprep.subr.bf16.mxu0 %v10285_v7  ;;  %v10480_v7 = vld [vmem:[#allocation11 + $0x2b0] ss:$24 sps:$4 sm:$0xff]  }
 0x5d2   :  { %4840 = vmatpush1.bf16.msra.mxu1 %v10456_v26 }
 0x5d3   :  { %4841 = vmatprep.subr.bf16.mxu1 %v10459_v28  ;;  %5559 = vmatpush1.bf16.msra.mxu0 %v10287_v11  ;;  %v10483_v11 = vld [vmem:[#allocation11 + $0x2e4] ss:$24 sps:$4 sm:$0xff]  }
 0x5d4   :  { %5560 = vmatprep.subr.bf16.mxu0 %v10298_v0  ;;  %v10488_v0 = vld [vmem:[#allocation11 + $0x2e0] ss:$24 sps:$4 sm:$0xff]  }
 0x5d6   :  { %4842 = vmatpush1.bf16.msra.mxu1 %v10464_v22 }
 0x5d7   :  { %4843 = vmatprep.subr.bf16.mxu1 %v10467_v59  ;;  %5561 = vmatpush1.bf16.msra.mxu0 %v10296_v23  ;;  %v11193_v23 = vld [vmem:[#allocation18_spill] sm:$0xff] }
 0x5d8   :  { %5562 = vmatprep.subr.bf16.mxu0 %v10305_v40  ;;  %v11196_v40 = vld [vmem:[#allocation21_spill] sm:$0xff] }
 0x5da   :  { %4844 = vmatpush1.bf16.msra.mxu1 %v10472_v47 }
 0x5db   :  { %4845 = vmatprep.subr.bf16.mxu1 %v10475_v57  ;;  %5563 = vmatpush1.bf16.msra.mxu0 %v10312_v55  ;;  %v11203_v55 = vld [vmem:[#allocation28_spill] sm:$0xff] }
 0x5dc   :  { %5564 = vmatprep.subr.bf16.mxu0 %v10318_v14  ;;  %v11205_v14 = vld [vmem:[#allocation30_spill] sm:$0xff] }
 0x5de   :  { %4846 = vmatpush1.bf16.msra.mxu1 %v10480_v7 }
 0x5df   :  { %4847 = vmatprep.subr.bf16.mxu1 %v10483_v11  ;;  %5565 = vmatpush1.bf16.msra.mxu0 %v10324_v49  ;;  %v11192_v49 = vld [vmem:[#allocation17_spill] sm:$0xff] }
 0x5e0   :  { %5566 = vmatprep.subr.bf16.mxu0 %v10330_v4  ;;  %v11195_v4 = vld [vmem:[#allocation20_spill] sm:$0xff] }
 0x5e2   :  { %4848 = vmatpush1.bf16.msra.mxu1 %v10488_v0 }
 0x5e3   :  { %5577 = vmatprep.subr.bf16.mxu1 %v10159_v8  ;;  %5567 = vmatpush1.bf16.msra.mxu0 %v10336_v58  ;;  %v11194_v8 = vld [vmem:[#allocation19_spill] sm:$0xff]  ;;  %v11197_v58 = vld [vmem:[#allocation22_spill] sm:$0xff] }
 0x5e4   :  { %5618 = vmatprep.subr.bf16.mxu0 %v10345_v15  ;;  %v11204_v15 = vld [vmem:[#allocation29_spill] sm:$0xff] }
 0x5e5   :  { %4850 = vmatmul.mubr.bf16.vlgmr.msra.gmra.mrb[32].mxu1 %v10369_v56  ;;  %v11217_v56 = vld [vmem:[#allocation42_spill] sm:$0xff] }
 0x5e6   :  { %5578 = vmatpush1.bf16.msra.mxu1 %v10157_v29  ;;  %v11198_v29 = vld [vmem:[#allocation23_spill] sm:$0xff] }
 0x5e7   :  { %5579 = vmatprep.subr.bf16.mxu1 %v10164_v27  ;;  %v11199_v27 = vld [vmem:[#allocation24_spill] sm:$0xff] }
 0x5ea   :  { %5580 = vmatpush1.bf16.msra.mxu1 %v10172_v35  ;;  %v11200_v35 = vld [vmem:[#allocation25_spill] sm:$0xff] }
 0x5eb   :  { %5581 = vmatprep.subr.bf16.mxu1 %v10177_v61  ;;  %v11201_v61 = vld [vmem:[#allocation26_spill] sm:$0xff] }
 0x5ee   :  { %5582 = vmatpush1.bf16.msra.mxu1 %v10184_v5  ;;  %v11202_v5 = vld [vmem:[#allocation27_spill] sm:$0xff] }
 0x5ef   :  { %5583 = vmatprep.subr.bf16.mxu1 %v11192_v49 }
 0x5f2   :  { %5584 = vmatpush1.bf16.msra.mxu1 %v11193_v23 }
 0x5f3   :  { %5585 = vmatprep.subr.bf16.mxu1 %v11194_v8 }
 0x5f6   :  { %5586 = vmatpush1.bf16.msra.mxu1 %v11195_v4 }
 0x5f7   :  { %5587 = vmatprep.subr.bf16.mxu1 %v11196_v40 }
 0x5fa   :  { %5588 = vmatpush1.bf16.msra.mxu1 %v11197_v58 }
 0x5fb   :  { %5589 = vmatprep.subr.bf16.mxu1 %v11198_v29 }
 0x5fe   :  { %5590 = vmatpush1.bf16.msra.mxu1 %v11199_v27 }
 0x5ff   :  { %5591 = vmatprep.subr.bf16.mxu1 %v11200_v35 }
 0x602   :  { %5592 = vmatpush1.bf16.msra.mxu1 %v11201_v61 }
 0x603   :  { %5593 = vmatprep.subr.bf16.mxu1 %v11202_v5 }
 0x606   :  { %5594 = vmatpush1.bf16.msra.mxu1 %v11203_v55  ;;  %v4144_v55 = vld [vmem:[#allocation3 + $0x4] ss:$8 sm:$0x30] }
 0x607   :  { %5595 = vmatprep.subr.bf16.mxu1 %v11204_v15 }
 0x60a   :  { %5596 = vmatpush1.bf16.msra.mxu1 %v11205_v14  ;;  %v4143_v14 = vld [vmem:[#allocation3 + $0x4] ss:$8 sm:$0xf] }
 0x60b   :  { %5597 = vmatprep.subr.bf16.mxu1 %v11206_v10  ;;  %v4145_v10 = vor.u32 %v4144_v55, %v4143_v14 }
 0x60d   :  { %v4932_v55 = vrot.slane %v4145_v10, 4 }
 0x60e   :  { %5598 = vmatpush1.bf16.msra.mxu1 %v11207_v37 }
 0x60f   :  { %5599 = vmatprep.subr.bf16.mxu1 %v11208_v24 }
 0x612   :  { %5600 = vmatpush1.bf16.msra.mxu1 %v11209_v43 }
 0x613   :  { %5601 = vmatprep.subr.bf16.mxu1 %v11210_v18 }
 0x616   :  { %5602 = vmatpush1.bf16.msra.mxu1 %v11211_v6  ;;  %v4884_v6 = vrot.slane %v4145_v10, 2 }
 0x617   :  { %5603 = vmatprep.subr.bf16.mxu1 %v11212_v19 }
 0x61a   :  { %5604 = vmatpush1.bf16.msra.mxu1 %v11213_v60 }
 0x61b   :  { %5605 = vmatprep.subr.bf16.mxu1 %v11214_v3 }
 0x61e   :  { %5606 = vmatpush1.bf16.msra.mxu1 %v11215_v34 }
 0x61f   :  { %5607 = vmatprep.subr.bf16.mxu1 %v11216_v44 }
 0x622   :  { %5608 = vmatpush1.bf16.msra.mxu1 %v11217_v56 }
 0x678   :  { %v4769_v49 = vpop.f32.mrb[28].mxu1  ;;  %v4810_v23 = vpop.f32.mrb[32].mxu0 }
 0x679   :  { %v4771_v8 = vpop.f32.mrb[29].mxu1  ;;  %v4812_v4 = vpop.f32.mrb[33].mxu0 }
 0x67a   :  { %v4860_v40 = vcombine.low %v4769_v49, %v4771_v8  ;;  %v4888_v58 = vcombine.low %v4810_v23, %v4812_v4  ;;  %v4773_v29 = vpop.f32.mrb[30].mxu1  ;;  %v4814_v27 = vpop.f32.mrb[34].mxu0 }
 0x67b   :  { %v4774_v35 = vpop.f32.mrb[31].mxu1  ;;  %v4815_v61 = vpop.f32.mrb[35].mxu0 }
 0x67c   :  { %v4867_v5 = vrot.slane %v4860_v40, %v9678_v2  ;;  %v4895_v24 = vrot.slane %v4888_v58, %v9678_v2 }
 0x67e   :  { %v4874_v15 = vrot.slane %v4867_v5, %v9678_v2  ;;  %v4902_v18 = vrot.slane %v4895_v24, %v9678_v2 }
 0x680   :  { %v4876_v37 = vadd.f32 %v4874_v15, %v4145_v10  ;;  %v4904_v19 = vadd.f32 %v4902_v18, %v4884_v6 }
 0x682   :  { %v7994_v43 = vmul.f32 -1.442695, %v4876_v37  ;;  %v7995_v60 = vmul.f32 -1.442695, %v4904_v19 }
 0x684   :  { %9068 = vpow2.f32 %v7994_v43 }
 0x685   :  { %9070 = vpow2.f32 %v7995_v60 }
 0x68e   :  { %v9069_v3 = vpop.eup %9068 }
 0x68f   :  { %v4880_v34 = vadd.f32 1.0, %v9069_v3  ;;  %v9071_v4 = vpop.eup %9070 }
 0x690   :  { %v4908_v29 = vadd.f32 1.0, %v9071_v4  ;;  %v10690_v4 = vld [vmem:[#allocation11 + $0x1bc] ss:$24 sps:$4 sm:$0xff]  }
 0x691   :  { %9072 = vrcp.f32 %v4880_v34  ;;  %v10674_v34 = vld [vmem:[#allocation11 + $0x184] ss:$24 sps:$4 sm:$0xff]   ;;  %11230 = vst [vmem:[#allocation29_spill] sm:$0xff] %v10690_v4 }
 0x692   :  { %9074 = vrcp.f32 %v4908_v29  ;;  %v10700_v29 = vld [vmem:[#allocation11 + $0x1e0] ss:$24 sps:$4 sm:$0xff]  }
 0x69b   :  { %v9073_v61 = vpop.eup %9072 }
 0x69c   :  { %v9075_v14 = vpop.eup %9074 }
 0x69d   :  { %v4936_v37 = vsub.f32 1.0, %v9075_v14  ;;  %v4938_v18 = vmul.f32 %v9075_v14, %v10358_v52  ;;  %v10578_v52 = vld [vmem:[#allocation11] ss:$24 sps:$4 sm:$0xff]  }
 0x69e   :  { %v10721_v14 = vld [vmem:[#allocation11 + $0x240] ss:$24 sps:$4 sm:$0xff]  }
 0x6b8   :  { %v4851_v44 = vpop.f32.mrb[32].mxu1 }
 0x6b9   :  { %v4911_v56 = vadd.f32 %v4851_v44, %v9686_v33  ;;  %v4853_v49 = vpop.f32.mrb[33].mxu1  ;;  %v10676_v44 = vld [vmem:[#allocation11 + $0x180] ss:$24 sps:$4 sm:$0xff]  }
 0x6ba   :  { %v4912_v23 = vadd.f32 %v4853_v49, %v9689_v36  ;;  %v4855_v8 = vpop.f32.mrb[34].mxu1  ;;  %v10681_v49 = vld [vmem:[#allocation11 + $0x188] ss:$24 sps:$4 sm:$0xff]  }
 0x6bb   :  { %v4856_v40 = vpop.f32.mrb[35].mxu1  ;;  %11229 = vst [vmem:[#allocation28_spill] sm:$0xff] %v10681_v49  ;;  %v10688_v8 = vld [vmem:[#allocation11 + $0x1b0] ss:$24 sps:$4 sm:$0xff]  }
 0x6bc   :  { %v4915_v58 = vcombine.low %v4911_v56, %v4912_v23  ;;  %v10678_v56 = vld [vmem:[#allocation11 + $0x18c] ss:$24 sps:$4 sm:$0xff]   ;;  %v10693_v40 = vld [vmem:[#allocation11 + $0x1b8] ss:$24 sps:$4 sm:$0xff]  }
 0x6bd   :  { %11228 = vst [vmem:[#allocation27_spill] sm:$0xff] %v10678_v56  ;;  %v10686_v23 = vld [vmem:[#allocation11 + $0x1b4] ss:$24 sps:$4 sm:$0xff]   ;;  %11231 = vst [vmem:[#allocation30_spill] sm:$0xff] %v10693_v40 }
 0x6be   :  { %v4922_v27 = vrot.slane %v4915_v58, %v9678_v2  ;;  %v10698_v58 = vld [vmem:[#allocation11 + $0x1e4] ss:$24 sps:$4 sm:$0xff]  }
 0x6c0   :  { %v4929_v35 = vrot.slane %v4922_v27, %v9678_v2  ;;  %v10702_v27 = vld [vmem:[#allocation11 + $0x1ec] ss:$24 sps:$4 sm:$0xff]  }
 0x6c1   :  { %11232 = vst [vmem:[#allocation31_spill] sm:$0xff] %v10702_v27 }
 0x6c2   :  { %v4931_v5 = vmul.f32 %v9073_v61, %v4929_v35  ;;  %v10705_v35 = vld [vmem:[#allocation11 + $0x1e8] ss:$24 sps:$4 sm:$0xff]   ;;  %v10710_v61 = vld [vmem:[#allocation11 + $0x214] ss:$24 sps:$4 sm:$0xff]  }
 0x6c3   :  { %11233 = vst [vmem:[#allocation32_spill] sm:$0xff] %v10705_v35 }
 0x6c4   :  { %v4934_v15 = vadd.f32 %v4932_v55, %v4931_v5  ;;  %v10712_v5 = vld [vmem:[#allocation11 + $0x210] ss:$24 sps:$4 sm:$0xff]   ;;  %v10714_v55 = vld [vmem:[#allocation11 + $0x21c] ss:$24 sps:$4 sm:$0xff]  }
 0x6c5   :  { %11234 = vst [vmem:[#allocation33_spill] sm:$0xff] %v10714_v55 }
 0x6c6   :  { %9076 = vtanh.f32 %v4934_v15  ;;  %v10717_v15 = vld [vmem:[#allocation11 + $0x218] ss:$24 sps:$4 sm:$0xff]  }
 0x6c7   :  { %11235 = vst [vmem:[#allocation34_spill] sm:$0xff] %v10717_v15 }
 0x6d0   :  { %v9077_v24 = vpop.eup %9076 }
 0x6d1   :  { %v4937_v43 = vmul.f32 %v9077_v24, %v4936_v37  ;;  %v10723_v37 = vld [vmem:[#allocation11 + $0x244] ss:$24 sps:$4 sm:$0xff]   ;;  %v10726_v24 = vld [vmem:[#allocation11 + $0x248] ss:$24 sps:$4 sm:$0xff]  }
 0x6d2   :  { %11236 = vst [vmem:[#allocation35_spill] sm:$0xff] %v10726_v24 }
 0x6d3   :  { %v10538_v6 = vadd.f32 %v4938_v18, %v4937_v43  ;;  %v10728_v43 = vld [vmem:[#allocation11 + $0x24c] ss:$24 sps:$4 sm:$0xff]  }
 0x6d4   :  { %11237 = vst [vmem:[#allocation36_spill] sm:$0xff] %v10728_v43  ;;  %v10730_v18 = vld [vmem:[#allocation11 + $0x274] ss:$24 sps:$4 sm:$0xff]  }
 0x6d5   :  { %v4955_v19 = vrot.slane %v10538_v6, %v9446_v42  ;;  %4941 = vst.msk [vmem:[#allocation12 + $0x4] ss:$8 sm:$0x3] %vm9406_vm0, %v10538_v6  ;;  %v4951_v10 = vrot.slane %v10538_v6, %v9459_v16 }
 0x6d7   :  { %v4959_v60 = vpack.c.bf16 %v4955_v19, %v4955_v19  ;;  %v4958_v3 = vpack.c.bf16 %v4951_v10, %v4951_v10  ;;  %v10733_v19 = vld [vmem:[#allocation11 + $0x27c] ss:$24 sps:$4 sm:$0xff]   ;;  %v10737_v10 = vld [vmem:[#allocation11 + $0x270] ss:$24 sps:$4 sm:$0xff]  }
 0x6d8   :  { %11238 = vst [vmem:[#allocation37_spill] sm:$0xff] %v10733_v19 }
 0x6d9   :  { %5568 = vmatprep.mubr.bf16.mxu0 %v4959_v60  ;;  %5609 = vmatprep.mubr.bf16.mxu1 %v4959_v60 }
 0x6da   :  { %5569 = vmatmul.mubr.bf16.vlgmr.msra.gmra.mrb[36].mxu0 %v4958_v3  ;;  %5610 = vmatmul.mubr.bf16.vlgmr.msra.gmra.mrb[36].mxu1 %v4958_v3 }
 0x6db   :  { %5619 = vmatpush1.bf16.msra.mxu0 %v10367_v63  ;;  %5650 = vmatprep.mubr.bf16.mxu0 %v4959_v60  ;;  %v10580_v63 = vld [vmem:[#allocation11 + $0x4] ss:$24 sps:$4 sm:$0xff]   ;;  %v10741_v60 = vld [vmem:[#allocation11 + $0x278] ss:$24 sps:$4 sm:$0xff]  }
 0x6dc   :  { %5620 = vmatprep.subr.bf16.mxu0 %v10371_v51  ;;  %v10582_v51 = vld [vmem:[#allocation11 + $0x8] ss:$24 sps:$4 sm:$0xff]   ;;  %6337 = vmatprep.subr.bf16.mxu1 %v10580_v63  ;;  %11239 = vst [vmem:[#allocation38_spill] sm:$0xff] %v10741_v60 }
 0x6dd   :  { %6338 = vmatpush1.bf16.msra.mxu1 %v10578_v52 }
 0x6df   :  { %5621 = vmatpush1.bf16.msra.mxu0 %v10376_v41  ;;  %v10584_v41 = vld [vmem:[#allocation11 + $0xc] ss:$24 sps:$4 sm:$0xff]  }
 0x6e0   :  { %5622 = vmatprep.subr.bf16.mxu0 %v10379_v50  ;;  %v10586_v50 = vld [vmem:[#allocation11 + $0x34] ss:$24 sps:$4 sm:$0xff]  }
 0x6e1   :  { %6339 = vmatprep.subr.bf16.mxu1 %v10586_v50 }
 0x6e3   :  { %5623 = vmatpush1.bf16.msra.mxu0 %v10384_v31  ;;  %v10589_v31 = vld [vmem:[#allocation11 + $0x3c] ss:$24 sps:$4 sm:$0xff]  }
 0x6e4   :  { %5624 = vmatprep.subr.bf16.mxu0 %v10387_v13  ;;  %v10593_v13 = vld [vmem:[#allocation11 + $0x30] ss:$24 sps:$4 sm:$0xff]  }
 0x6e5   :  { %6340 = vmatpush1.bf16.msra.mxu1 %v10593_v13 }
 0x6e7   :  { %5625 = vmatpush1.bf16.msra.mxu0 %v10392_v25  ;;  %v10597_v25 = vld [vmem:[#allocation11 + $0x38] ss:$24 sps:$4 sm:$0xff]  }
 0x6e8   :  { %5626 = vmatprep.subr.bf16.mxu0 %v10395_v32  ;;  %v10599_v32 = vld [vmem:[#allocation11 + $0x64] ss:$24 sps:$4 sm:$0xff]  }
 0x6e9   :  { %6341 = vmatprep.subr.bf16.mxu1 %v10599_v32 }
 0x6eb   :  { %5627 = vmatpush1.bf16.msra.mxu0 %v10400_v46  ;;  %v10602_v46 = vld [vmem:[#allocation11 + $0x6c] ss:$24 sps:$4 sm:$0xff]  }
 0x6ec   :  { %5628 = vmatprep.subr.bf16.mxu0 %v10403_v17  ;;  %v10605_v17 = vld [vmem:[#allocation11 + $0x60] ss:$24 sps:$4 sm:$0xff]  }
 0x6ed   :  { %6342 = vmatpush1.bf16.msra.mxu1 %v10605_v17 }
 0x6ef   :  { %5629 = vmatpush1.bf16.msra.mxu0 %v10408_v53  ;;  %v10609_v53 = vld [vmem:[#allocation11 + $0x68] ss:$24 sps:$4 sm:$0xff]  }
 0x6f0   :  { %5630 = vmatprep.subr.bf16.mxu0 %v10411_v1  ;;  %v10611_v1 = vld [vmem:[#allocation11 + $0x94] ss:$24 sps:$4 sm:$0xff]  }
 0x6f1   :  { %6343 = vmatprep.subr.bf16.mxu1 %v10611_v1 }
 0x6f3   :  { %5631 = vmatpush1.bf16.msra.mxu0 %v10416_v9  ;;  %v10614_v9 = vld [vmem:[#allocation11 + $0x9c] ss:$24 sps:$4 sm:$0xff]  }
 0x6f4   :  { %5632 = vmatprep.subr.bf16.mxu0 %v10419_v20  ;;  %11218 = vst [vmem:[#allocation17_spill] sm:$0xff] %v10614_v9  ;;  %v10617_v20 = vld [vmem:[#allocation11 + $0x90] ss:$24 sps:$4 sm:$0xff]  }
 0x6f5   :  { %6344 = vmatpush1.bf16.msra.mxu1 %v10617_v20 }
 0x6f7   :  { %5633 = vmatpush1.bf16.msra.mxu0 %v10424_v39  ;;  %v10621_v39 = vld [vmem:[#allocation11 + $0x98] ss:$24 sps:$4 sm:$0xff]  }
 0x6f8   :  { %5634 = vmatprep.subr.bf16.mxu0 %v10427_v30  ;;  %11219 = vst [vmem:[#allocation18_spill] sm:$0xff] %v10621_v39  ;;  %v10623_v30 = vld [vmem:[#allocation11 + $0xc4] ss:$24 sps:$4 sm:$0xff]  }
 0x6f9   :  { %6345 = vmatprep.subr.bf16.mxu1 %v10623_v30 }
 0x6fb   :  { %5635 = vmatpush1.bf16.msra.mxu0 %v10432_v38  ;;  %v10626_v38 = vld [vmem:[#allocation11 + $0xcc] ss:$24 sps:$4 sm:$0xff]  }
 0x6fc   :  { %5636 = vmatprep.subr.bf16.mxu0 %v10435_v48  ;;  %11220 = vst [vmem:[#allocation19_spill] sm:$0xff] %v10626_v38  ;;  %v10629_v48 = vld [vmem:[#allocation11 + $0xc0] ss:$24 sps:$4 sm:$0xff]  }
 0x6fd   :  { %6346 = vmatpush1.bf16.msra.mxu1 %v10629_v48 }
 0x6ff   :  { %5637 = vmatpush1.bf16.msra.mxu0 %v10440_v54  ;;  %v10633_v54 = vld [vmem:[#allocation11 + $0xc8] ss:$24 sps:$4 sm:$0xff]  }
 0x700   :  { %5638 = vmatprep.subr.bf16.mxu0 %v10443_v62  ;;  %11221 = vst [vmem:[#allocation20_spill] sm:$0xff] %v10633_v54  ;;  %v10635_v62 = vld [vmem:[#allocation11 + $0xf4] ss:$24 sps:$4 sm:$0xff]  }
 0x701   :  { %6347 = vmatprep.subr.bf16.mxu1 %v10635_v62 }
 0x703   :  { %5639 = vmatpush1.bf16.msra.mxu0 %v10448_v12  ;;  %v10638_v12 = vld [vmem:[#allocation11 + $0xfc] ss:$24 sps:$4 sm:$0xff]  }
 0x704   :  { %5640 = vmatprep.subr.bf16.mxu0 %v10451_v21  ;;  %11222 = vst [vmem:[#allocation21_spill] sm:$0xff] %v10638_v12  ;;  %v10641_v21 = vld [vmem:[#allocation11 + $0xf0] ss:$24 sps:$4 sm:$0xff]  }
 0x705   :  { %6348 = vmatpush1.bf16.msra.mxu1 %v10641_v21 }
 0x707   :  { %5641 = vmatpush1.bf16.msra.mxu0 %v10456_v26  ;;  %v10645_v26 = vld [vmem:[#allocation11 + $0xf8] ss:$24 sps:$4 sm:$0xff]  }
 0x708   :  { %5642 = vmatprep.subr.bf16.mxu0 %v10459_v28  ;;  %11223 = vst [vmem:[#allocation22_spill] sm:$0xff] %v10645_v26  ;;  %v10647_v28 = vld [vmem:[#allocation11 + $0x124] ss:$24 sps:$4 sm:$0xff]  }
 0x709   :  { %6349 = vmatprep.subr.bf16.mxu1 %v10647_v28 }
 0x70b   :  { %5643 = vmatpush1.bf16.msra.mxu0 %v10464_v22  ;;  %v10650_v22 = vld [vmem:[#allocation11 + $0x12c] ss:$24 sps:$4 sm:$0xff]  }
 0x70c   :  { %5644 = vmatprep.subr.bf16.mxu0 %v10467_v59  ;;  %11224 = vst [vmem:[#allocation23_spill] sm:$0xff] %v10650_v22  ;;  %v10653_v59 = vld [vmem:[#allocation11 + $0x120] ss:$24 sps:$4 sm:$0xff]  }
 0x70d   :  { %6350 = vmatpush1.bf16.msra.mxu1 %v10653_v59 }
 0x70f   :  { %5645 = vmatpush1.bf16.msra.mxu0 %v10472_v47  ;;  %v10657_v47 = vld [vmem:[#allocation11 + $0x128] ss:$24 sps:$4 sm:$0xff]  }
 0x710   :  { %5646 = vmatprep.subr.bf16.mxu0 %v10475_v57  ;;  %11225 = vst [vmem:[#allocation24_spill] sm:$0xff] %v10657_v47  ;;  %v10659_v57 = vld [vmem:[#allocation11 + $0x154] ss:$24 sps:$4 sm:$0xff]  }
 0x711   :  { %6351 = vmatprep.subr.bf16.mxu1 %v10659_v57 }
 0x713   :  { %5647 = vmatpush1.bf16.msra.mxu0 %v10480_v7  ;;  %v10662_v7 = vld [vmem:[#allocation11 + $0x15c] ss:$24 sps:$4 sm:$0xff]  }
 0x714   :  { %5648 = vmatprep.subr.bf16.mxu0 %v10483_v11  ;;  %11226 = vst [vmem:[#allocation25_spill] sm:$0xff] %v10662_v7  ;;  %v10665_v11 = vld [vmem:[#allocation11 + $0x150] ss:$24 sps:$4 sm:$0xff]  }
 0x715   :  { %6352 = vmatpush1.bf16.msra.mxu1 %v10665_v11 }
 0x716   :  { %6353 = vmatprep.subr.bf16.mxu1 %v10674_v34 }
 0x717   :  { %5649 = vmatpush1.bf16.msra.mxu0 %v10488_v0  ;;  %v10669_v0 = vld [vmem:[#allocation11 + $0x158] ss:$24 sps:$4 sm:$0xff]  }
 0x718   :  { %6378 = vmatprep.subr.bf16.mxu0 %v10584_v41  ;;  %11227 = vst [vmem:[#allocation26_spill] sm:$0xff] %v10669_v0 }
 0x719   :  { %6354 = vmatpush1.bf16.msra.mxu1 %v10676_v44 }
 0x71a   :  { %5651 = vmatmul.mubr.bf16.vlgmr.msra.gmra.mrb[40].mxu0 %v4958_v3  ;;  %6355 = vmatprep.subr.bf16.mxu1 %v10686_v23  ;;  %v10743_v3 = vld [vmem:[#allocation11 + $0x2a4] ss:$24 sps:$4 sm:$0xff]  }
 0x71b   :  { %6379 = vmatpush1.bf16.msra.mxu0 %v10582_v51 }
 0x71c   :  { %6380 = vmatprep.subr.bf16.mxu0 %v10589_v31 }
 0x71d   :  { %6356 = vmatpush1.bf16.msra.mxu1 %v10688_v8 }
 0x71e   :  { %6357 = vmatprep.subr.bf16.mxu1 %v10698_v58 }
 0x71f   :  { %6381 = vmatpush1.bf16.msra.mxu0 %v10597_v25 }
 0x720   :  { %6382 = vmatprep.subr.bf16.mxu0 %v10602_v46 }
 0x721   :  { %6358 = vmatpush1.bf16.msra.mxu1 %v10700_v29 }
 0x722   :  { %6359 = vmatprep.subr.bf16.mxu1 %v10710_v61 }
 0x723   :  { %6383 = vmatpush1.bf16.msra.mxu0 %v10609_v53 }
 0x724   :  { %6384 = vmatprep.subr.bf16.mxu0 %v10614_v9 }
 0x725   :  { %6360 = vmatpush1.bf16.msra.mxu1 %v10712_v5 }
 0x726   :  { %6361 = vmatprep.subr.bf16.mxu1 %v10723_v37 }
 0x727   :  { %6385 = vmatpush1.bf16.msra.mxu0 %v10621_v39 }
 0x728   :  { %6386 = vmatprep.subr.bf16.mxu0 %v10626_v38 }
 0x729   :  { %6362 = vmatpush1.bf16.msra.mxu1 %v10721_v14 }
 0x72a   :  { %6363 = vmatprep.subr.bf16.mxu1 %v10730_v18 }
 0x72b   :  { %6387 = vmatpush1.bf16.msra.mxu0 %v10633_v54 }
 0x72c   :  { %6388 = vmatprep.subr.bf16.mxu0 %v10638_v12  ;;  %v4944_v12 = vld [vmem:[#allocation3 + $0x5] ss:$8 sm:$0xf] }
 0x72d   :  { %6364 = vmatpush1.bf16.msra.mxu1 %v10737_v10 }
 0x72e   :  { %6365 = vmatprep.subr.bf16.mxu1 %v10743_v3 }
 0x72f   :  { %6389 = vmatpush1.bf16.msra.mxu0 %v10645_v26  ;;  %v4945_v26 = vld [vmem:[#allocation3 + $0x5] ss:$8 sm:$0x30] }
 0x730   :  { %6390 = vmatprep.subr.bf16.mxu0 %v10650_v22  ;;  %v4946_v54 = vor.u32 %v4945_v26, %v4944_v12 }
 0x733   :  { %6391 = vmatpush1.bf16.msra.mxu0 %v10657_v47 }
 0x734   :  { %6392 = vmatprep.subr.bf16.mxu0 %v10662_v7 }
 0x737   :  { %6393 = vmatpush1.bf16.msra.mxu0 %v10669_v0 }
 0x738   :  { %6394 = vmatprep.subr.bf16.mxu0 %v10678_v56 }
 0x73b   :  { %6395 = vmatpush1.bf16.msra.mxu0 %v10681_v49 }
 0x73c   :  { %6396 = vmatprep.subr.bf16.mxu0 %v10690_v4 }
 0x73f   :  { %6397 = vmatpush1.bf16.msra.mxu0 %v10693_v40 }
 0x740   :  { %6398 = vmatprep.subr.bf16.mxu0 %v10702_v27  ;;  %v10765_v27 = vld [vmem:[#allocation11 + $0x2d8] ss:$24 sps:$4 sm:$0xff]  }
 0x741   :  { %11243 = vst [vmem:[#allocation42_spill] sm:$0xff] %v10765_v27 }
 0x743   :  { %6399 = vmatpush1.bf16.msra.mxu0 %v10705_v35  ;;  %v10758_v35 = vld [vmem:[#allocation11 + $0x2dc] ss:$24 sps:$4 sm:$0xff]  }
 0x744   :  { %6400 = vmatprep.subr.bf16.mxu0 %v10714_v55  ;;  %v10749_v55 = vld [vmem:[#allocation11 + $0x2a0] ss:$24 sps:$4 sm:$0xff]   ;;  %11242 = vst [vmem:[#allocation41_spill] sm:$0xff] %v10758_v35 }
 0x745   :  { %6366 = vmatpush1.bf16.msra.mxu1 %v10749_v55 }
 0x747   :  { %6401 = vmatpush1.bf16.msra.mxu0 %v10717_v15  ;;  %v10746_v15 = vld [vmem:[#allocation11 + $0x2ac] ss:$24 sps:$4 sm:$0xff]  }
 0x748   :  { %6402 = vmatprep.subr.bf16.mxu0 %v10728_v43  ;;  %11240 = vst [vmem:[#allocation39_spill] sm:$0xff] %v10746_v15  ;;  %v10753_v43 = vld [vmem:[#allocation11 + $0x2a8] ss:$24 sps:$4 sm:$0xff]  }
 0x749   :  { %11241 = vst [vmem:[#allocation40_spill] sm:$0xff] %v10753_v43 }
 0x74b   :  { %6403 = vmatpush1.bf16.msra.mxu0 %v10726_v24  ;;  %v10755_v24 = vld [vmem:[#allocation11 + $0x2d4] ss:$24 sps:$4 sm:$0xff]  }
 0x74c   :  { %6404 = vmatprep.subr.bf16.mxu0 %v10733_v19  ;;  %v10761_v19 = vld [vmem:[#allocation11 + $0x2d0] ss:$24 sps:$4 sm:$0xff]   ;;  %6367 = vmatprep.subr.bf16.mxu1 %v10755_v24 }
 0x74d   :  { %6368 = vmatpush1.bf16.msra.mxu1 %v10761_v19 }
 0x74f   :  { %6405 = vmatpush1.bf16.msra.mxu0 %v10741_v60  ;;  %v10770_v60 = vld [vmem:[#allocation11 + $0x14] ss:$24 sps:$4 sm:$0xff]  }
 0x750   :  { %6406 = vmatprep.subr.bf16.mxu0 %v10746_v15  ;;  %6419 = vmatprep.subr.bf16.mxu1 %v10770_v60 }
 0x753   :  { %6407 = vmatpush1.bf16.msra.mxu0 %v10753_v43 }
 0x754   :  { %6408 = vmatprep.subr.bf16.mxu0 %v10758_v35 }
 0x757   :  { %6409 = vmatpush1.bf16.msra.mxu0 %v10765_v27 }
 0x758   :  { %7138 = vmatprep.subr.bf16.mxu0 %v10580_v63 }
 0x7ad   :  { %v5570_v15 = vpop.f32.mrb[36].mxu0  ;;  %v5611_v40 = vpop.f32.mrb[36].mxu1 }
 0x7ae   :  { %v5572_v4 = vpop.f32.mrb[37].mxu0  ;;  %v5613_v43 = vpop.f32.mrb[37].mxu1 }
 0x7af   :  { %v5661_v49 = vcombine.low %v5570_v15, %v5572_v4  ;;  %v5689_v56 = vcombine.low %v5611_v40, %v5613_v43  ;;  %v5574_v0 = vpop.f32.mrb[38].mxu0  ;;  %v5615_v7 = vpop.f32.mrb[38].mxu1  ;;  %v5685_v4 = vrot.slane %v4946_v54, 2 }
 0x7b0   :  { %v5575_v47 = vpop.f32.mrb[39].mxu0  ;;  %v5616_v35 = vpop.f32.mrb[39].mxu1 }
 0x7b1   :  { %v5668_v22 = vrot.slane %v5661_v49, %v9678_v2  ;;  %v5696_v38 = vrot.slane %v5689_v56, %v9678_v2 }
 0x7b3   :  { %v5675_v27 = vrot.slane %v5668_v22, %v9678_v2  ;;  %v5703_v9 = vrot.slane %v5696_v38, %v9678_v2 }
 0x7b5   :  { %v5677_v63 = vadd.f32 %v5675_v27, %v4946_v54  ;;  %v5705_v40 = vadd.f32 %v5703_v9, %v5685_v4  ;;  %v5733_v4 = vrot.slane %v4946_v54, 4 }
 0x7b7   :  { %v8092_v39 = vmul.f32 -1.442695, %v5677_v63  ;;  %v8093_v0 = vmul.f32 -1.442695, %v5705_v40 }
 0x7b9   :  { %9078 = vpow2.f32 %v8092_v39 }
 0x7ba   :  { %9080 = vpow2.f32 %v8093_v0 }
 0x7c3   :  { %v9079_v7 = vpop.eup %9078 }
 0x7c4   :  { %v5681_v47 = vadd.f32 1.0, %v9079_v7  ;;  %v9081_v27 = vpop.eup %9080 }
 0x7c5   :  { %v5709_v43 = vadd.f32 1.0, %v9081_v27  ;;  %v10792_v27 = vld [vmem:[#allocation11 + $0x10] ss:$24 sps:$4 sm:$0xff]  }
 0x7c6   :  { %9082 = vrcp.f32 %v5681_v47 }
 0x7c7   :  { %9084 = vrcp.f32 %v5709_v43  ;;  %v10804_v43 = vld [vmem:[#allocation11 + $0x74] ss:$24 sps:$4 sm:$0xff]  }
 0x7d0   :  { %v9083_v38 = vpop.eup %9082 }
 0x7d1   :  { %v9085_v0 = vpop.eup %9084 }
 0x7d2   :  { %v5737_v7 = vsub.f32 1.0, %v9085_v0 }
 0x7ed   :  { %v5652_v49 = vpop.f32.mrb[40].mxu0 }
 0x7ee   :  { %v5712_v35 = vadd.f32 %v5652_v49, %v9686_v33  ;;  %v5654_v22 = vpop.f32.mrb[41].mxu0 }
 0x7ef   :  { %v5713_v12 = vadd.f32 %v5654_v22, %v9689_v36  ;;  %v5656_v26 = vpop.f32.mrb[42].mxu0  ;;  %v5739_v22 = vmul.f32 %v9085_v0, %v10538_v6  ;;  %v10801_v6 = vld [vmem:[#allocation11 + $0x40] ss:$24 sps:$4 sm:$0xff]  }
 0x7f0   :  { %v5657_v56 = vpop.f32.mrb[43].mxu0  ;;  %v11261_v0 = vld [vmem:[#allocation34_spill] sm:$0xff] }
 0x7f1   :  { %v5716_v15 = vcombine.low %v5712_v35, %v5713_v12 }
 0x7f3   :  { %v5723_v39 = vrot.slane %v5716_v15, %v9678_v2  ;;  %v10796_v15 = vld [vmem:[#allocation11 + $0x44] ss:$24 sps:$4 sm:$0xff]  }
 0x7f5   :  { %v5730_v9 = vrot.slane %v5723_v39, %v9678_v2  ;;  %v10809_v39 = vld [vmem:[#allocation11 + $0x70] ss:$24 sps:$4 sm:$0xff]  }
 0x7f7   :  { %v5732_v63 = vmul.f32 %v9083_v38, %v5730_v9  ;;  %v10812_v9 = vld [vmem:[#allocation11 + $0xa4] ss:$24 sps:$4 sm:$0xff]   ;;  %v10817_v38 = vld [vmem:[#allocation11 + $0xa0] ss:$24 sps:$4 sm:$0xff]  }
 0x7f9   :  { %v5735_v40 = vadd.f32 %v5733_v4, %v5732_v63  ;;  %v11258_v63 = vld [vmem:[#allocation31_spill] sm:$0xff]  ;;  %v11259_v4 = vld [vmem:[#allocation32_spill] sm:$0xff] }
 0x7fb   :  { %9086 = vtanh.f32 %v5735_v40  ;;  %v11260_v40 = vld [vmem:[#allocation33_spill] sm:$0xff] }
 0x805   :  { %v9087_v47 = vpop.eup %9086 }
 0x806   :  { %v5738_v49 = vmul.f32 %v9087_v47, %v5737_v7  ;;  %v11262_v7 = vld [vmem:[#allocation36_spill] sm:$0xff]  ;;  %v11263_v47 = vld [vmem:[#allocation35_spill] sm:$0xff] }
 0x808   :  { %v10783_v26 = vadd.f32 %v5739_v22, %v5738_v49  ;;  %v11264_v49 = vld [vmem:[#allocation37_spill] sm:$0xff]  ;;  %v11265_v22 = vld [vmem:[#allocation38_spill] sm:$0xff] }
 0x80a   :  { %v5756_v35 = vrot.slane %v10783_v26, %v9446_v42  ;;  %5742 = vst.msk [vmem:[#allocation12 + $0x5] ss:$8 sm:$0x3] %vm9406_vm0, %v10783_v26  ;;  %v5752_v54 = vrot.slane %v10783_v26, %v9459_v16 }
 0x80c   :  { %v5760_v12 = vpack.c.bf16 %v5756_v35, %v5756_v35  ;;  %v10794_v56 = vpack.c.bf16 %v5752_v54, %v5752_v54  ;;  %v11266_v35 = vld [vmem:[#allocation39_spill] sm:$0xff]  ;;  %v11267_v54 = vld [vmem:[#allocation40_spill] sm:$0xff] }
 0x80e   :  { %6369 = vmatprep.mubr.bf16.mxu1 %v5760_v12  ;;  %6410 = vmatprep.mubr.bf16.mxu0 %v5760_v12 }
 0x80f   :  { %6370 = vmatmul.mubr.bf16.vlgmr.msra.gmra.mrb[40].mxu1 %v10794_v56  ;;  %6411 = vmatmul.mubr.bf16.vlgmr.msra.gmra.mrb[44].mxu0 %v10794_v56 }
 0x810   :  { %6420 = vmatpush1.bf16.msra.mxu1 %v10792_v27  ;;  %6451 = vmatprep.mubr.bf16.mxu1 %v5760_v12  ;;  %v11268_v12 = vld [vmem:[#allocation41_spill] sm:$0xff] }
 0x811   :  { %6421 = vmatprep.subr.bf16.mxu1 %v10796_v15  ;;  %7139 = vmatpush1.bf16.msra.mxu0 %v10578_v52  ;;  %v10820_v52 = vld [vmem:[#allocation11 + $0xd4] ss:$24 sps:$4 sm:$0xff]  }
 0x812   :  { %7140 = vmatprep.subr.bf16.mxu0 %v10586_v50  ;;  %v10825_v50 = vld [vmem:[#allocation11 + $0xd0] ss:$24 sps:$4 sm:$0xff]  }
 0x814   :  { %6422 = vmatpush1.bf16.msra.mxu1 %v10801_v6 }
 0x815   :  { %6423 = vmatprep.subr.bf16.mxu1 %v10804_v43  ;;  %7141 = vmatpush1.bf16.msra.mxu0 %v10593_v13  ;;  %v10828_v13 = vld [vmem:[#allocation11 + $0x104] ss:$24 sps:$4 sm:$0xff]  }
 0x816   :  { %7142 = vmatprep.subr.bf16.mxu0 %v10599_v32  ;;  %v10833_v32 = vld [vmem:[#allocation11 + $0x100] ss:$24 sps:$4 sm:$0xff]  }
 0x818   :  { %6424 = vmatpush1.bf16.msra.mxu1 %v10809_v39 }
 0x819   :  { %6425 = vmatprep.subr.bf16.mxu1 %v10812_v9  ;;  %7143 = vmatpush1.bf16.msra.mxu0 %v10605_v17  ;;  %v10836_v17 = vld [vmem:[#allocation11 + $0x134] ss:$24 sps:$4 sm:$0xff]  }
 0x81a   :  { %7144 = vmatprep.subr.bf16.mxu0 %v10611_v1  ;;  %v10841_v1 = vld [vmem:[#allocation11 + $0x130] ss:$24 sps:$4 sm:$0xff]  }
 0x81c   :  { %6426 = vmatpush1.bf16.msra.mxu1 %v10817_v38 }
 0x81d   :  { %6427 = vmatprep.subr.bf16.mxu1 %v10820_v52  ;;  %7145 = vmatpush1.bf16.msra.mxu0 %v10617_v20  ;;  %v10844_v20 = vld [vmem:[#allocation11 + $0x164] ss:$24 sps:$4 sm:$0xff]  }
 0x81e   :  { %7146 = vmatprep.subr.bf16.mxu0 %v10623_v30  ;;  %v10849_v30 = vld [vmem:[#allocation11 + $0x160] ss:$24 sps:$4 sm:$0xff]  }
 0x820   :  { %6428 = vmatpush1.bf16.msra.mxu1 %v10825_v50 }
 0x821   :  { %6429 = vmatprep.subr.bf16.mxu1 %v10828_v13  ;;  %7147 = vmatpush1.bf16.msra.mxu0 %v10629_v48  ;;  %v10852_v48 = vld [vmem:[#allocation11 + $0x194] ss:$24 sps:$4 sm:$0xff]  }
 0x822   :  { %7148 = vmatprep.subr.bf16.mxu0 %v10635_v62  ;;  %v10857_v62 = vld [vmem:[#allocation11 + $0x190] ss:$24 sps:$4 sm:$0xff]  }
 0x824   :  { %6430 = vmatpush1.bf16.msra.mxu1 %v10833_v32 }
 0x825   :  { %6431 = vmatprep.subr.bf16.mxu1 %v10836_v17  ;;  %7149 = vmatpush1.bf16.msra.mxu0 %v10641_v21  ;;  %v10860_v21 = vld [vmem:[#allocation11 + $0x1c4] ss:$24 sps:$4 sm:$0xff]  }
 0x826   :  { %7150 = vmatprep.subr.bf16.mxu0 %v10647_v28  ;;  %v10865_v28 = vld [vmem:[#allocation11 + $0x1c0] ss:$24 sps:$4 sm:$0xff]  }
 0x828   :  { %6432 = vmatpush1.bf16.msra.mxu1 %v10841_v1 }
 0x829   :  { %6433 = vmatprep.subr.bf16.mxu1 %v10844_v20  ;;  %7151 = vmatpush1.bf16.msra.mxu0 %v10653_v59  ;;  %v10868_v59 = vld [vmem:[#allocation11 + $0x1f4] ss:$24 sps:$4 sm:$0xff]  }
 0x82a   :  { %7152 = vmatprep.subr.bf16.mxu0 %v10659_v57  ;;  %v10873_v57 = vld [vmem:[#allocation11 + $0x1f0] ss:$24 sps:$4 sm:$0xff]  }
 0x82c   :  { %6434 = vmatpush1.bf16.msra.mxu1 %v10849_v30 }
 0x82d   :  { %6435 = vmatprep.subr.bf16.mxu1 %v10852_v48  ;;  %7153 = vmatpush1.bf16.msra.mxu0 %v10665_v11  ;;  %v10876_v11 = vld [vmem:[#allocation11 + $0x224] ss:$24 sps:$4 sm:$0xff]  }
 0x82e   :  { %7154 = vmatprep.subr.bf16.mxu0 %v10674_v34  ;;  %v10881_v34 = vld [vmem:[#allocation11 + $0x220] ss:$24 sps:$4 sm:$0xff]  }
 0x830   :  { %6436 = vmatpush1.bf16.msra.mxu1 %v10857_v62 }
 0x831   :  { %6437 = vmatprep.subr.bf16.mxu1 %v10860_v21  ;;  %7155 = vmatpush1.bf16.msra.mxu0 %v10676_v44  ;;  %v10884_v44 = vld [vmem:[#allocation11 + $0x254] ss:$24 sps:$4 sm:$0xff]  }
 0x832   :  { %7156 = vmatprep.subr.bf16.mxu0 %v10686_v23  ;;  %v10889_v23 = vld [vmem:[#allocation11 + $0x250] ss:$24 sps:$4 sm:$0xff]  }
 0x834   :  { %6438 = vmatpush1.bf16.msra.mxu1 %v10865_v28 }
 0x835   :  { %6439 = vmatprep.subr.bf16.mxu1 %v10868_v59  ;;  %7157 = vmatpush1.bf16.msra.mxu0 %v10688_v8  ;;  %v10892_v8 = vld [vmem:[#allocation11 + $0x284] ss:$24 sps:$4 sm:$0xff]  }
 0x836   :  { %7158 = vmatprep.subr.bf16.mxu0 %v10698_v58  ;;  %v10897_v58 = vld [vmem:[#allocation11 + $0x280] ss:$24 sps:$4 sm:$0xff]  }
 0x838   :  { %6440 = vmatpush1.bf16.msra.mxu1 %v10873_v57 }
 0x839   :  { %6441 = vmatprep.subr.bf16.mxu1 %v10876_v11  ;;  %7159 = vmatpush1.bf16.msra.mxu0 %v10700_v29  ;;  %v10900_v29 = vld [vmem:[#allocation11 + $0x2b4] ss:$24 sps:$4 sm:$0xff]  }
 0x83a   :  { %7160 = vmatprep.subr.bf16.mxu0 %v10710_v61  ;;  %v10905_v61 = vld [vmem:[#allocation11 + $0x2b0] ss:$24 sps:$4 sm:$0xff]  }
 0x83c   :  { %6442 = vmatpush1.bf16.msra.mxu1 %v10881_v34 }
 0x83d   :  { %6443 = vmatprep.subr.bf16.mxu1 %v10884_v44  ;;  %7161 = vmatpush1.bf16.msra.mxu0 %v10712_v5  ;;  %v10908_v5 = vld [vmem:[#allocation11 + $0x2e4] ss:$24 sps:$4 sm:$0xff]  }
 0x83e   :  { %7162 = vmatprep.subr.bf16.mxu0 %v10723_v37  ;;  %v10913_v37 = vld [vmem:[#allocation11 + $0x2e0] ss:$24 sps:$4 sm:$0xff]  }
 0x840   :  { %6444 = vmatpush1.bf16.msra.mxu1 %v10889_v23 }
 0x841   :  { %6445 = vmatprep.subr.bf16.mxu1 %v10892_v8  ;;  %7163 = vmatpush1.bf16.msra.mxu0 %v10721_v14  ;;  %v11245_v14 = vld [vmem:[#allocation18_spill] sm:$0xff] }
 0x842   :  { %7164 = vmatprep.subr.bf16.mxu0 %v10730_v18  ;;  %v11248_v18 = vld [vmem:[#allocation21_spill] sm:$0xff] }
 0x844   :  { %6446 = vmatpush1.bf16.msra.mxu1 %v10897_v58 }
 0x845   :  { %6447 = vmatprep.subr.bf16.mxu1 %v10900_v29  ;;  %7165 = vmatpush1.bf16.msra.mxu0 %v10737_v10  ;;  %v11255_v10 = vld [vmem:[#allocation28_spill] sm:$0xff] }
 0x846   :  { %7166 = vmatprep.subr.bf16.mxu0 %v10743_v3  ;;  %v11257_v3 = vld [vmem:[#allocation30_spill] sm:$0xff] }
 0x848   :  { %6448 = vmatpush1.bf16.msra.mxu1 %v10905_v61 }
 0x849   :  { %6449 = vmatprep.subr.bf16.mxu1 %v10908_v5  ;;  %7167 = vmatpush1.bf16.msra.mxu0 %v10749_v55  ;;  %v11244_v55 = vld [vmem:[#allocation17_spill] sm:$0xff] }
 0x84a   :  { %7168 = vmatprep.subr.bf16.mxu0 %v10755_v24  ;;  %v11247_v24 = vld [vmem:[#allocation20_spill] sm:$0xff] }
 0x84c   :  { %6450 = vmatpush1.bf16.msra.mxu1 %v10913_v37 }
 0x84d   :  { %7179 = vmatprep.subr.bf16.mxu1 %v10584_v41  ;;  %7169 = vmatpush1.bf16.msra.mxu0 %v10761_v19  ;;  %v11246_v41 = vld [vmem:[#allocation19_spill] sm:$0xff]  ;;  %v11249_v19 = vld [vmem:[#allocation22_spill] sm:$0xff] }
 0x84e   :  { %7220 = vmatprep.subr.bf16.mxu0 %v10770_v60  ;;  %v11256_v60 = vld [vmem:[#allocation29_spill] sm:$0xff] }
 0x84f   :  { %6452 = vmatmul.mubr.bf16.vlgmr.msra.gmra.mrb[44].mxu1 %v10794_v56  ;;  %v11269_v56 = vld [vmem:[#allocation42_spill] sm:$0xff] }
 0x850   :  { %7180 = vmatpush1.bf16.msra.mxu1 %v10582_v51  ;;  %v11250_v51 = vld [vmem:[#allocation23_spill] sm:$0xff] }
 0x851   :  { %7181 = vmatprep.subr.bf16.mxu1 %v10589_v31  ;;  %v11251_v31 = vld [vmem:[#allocation24_spill] sm:$0xff] }
 0x854   :  { %7182 = vmatpush1.bf16.msra.mxu1 %v10597_v25  ;;  %v11252_v25 = vld [vmem:[#allocation25_spill] sm:$0xff] }
 0x855   :  { %7183 = vmatprep.subr.bf16.mxu1 %v10602_v46  ;;  %v11253_v46 = vld [vmem:[#allocation26_spill] sm:$0xff] }
 0x858   :  { %7184 = vmatpush1.bf16.msra.mxu1 %v10609_v53  ;;  %v11254_v53 = vld [vmem:[#allocation27_spill] sm:$0xff] }
 0x859   :  { %7185 = vmatprep.subr.bf16.mxu1 %v11244_v55 }
 0x85c   :  { %7186 = vmatpush1.bf16.msra.mxu1 %v11245_v14 }
 0x85d   :  { %7187 = vmatprep.subr.bf16.mxu1 %v11246_v41 }
 0x860   :  { %7188 = vmatpush1.bf16.msra.mxu1 %v11247_v24 }
 0x861   :  { %7189 = vmatprep.subr.bf16.mxu1 %v11248_v18 }
 0x864   :  { %7190 = vmatpush1.bf16.msra.mxu1 %v11249_v19 }
 0x865   :  { %7191 = vmatprep.subr.bf16.mxu1 %v11250_v51 }
 0x868   :  { %7192 = vmatpush1.bf16.msra.mxu1 %v11251_v31 }
 0x869   :  { %7193 = vmatprep.subr.bf16.mxu1 %v11252_v25 }
 0x86c   :  { %7194 = vmatpush1.bf16.msra.mxu1 %v11253_v46 }
 0x86d   :  { %7195 = vmatprep.subr.bf16.mxu1 %v11254_v53 }
 0x870   :  { %7196 = vmatpush1.bf16.msra.mxu1 %v11255_v10  ;;  %v5746_v10 = vld [vmem:[#allocation3 + $0x6] ss:$8 sm:$0x30] }
 0x871   :  { %7197 = vmatprep.subr.bf16.mxu1 %v11256_v60 }
 0x874   :  { %7198 = vmatpush1.bf16.msra.mxu1 %v11257_v3  ;;  %v5745_v3 = vld [vmem:[#allocation3 + $0x6] ss:$8 sm:$0xf] }
 0x875   :  { %7199 = vmatprep.subr.bf16.mxu1 %v11258_v63  ;;  %v5747_v63 = vor.u32 %v5746_v10, %v5745_v3 }
 0x877   :  { %v6534_v10 = vrot.slane %v5747_v63, 4 }
 0x878   :  { %7200 = vmatpush1.bf16.msra.mxu1 %v11259_v4 }
 0x879   :  { %7201 = vmatprep.subr.bf16.mxu1 %v11260_v40 }
 0x87c   :  { %7202 = vmatpush1.bf16.msra.mxu1 %v11261_v0 }
 0x87d   :  { %7203 = vmatprep.subr.bf16.mxu1 %v11262_v7 }
 0x880   :  { %7204 = vmatpush1.bf16.msra.mxu1 %v11263_v47  ;;  %v6486_v47 = vrot.slane %v5747_v63, 2 }
 0x881   :  { %7205 = vmatprep.subr.bf16.mxu1 %v11264_v49 }
 0x884   :  { %7206 = vmatpush1.bf16.msra.mxu1 %v11265_v22 }
 0x885   :  { %7207 = vmatprep.subr.bf16.mxu1 %v11266_v35 }
 0x888   :  { %7208 = vmatpush1.bf16.msra.mxu1 %v11267_v54 }
 0x889   :  { %7209 = vmatprep.subr.bf16.mxu1 %v11268_v12 }
 0x88c   :  { %7210 = vmatpush1.bf16.msra.mxu1 %v11269_v56 }
 0x8e2   :  { %v6371_v55 = vpop.f32.mrb[40].mxu1  ;;  %v6412_v14 = vpop.f32.mrb[44].mxu0 }
 0x8e3   :  { %v6373_v41 = vpop.f32.mrb[41].mxu1  ;;  %v6414_v24 = vpop.f32.mrb[45].mxu0 }
 0x8e4   :  { %v6462_v18 = vcombine.low %v6371_v55, %v6373_v41  ;;  %v6490_v19 = vcombine.low %v6412_v14, %v6414_v24  ;;  %v6375_v51 = vpop.f32.mrb[42].mxu1  ;;  %v6416_v31 = vpop.f32.mrb[46].mxu0 }
 0x8e5   :  { %v6376_v25 = vpop.f32.mrb[43].mxu1  ;;  %v6417_v46 = vpop.f32.mrb[47].mxu0 }
 0x8e6   :  { %v6469_v53 = vrot.slane %v6462_v18, %v9678_v2  ;;  %v6497_v40 = vrot.slane %v6490_v19, %v9678_v2 }
 0x8e8   :  { %v6476_v60 = vrot.slane %v6469_v53, %v9678_v2  ;;  %v6504_v7 = vrot.slane %v6497_v40, %v9678_v2 }
 0x8ea   :  { %v6478_v4 = vadd.f32 %v6476_v60, %v5747_v63  ;;  %v6506_v49 = vadd.f32 %v6504_v7, %v6486_v47 }
 0x8ec   :  { %v8190_v0 = vmul.f32 -1.442695, %v6478_v4  ;;  %v8191_v22 = vmul.f32 -1.442695, %v6506_v49 }
 0x8ee   :  { %9088 = vpow2.f32 %v8190_v0 }
 0x8ef   :  { %9090 = vpow2.f32 %v8191_v22 }
 0x8f8   :  { %v9089_v35 = vpop.eup %9088 }
 0x8f9   :  { %v6482_v54 = vadd.f32 1.0, %v9089_v35  ;;  %v9091_v24 = vpop.eup %9090 }
 0x8fa   :  { %v6510_v51 = vadd.f32 1.0, %v9091_v24 }
 0x8fb   :  { %9092 = vrcp.f32 %v6482_v54 }
 0x8fc   :  { %9094 = vrcp.f32 %v6510_v51 }
 0x905   :  { %v9093_v46 = vpop.eup %9092 }
 0x906   :  { %v9095_v3 = vpop.eup %9094 }
 0x907   :  { %v6538_v4 = vsub.f32 1.0, %v9095_v3  ;;  %v6540_v7 = vmul.f32 %v9095_v3, %v10783_v26 }
 0x922   :  { %v6453_v12 = vpop.f32.mrb[44].mxu1 }
 0x923   :  { %v6513_v56 = vadd.f32 %v6453_v12, %v9686_v33  ;;  %v6455_v55 = vpop.f32.mrb[45].mxu1 }
 0x924   :  { %v6514_v14 = vadd.f32 %v6455_v55, %v9689_v36  ;;  %v6457_v41 = vpop.f32.mrb[46].mxu1 }
 0x925   :  { %v6458_v18 = vpop.f32.mrb[47].mxu1 }
 0x926   :  { %v6517_v19 = vcombine.low %v6513_v56, %v6514_v14 }
 0x928   :  { %v6524_v31 = vrot.slane %v6517_v19, %v9678_v2 }
 0x92a   :  { %v6531_v25 = vrot.slane %v6524_v31, %v9678_v2 }
 0x92c   :  { %v6533_v53 = vmul.f32 %v9093_v46, %v6531_v25 }
 0x92e   :  { %v6536_v60 = vadd.f32 %v6534_v10, %v6533_v53 }
 0x930   :  { %9096 = vtanh.f32 %v6536_v60 }
 0x93a   :  { %v9097_v40 = vpop.eup %9096 }
 0x93b   :  { %v6539_v0 = vmul.f32 %v9097_v40, %v6538_v4 }
 0x93d   :  { %v10963_v47 = vadd.f32 %v6540_v7, %v6539_v0 }
 0x93f   :  { %v6557_v49 = vrot.slane %v10963_v47, %v9446_v42  ;;  %6543 = vst.msk [vmem:[#allocation12 + $0x6] ss:$8 sm:$0x3] %vm9406_vm0, %v10963_v47  ;;  %v6553_v63 = vrot.slane %v10963_v47, %v9459_v16 }
 0x941   :  { %v6561_v22 = vpack.c.bf16 %v6557_v49, %v6557_v49  ;;  %v6560_v35 = vpack.c.bf16 %v6553_v63, %v6553_v63 }
 0x943   :  { %7170 = vmatprep.mubr.bf16.mxu0 %v6561_v22  ;;  %7211 = vmatprep.mubr.bf16.mxu1 %v6561_v22 }
 0x944   :  { %7171 = vmatmul.mubr.bf16.vlgmr.msra.gmra.mrb[48].mxu0 %v6560_v35  ;;  %7212 = vmatmul.mubr.bf16.vlgmr.msra.gmra.mrb[48].mxu1 %v6560_v35 }
 0x945   :  { %7221 = vmatpush1.bf16.msra.mxu0 %v10792_v27  ;;  %7252 = vmatprep.mubr.bf16.mxu0 %v6561_v22 }
 0x946   :  { %7222 = vmatprep.subr.bf16.mxu0 %v10796_v15 }
 0x949   :  { %7223 = vmatpush1.bf16.msra.mxu0 %v10801_v6 }
 0x94a   :  { %7224 = vmatprep.subr.bf16.mxu0 %v10804_v43 }
 0x94d   :  { %7225 = vmatpush1.bf16.msra.mxu0 %v10809_v39 }
 0x94e   :  { %7226 = vmatprep.subr.bf16.mxu0 %v10812_v9 }
 0x951   :  { %7227 = vmatpush1.bf16.msra.mxu0 %v10817_v38 }
 0x952   :  { %7228 = vmatprep.subr.bf16.mxu0 %v10820_v52 }
 0x955   :  { %7229 = vmatpush1.bf16.msra.mxu0 %v10825_v50  ;;  %v6547_v50 = vld [vmem:[#allocation3 + $0x7] ss:$8 sm:$0x30] }
 0x956   :  { %7230 = vmatprep.subr.bf16.mxu0 %v10828_v13 }
 0x959   :  { %7231 = vmatpush1.bf16.msra.mxu0 %v10833_v32  ;;  %v6546_v32 = vld [vmem:[#allocation3 + $0x7] ss:$8 sm:$0xf] }
 0x95a   :  { %7232 = vmatprep.subr.bf16.mxu0 %v10836_v17  ;;  %v6548_v17 = vor.u32 %v6547_v50, %v6546_v32 }
 0x95c   :  { %v7335_v55 = vrot.slane %v6548_v17, 4 }
 0x95d   :  { %7233 = vmatpush1.bf16.msra.mxu0 %v10841_v1 }
 0x95e   :  { %7234 = vmatprep.subr.bf16.mxu0 %v10844_v20 }
 0x961   :  { %7235 = vmatpush1.bf16.msra.mxu0 %v10849_v30 }
 0x962   :  { %7236 = vmatprep.subr.bf16.mxu0 %v10852_v48 }
 0x965   :  { %7237 = vmatpush1.bf16.msra.mxu0 %v10857_v62  ;;  %v7287_v62 = vrot.slane %v6548_v17, 2 }
 0x966   :  { %7238 = vmatprep.subr.bf16.mxu0 %v10860_v21 }
 0x969   :  { %7239 = vmatpush1.bf16.msra.mxu0 %v10865_v28 }
 0x96a   :  { %7240 = vmatprep.subr.bf16.mxu0 %v10868_v59 }
 0x96d   :  { %7241 = vmatpush1.bf16.msra.mxu0 %v10873_v57 }
 0x96e   :  { %7242 = vmatprep.subr.bf16.mxu0 %v10876_v11 }
 0x971   :  { %7243 = vmatpush1.bf16.msra.mxu0 %v10881_v34 }
 0x972   :  { %7244 = vmatprep.subr.bf16.mxu0 %v10884_v44 }
 0x975   :  { %7245 = vmatpush1.bf16.msra.mxu0 %v10889_v23 }
 0x976   :  { %7246 = vmatprep.subr.bf16.mxu0 %v10892_v8 }
 0x979   :  { %7247 = vmatpush1.bf16.msra.mxu0 %v10897_v58 }
 0x97a   :  { %7248 = vmatprep.subr.bf16.mxu0 %v10900_v29 }
 0x97d   :  { %7249 = vmatpush1.bf16.msra.mxu0 %v10905_v61 }
 0x97e   :  { %7250 = vmatprep.subr.bf16.mxu0 %v10908_v5 }
 0x981   :  { %7251 = vmatpush1.bf16.msra.mxu0 %v10913_v37 }
 0x984   :  { %7253 = vmatmul.mubr.bf16.vlgmr.msra.gmra.mrb[52].mxu0 %v6560_v35 }
 0xa17   :  { %v7172_v42 = vpop.f32.mrb[48].mxu0  ;;  %v7213_v16 = vpop.f32.mrb[48].mxu1 }
 0xa18   :  { %v7174_v26 = vpop.f32.mrb[49].mxu0  ;;  %v7215_v27 = vpop.f32.mrb[49].mxu1 }
 0xa19   :  { %v7263_v15 = vcombine.low %v7172_v42, %v7174_v26  ;;  %v7291_v6 = vcombine.low %v7213_v16, %v7215_v27  ;;  %v7176_v43 = vpop.f32.mrb[50].mxu0  ;;  %v7217_v39 = vpop.f32.mrb[50].mxu1 }
 0xa1a   :  { %v7177_v9 = vpop.f32.mrb[51].mxu0  ;;  %v7218_v38 = vpop.f32.mrb[51].mxu1 }
 0xa1b   :  { %v7270_v52 = vrot.slane %v7263_v15, %v9678_v2  ;;  %v7298_v20 = vrot.slane %v7291_v6, %v9678_v2 }
 0xa1d   :  { %v7277_v13 = vrot.slane %v7270_v52, %v9678_v2  ;;  %v7305_v48 = vrot.slane %v7298_v20, %v9678_v2 }
 0xa1f   :  { %v7279_v1 = vadd.f32 %v7277_v13, %v6548_v17  ;;  %v7307_v21 = vadd.f32 %v7305_v48, %v7287_v62 }
 0xa21   :  { %v8288_v30 = vmul.f32 -1.442695, %v7279_v1  ;;  %v8289_v28 = vmul.f32 -1.442695, %v7307_v21 }
 0xa23   :  { %9098 = vpow2.f32 %v8288_v30 }
 0xa24   :  { %9100 = vpow2.f32 %v8289_v28 }
 0xa2d   :  { %v9099_v59 = vpop.eup %9098 }
 0xa2e   :  { %v7283_v57 = vadd.f32 1.0, %v9099_v59  ;;  %v9101_v58 = vpop.eup %9100 }
 0xa2f   :  { %v7311_v5 = vadd.f32 1.0, %v9101_v58 }
 0xa30   :  { %9102 = vrcp.f32 %v7283_v57 }
 0xa31   :  { %9104 = vrcp.f32 %v7311_v5 }
 0xa3a   :  { %v9103_v12 = vpop.eup %9102 }
 0xa3b   :  { %v9105_v41 = vpop.eup %9104 }
 0xa57   :  { %v7254_v11 = vpop.f32.mrb[52].mxu0 }
 0xa58   :  { %v7314_v34 = vadd.f32 %v7254_v11, %v9686_v33  ;;  %v7256_v44 = vpop.f32.mrb[53].mxu0  ;;  %v7339_v33 = vsub.f32 1.0, %v9105_v41 }
 0xa59   :  { %v7315_v23 = vadd.f32 %v7256_v44, %v9689_v36  ;;  %v7258_v8 = vpop.f32.mrb[54].mxu0  ;;  %v7341_v36 = vmul.f32 %v9105_v41, %v10963_v47 }
 0xa5a   :  { %v7259_v29 = vpop.f32.mrb[55].mxu0 }
 0xa5b   :  { %v7318_v61 = vcombine.low %v7314_v34, %v7315_v23 }
 0xa5d   :  { %v7325_v37 = vrot.slane %v7318_v61, %v9678_v2 }
 0xa5f   :  { %v7332_v54 = vrot.slane %v7325_v37, %v9678_v2 }
 0xa61   :  { %v7334_v56 = vmul.f32 %v9103_v12, %v7332_v54 }
 0xa63   :  { %v7337_v14 = vadd.f32 %v7335_v55, %v7334_v56 }
 0xa65   :  { %9106 = vtanh.f32 %v7337_v14 }
 0xa6f   :  { %v9107_v24 = vpop.eup %9106 }
 0xa70   :  { %v7340_v18 = vmul.f32 %v9107_v24, %v7339_v33 }
 0xa72   :  { %v7342_v19 = vadd.f32 %v7341_v36, %v7340_v18 }
 0xa74   :  { %7344 = vst.msk [vmem:[#allocation12 + $0x7] ss:$8 sm:$0x3] %vm9406_vm0, %v7342_v19 }
 0xa75   :  { %9238 = shalt.err (!%p9235_p3)
}
 0xa76   :  { %s9239_s27 = scalar_lea.hbm %s11033_s7, 256 }
 0xa77   :  { %p9240_p4 = scmp.ne.s32.totalorder %s11033_s7, %s9239_s27  ;;  %p9243_p5 = scmp.lt.u32.totalorder %s9239_s27, %s11033_s7 }
 0xa79   :  { %p9245_p6 = pnand %p9243_p5, %p9240_p4 }
 0xa7b   :  { %9248 = shalt.err (!%p9245_p6)
}
 0xa7c   :  { %7355 = dma.vmem_to_hbm [thread:$0]  %s7353_s4, 256, %s11033_s7, [#allocation6]  }
 0xa7d   :  { %9255 = dma.done.wait [#allocation6], 256  }
 0xa7e   :  { %9256 = vsyncadd [#allocation6], 4294967040 }
 0xa7f   :  { %7359 = vsyncpa [#allocation5], 1 }
 0xa80   :  { %7360 = vsyncpa [#allocation10], 1 }
 0xa81   :  { %7361 = vsyncpa [#allocation6], 1 }
 0xa82   :  { %7362 = vsyncpa [#allocation7], 1 }

</bundles_post_ra>
